<compile_context>
chip_gen: v7x
topology: tpu7x:2x2x1
jax: 0.10.0
libtpu: 0.0.40
codegen_flags: <defaults>
</compile_context>

<pallas_src>
import jax
import jax.numpy as jnp
import numpy as np
from jax import lax
from jax.experimental import pallas as pl
from jax.experimental.pallas import tpu as pltpu


K1P = 32      # conv1 contraction dim padded 27 -> 32
COUT = 256    # conv channels
NACT = 9      # action space
NHID = 64     # fc1 width (lane-padded to 128 inside the kernel)
NOUT = 128    # lane-padded fc1 / q-value width


def _pick_bb(batch):
    """Batch rows per grid step.

    Multiple of 16 (bf16 sublane packing keeps every static row slice of the
    VMEM-resident activations vreg-aligned), capped at 64 so f32 intermediates
    stay well inside scoped VMEM on v5e/v7x, and chosen so batches >= 32 give
    >= 2 grid blocks (dual-TensorCore sharding on v7x)."""
    bp = -(-batch // 16) * 16
    if bp <= 16:
        return 16
    if bp <= 128:
        return max(16, min(64, -(-(bp // 2) // 16) * 16))
    return 64


# ------------------------------ Pallas kernel -------------------------------

def dqnet_kernel(p1_ref, w1_ref, b1_ref, w2_ref, b2_ref,
                 w3_ref, b3_ref, w4_ref, b4_ref, o_ref):
    """Fused DQNet forward for one batch block of BB samples.

    p1_ref : (4*16*BB, K1P) bf16  conv1 im2col patches, rows ordered
                                  (win, h2, w2, b); win = 2x2 pool member
    w1_ref : (K1P, 256) bf16      conv1 weight as (kh,kw,cin)->cout matrix
    w2_ref : (2304, 256) bf16     conv2 weight as (kh,kw,cin)->cout matrix
    w3_ref : (256, 128) bf16      fc1, lane-padded 64 -> 128
    w4_ref : (128, 128) bf16      fc2, padded (64,9) -> (128,128)
    b*_ref : (1, C) f32 biases (b3/b4 lane-padded)
    o_ref  : (BB, 128) f32        q-values (first 9 lanes valid)
    """
    bb = o_ref.shape[0]
    g = 16 * bb   # conv1 pooled rows per window: 4x4 spatial x bb samples

    # ---- conv1: 4 per-window MXU matmuls with a running max (low live f32) --
    m1 = None
    for w in range(4):
        z = jnp.dot(p1_ref[w * g:(w + 1) * g, :], w1_ref[...],
                    preferred_element_type=jnp.float32)            # (g, 256)
        m1 = z if m1 is None else jnp.maximum(m1, z)
    # bias + ReLU after the 2x2 pool (exact: shared bias, monotone ReLU).
    r1 = jnp.maximum(m1 + b1_ref[...], 0.0)                        # (g, 256) f32
    r1b = r1.astype(jnp.bfloat16)                                  # cast ONCE
    # r1b rows ordered (h2, w2, b): the (BB,4,4,256) conv1 activation, kept
    # entirely in VMEM/vregs -- never written back to HBM.

    # ---- conv2 + ReLU + 2x2 pool: 18 accumulated matmuls, no patch concat ---
    # For pooled-output row oh and tap (kh, kw), the LHS is the contiguous
    # 2*bb-row slab of r1b covering spatial rows (oh+kh, kw) and (oh+kh, kw+1),
    # i.e. conv2 outputs (oh, ow=0) and (oh, ow=1) for every sample.
    acc0 = jnp.zeros((2 * bb, COUT), jnp.float32)   # oh = 0, rows = (ow, b)
    acc1 = jnp.zeros((2 * bb, COUT), jnp.float32)   # oh = 1, rows = (ow, b)
    for kh in range(3):
        for kw in range(3):
            wt = w2_ref[(kh * 3 + kw) * COUT:(kh * 3 + kw + 1) * COUT, :]
            s0 = (kh * 4 + kw) * bb
            s1 = ((kh + 1) * 4 + kw) * bb
            acc0 = acc0 + jnp.dot(r1b[s0:s0 + 2 * bb, :], wt,
                                  preferred_element_type=jnp.float32)
            acc1 = acc1 + jnp.dot(r1b[s1:s1 + 2 * bb, :], wt,
                                  preferred_element_type=jnp.float32)
    m2 = jnp.maximum(acc0, acc1)                                   # pool over oh
    z2 = jnp.maximum(m2[0:bb, :], m2[bb:2 * bb, :])                # pool over ow
    r2 = jnp.maximum(z2 + b2_ref[...], 0.0)                        # (bb, 256) f32

    # ---- fc head (lane-dense 128 wide): Linear(256,64)+ReLU, Linear(64,9) ---
    h = jnp.dot(r2.astype(jnp.bfloat16), w3_ref[...],
                preferred_element_type=jnp.float32) + b3_ref[...]
    h = jnp.maximum(h, 0.0)                                        # (bb, 128)
    o_ref[...] = jnp.dot(h.astype(jnp.bfloat16), w4_ref[...],
                         preferred_element_type=jnp.float32) + b4_ref[...]


# -------------------------------- JAX glue ----------------------------------

def im2col(x_nhwc, k=3):
    """(B,H,W,C) -> (B, H-k+1, W-k+1, k*k*C); K ordered (kh, kw, cin)."""
    _, hh, ww, _ = x_nhwc.shape
    ho, wo = hh - k + 1, ww - k + 1
    cols = []
    for kh in range(k):
        for kw in range(k):
            cols.append(x_nhwc[:, kh:kh + ho, kw:kw + wo, :])
    return jnp.concatenate(cols, axis=-1)


def conv_w_to_mat(w_oihw):
    """PyTorch (Cout,Cin,kh,kw) -> (kh*kw*Cin, Cout), matching im2col K order."""
    return jnp.transpose(w_oihw, (2, 3, 1, 0)).reshape(-1, w_oihw.shape[0])


def prep_params(raw):
    """PyTorch-layout weights -> kernel layout (bf16 MXU operands, f32 biases).

    fc1/fc2 are zero-padded to 128 lanes: the padded fc1 columns produce exact
    zeros after ReLU and the padded fc2 rows multiply those zeros, so the
    padding is numerically exact."""
    w1 = conv_w_to_mat(raw["w_conv1"])                          # (27, 256)
    w1 = jnp.pad(w1, ((0, K1P - w1.shape[0]), (0, 0)))          # (32, 256)
    w3 = jnp.pad(raw["w_fc1"].T, ((0, 0), (0, NOUT - NHID)))    # (256, 128)
    b3 = jnp.pad(raw["b_fc1"].reshape(1, NHID), ((0, 0), (0, NOUT - NHID)))
    w4 = jnp.pad(raw["w_fc2"].T, ((0, NOUT - NHID), (0, NOUT - NACT)))  # (128,128)
    b4 = jnp.pad(raw["b_fc2"].reshape(1, NACT), ((0, 0), (0, NOUT - NACT)))
    return dict(
        w1=w1.astype(jnp.bfloat16),
        b1=raw["b_conv1"].reshape(1, COUT).astype(jnp.float32),
        w2=conv_w_to_mat(raw["w_conv2"]).astype(jnp.bfloat16),  # (2304, 256)
        b2=raw["b_conv2"].reshape(1, COUT).astype(jnp.float32),
        w3=w3.astype(jnp.bfloat16),
        b3=b3.astype(jnp.float32),
        w4=w4.astype(jnp.bfloat16),
        b4=b4.astype(jnp.float32),
    )


def dqnet_forward(x_nchw, params, is_training=False):
    # TODO(synk): training-mode Dropout(0.2) is stochastic (PyTorch RNG);
    #             eval-mode (identity) semantics are implemented here.
    del is_training
    b = x_nchw.shape[0]
    bb = _pick_bb(b)
    b_pad = -(-b // bb) * bb
    nb = b_pad // bb
    if b_pad != b:
        x_nchw = jnp.pad(x_nchw, ((0, b_pad - b), (0, 0), (0, 0), (0, 0)))

    x = jnp.transpose(x_nchw, (0, 2, 3, 1))                     # NHWC (Bp,10,10,3)

    # conv1 im2col patches, rows grouped (batch-block, win, h2, w2, b_in).
    # Batch-innermost ordering is what makes every in-kernel slice contiguous;
    # the producer (im2col concat + pad + reorder + bf16 cast) writes only
    # ~4 KB/sample and is a single small upstream op.
    p1 = im2col(x)                                              # (Bp, 8, 8, 27)
    p1 = jnp.pad(p1, ((0, 0), (0, 0), (0, 0), (0, K1P - p1.shape[-1])))
    p1 = p1.reshape(nb, bb, 4, 2, 4, 2, K1P)                    # (bo,bi,h2,dh,w2,dw,K)
    p1 = p1.transpose(0, 3, 5, 2, 4, 1, 6)                      # (bo,dh,dw,h2,w2,bi,K)
    p1 = p1.reshape(nb * 4 * 16 * bb, K1P).astype(jnp.bfloat16)

    out = pl.pallas_call(
        dqnet_kernel,
        out_shape=jax.ShapeDtypeStruct((b_pad, NOUT), jnp.float32),
        grid=(nb,),
        in_specs=[
            pl.BlockSpec((4 * 16 * bb, K1P), lambda i: (i, 0)),
            # Grid-invariant weights/biases (constant block index).
            # TODO(synk): single-buffer these (pl.Buffered(1)) once verified on
            #             the target jaxlib; saves ~1.3 MB of VMEM headroom.
            pl.BlockSpec(params["w1"].shape, lambda i: (0, 0)),
            pl.BlockSpec(params["b1"].shape, lambda i: (0, 0)),
            pl.BlockSpec(params["w2"].shape, lambda i: (0, 0)),
            pl.BlockSpec(params["b2"].shape, lambda i: (0, 0)),
            pl.BlockSpec(params["w3"].shape, lambda i: (0, 0)),
            pl.BlockSpec(params["b3"].shape, lambda i: (0, 0)),
            pl.BlockSpec(params["w4"].shape, lambda i: (0, 0)),
            pl.BlockSpec(params["b4"].shape, lambda i: (0, 0)),
        ],
        out_specs=pl.BlockSpec((bb, NOUT), lambda i: (i, 0)),
        compiler_params=pltpu.CompilerParams(
            dimension_semantics=("parallel",),        # shard blocks across TCs
            vmem_limit_bytes=32 * 1024 * 1024),       # explicit scoped budget
    )(p1, params["w1"], params["b1"], params["w2"], params["b2"],
      params["w3"], params["b3"], params["w4"], params["b4"])

    return out[:b, :NACT]


# ----------------------- pure-JAX reference (check) --------------------------

def dqnet_reference(x_nchw, raw):
    y = lax.conv_general_dilated(x_nchw, raw["w_conv1"], (1, 1), "VALID",
                                 dimension_numbers=("NCHW", "OIHW", "NCHW"))
    y = jnp.maximum(y + raw["b_conv1"][None, :, None, None], 0.0)
    y = lax.reduce_window(y, -jnp.inf, lax.max, (1, 1, 2, 2), (1, 1, 2, 2), "VALID")
    y = lax.conv_general_dilated(y, raw["w_conv2"], (1, 1), "VALID",
                                 dimension_numbers=("NCHW", "OIHW", "NCHW"))
    y = jnp.maximum(y + raw["b_conv2"][None, :, None, None], 0.0)
    y = lax.reduce_window(y, -jnp.inf, lax.max, (1, 1, 2, 2), (1, 1, 2, 2), "VALID")
    y = y.reshape(y.shape[0], -1)
    h = jnp.maximum(y @ raw["w_fc1"].T + raw["b_fc1"], 0.0)
    return h @ raw["w_fc2"].T + raw["b_fc2"]


# ---------------------------------- main -------------------------------------

if __name__ == "__main__":
    key = jax.random.PRNGKey(0)
    ks = jax.random.split(key, 10)

    # Deterministic synthetic parameters (PyTorch layouts).
    raw = dict(
        w_conv1=jax.random.normal(ks[0], (256, 3, 3, 3), jnp.float32) / np.sqrt(27),
        b_conv1=jax.random.normal(ks[1], (256,), jnp.float32) * 0.01,
        w_conv2=jax.random.normal(ks[2], (256, 256, 3, 3), jnp.float32) / np.sqrt(2304),
        b_conv2=jax.random.normal(ks[3], (256,), jnp.float32) * 0.01,
        w_fc1=jax.random.normal(ks[4], (64, 256), jnp.float32) / np.sqrt(256),
        b_fc1=jax.random.normal(ks[5], (64,), jnp.float32) * 0.01,
        w_fc2=jax.random.normal(ks[6], (9, 64), jnp.float32) / np.sqrt(64),
        b_fc2=jax.random.normal(ks[7], (9,), jnp.float32) * 0.01,
    )
    params = prep_params(raw)

    fwd = jax.jit(lambda xx: dqnet_forward(xx, params, is_training=False))

    # Tiny online action-selection batch (PyTorch NCHW, batch=2, 3x10x10).
    x_small = jax.random.normal(ks[8], (2, 3, 10, 10), jnp.float32)
    out_small = jax.block_until_ready(fwd(x_small))
    assert out_small.shape == (2, NACT) and out_small.dtype == jnp.float32
    np.testing.assert_allclose(np.asarray(out_small),
                               np.asarray(dqnet_reference(x_small, raw)),
                               rtol=7.5e-2, atol=7.5e-2)

    # RL minibatch (config.minibatch_size=64) -> BB=32, 2 grid blocks.
    x_train = jax.random.normal(ks[9], (64, 3, 10, 10), jnp.float32)
    out_train = jax.block_until_ready(fwd(x_train))
    assert out_train.shape == (64, NACT) and out_train.dtype == jnp.float32
    np.testing.assert_allclose(np.asarray(out_train),
                               np.asarray(dqnet_reference(x_train, raw)),
                               rtol=7.5e-2, atol=7.5e-2)

    print("KERNEL_OK")
</pallas_src>

<mosaic_0001>
module attributes {stable_mosaic.version = 11 : i64} {
  func.func @dqnet_kernel(%arg0: i32, %arg1: memref<1024x32xbf16, #tpu.memory_space<vmem>>, %arg2: memref<32x256xbf16, #tpu.memory_space<vmem>>, %arg3: memref<1x256xf32, #tpu.memory_space<vmem>>, %arg4: memref<2304x256xbf16, #tpu.memory_space<vmem>>, %arg5: memref<1x256xf32, #tpu.memory_space<vmem>>, %arg6: memref<256x128xbf16, #tpu.memory_space<vmem>>, %arg7: memref<1x128xf32, #tpu.memory_space<vmem>>, %arg8: memref<128x128xbf16, #tpu.memory_space<vmem>>, %arg9: memref<1x128xf32, #tpu.memory_space<vmem>>, %arg10: memref<16x128xf32, #tpu.memory_space<vmem>>) attributes {dimension_semantics = [#tpu.dimension_semantics<parallel>], iteration_bounds = array<i64: 1>, scalar_prefetch = 0 : i64, scratch_operands = 0 : i64, tpu.core_type = #tpu.core_type<tc>, window_params = [{transform_indices = @transform_0, window_bounds = array<i64: 1024, 32>}, {pipeline_mode = #tpu.pipeline_mode<synchronous>, transform_indices = @transform_1, window_bounds = array<i64: 32, 256>}, {pipeline_mode = #tpu.pipeline_mode<synchronous>, transform_indices = @transform_2, window_bounds = array<i64: 1, 256>}, {pipeline_mode = #tpu.pipeline_mode<synchronous>, transform_indices = @transform_3, window_bounds = array<i64: 2304, 256>}, {pipeline_mode = #tpu.pipeline_mode<synchronous>, transform_indices = @transform_4, window_bounds = array<i64: 1, 256>}, {pipeline_mode = #tpu.pipeline_mode<synchronous>, transform_indices = @transform_5, window_bounds = array<i64: 256, 128>}, {pipeline_mode = #tpu.pipeline_mode<synchronous>, transform_indices = @transform_6, window_bounds = array<i64: 1, 128>}, {pipeline_mode = #tpu.pipeline_mode<synchronous>, transform_indices = @transform_7, window_bounds = array<i64: 128, 128>}, {pipeline_mode = #tpu.pipeline_mode<synchronous>, transform_indices = @transform_8, window_bounds = array<i64: 1, 128>}, {transform_indices = @transform_9, window_bounds = array<i64: 16, 128>}]} {
    %c0 = arith.constant 0 : index
    %c0_0 = arith.constant 0 : index
    %0 = vector.load %arg1[%c0, %c0_0] : memref<1024x32xbf16, #tpu.memory_space<vmem>>, vector<256x32xbf16>
    %c0_1 = arith.constant 0 : index
    %c0_2 = arith.constant 0 : index
    %1 = vector.load %arg2[%c0_1, %c0_2] : memref<32x256xbf16, #tpu.memory_space<vmem>>, vector<32x256xbf16>
    %cst = arith.constant dense<0.000000e+00> : vector<256x256xf32>
    %2 = tpu.matmul %0, %1, %cst {dimension_numbers = #tpu.dot_dimension_numbers<[1], [0], [0], [1], [0, 0, 1, 1], [], []>} : vector<256x32xbf16>, vector<32x256xbf16>, vector<256x256xf32> -> vector<256x256xf32>
    %c256 = arith.constant 256 : index
    %c0_3 = arith.constant 0 : index
    %3 = vector.load %arg1[%c256, %c0_3] : memref<1024x32xbf16, #tpu.memory_space<vmem>>, vector<256x32xbf16>
    %c0_4 = arith.constant 0 : index
    %c0_5 = arith.constant 0 : index
    %4 = vector.load %arg2[%c0_4, %c0_5] : memref<32x256xbf16, #tpu.memory_space<vmem>>, vector<32x256xbf16>
    %cst_6 = arith.constant dense<0.000000e+00> : vector<256x256xf32>
    %5 = tpu.matmul %3, %4, %cst_6 {dimension_numbers = #tpu.dot_dimension_numbers<[1], [0], [0], [1], [0, 0, 1, 1], [], []>} : vector<256x32xbf16>, vector<32x256xbf16>, vector<256x256xf32> -> vector<256x256xf32>
    %6 = arith.maximumf %2, %5 : vector<256x256xf32>
    %c512 = arith.constant 512 : index
    %c0_7 = arith.constant 0 : index
    %7 = vector.load %arg1[%c512, %c0_7] : memref<1024x32xbf16, #tpu.memory_space<vmem>>, vector<256x32xbf16>
    %c0_8 = arith.constant 0 : index
    %c0_9 = arith.constant 0 : index
    %8 = vector.load %arg2[%c0_8, %c0_9] : memref<32x256xbf16, #tpu.memory_space<vmem>>, vector<32x256xbf16>
    %cst_10 = arith.constant dense<0.000000e+00> : vector<256x256xf32>
    %9 = tpu.matmul %7, %8, %cst_10 {dimension_numbers = #tpu.dot_dimension_numbers<[1], [0], [0], [1], [0, 0, 1, 1], [], []>} : vector<256x32xbf16>, vector<32x256xbf16>, vector<256x256xf32> -> vector<256x256xf32>
    %10 = arith.maximumf %6, %9 : vector<256x256xf32>
    %c768 = arith.constant 768 : index
    %c0_11 = arith.constant 0 : index
    %11 = vector.load %arg1[%c768, %c0_11] : memref<1024x32xbf16, #tpu.memory_space<vmem>>, vector<256x32xbf16>
    %c0_12 = arith.constant 0 : index
    %c0_13 = arith.constant 0 : index
    %12 = vector.load %arg2[%c0_12, %c0_13] : memref<32x256xbf16, #tpu.memory_space<vmem>>, vector<32x256xbf16>
    %cst_14 = arith.constant dense<0.000000e+00> : vector<256x256xf32>
    %13 = tpu.matmul %11, %12, %cst_14 {dimension_numbers = #tpu.dot_dimension_numbers<[1], [0], [0], [1], [0, 0, 1, 1], [], []>} : vector<256x32xbf16>, vector<32x256xbf16>, vector<256x256xf32> -> vector<256x256xf32>
    %14 = arith.maximumf %10, %13 : vector<256x256xf32>
    %c0_15 = arith.constant 0 : index
    %c0_16 = arith.constant 0 : index
    %15 = vector.load %arg3[%c0_15, %c0_16] : memref<1x256xf32, #tpu.memory_space<vmem>>, vector<1x256xf32>
    %16 = vector.broadcast %15 : vector<1x256xf32> to vector<256x256xf32>
    %17 = arith.addf %14, %16 : vector<256x256xf32>
    %cst_17 = arith.constant 0.000000e+00 : f32
    %18 = vector.broadcast %cst_17 : f32 to vector<256x256xf32>
    %19 = arith.maximumf %17, %18 : vector<256x256xf32>
    %20 = arith.truncf %19 : vector<256x256xf32> to vector<256x256xbf16>
    %cst_18 = arith.constant 0.000000e+00 : f32
    %21 = vector.broadcast %cst_18 : f32 to vector<32x256xf32>
    %cst_19 = arith.constant 0.000000e+00 : f32
    %22 = vector.broadcast %cst_19 : f32 to vector<32x256xf32>
    %c0_20 = arith.constant 0 : index
    %c0_21 = arith.constant 0 : index
    %23 = vector.load %arg4[%c0_20, %c0_21] : memref<2304x256xbf16, #tpu.memory_space<vmem>>, vector<256x256xbf16>
    %24 = vector.extract_strided_slice %20 {offsets = [0, 0], sizes = [32, 256], strides = [1, 1]} : vector<256x256xbf16> to vector<32x256xbf16>
    %cst_22 = arith.constant dense<0.000000e+00> : vector<32x256xf32>
    %25 = tpu.matmul %24, %23, %cst_22 {dimension_numbers = #tpu.dot_dimension_numbers<[1], [0], [0], [1], [0, 0, 1, 1], [], []>} : vector<32x256xbf16>, vector<256x256xbf16>, vector<32x256xf32> -> vector<32x256xf32>
    %26 = arith.addf %21, %25 : vector<32x256xf32>
    %27 = vector.extract_strided_slice %20 {offsets = [64, 0], sizes = [32, 256], strides = [1, 1]} : vector<256x256xbf16> to vector<32x256xbf16>
    %cst_23 = arith.constant dense<0.000000e+00> : vector<32x256xf32>
    %28 = tpu.matmul %27, %23, %cst_23 {dimension_numbers = #tpu.dot_dimension_numbers<[1], [0], [0], [1], [0, 0, 1, 1], [], []>} : vector<32x256xbf16>, vector<256x256xbf16>, vector<32x256xf32> -> vector<32x256xf32>
    %29 = arith.addf %22, %28 : vector<32x256xf32>
    %c256_24 = arith.constant 256 : index
    %c0_25 = arith.constant 0 : index
    %30 = vector.load %arg4[%c256_24, %c0_25] : memref<2304x256xbf16, #tpu.memory_space<vmem>>, vector<256x256xbf16>
    %31 = vector.extract_strided_slice %20 {offsets = [16, 0], sizes = [32, 256], strides = [1, 1]} : vector<256x256xbf16> to vector<32x256xbf16>
    %cst_26 = arith.constant dense<0.000000e+00> : vector<32x256xf32>
    %32 = tpu.matmul %31, %30, %cst_26 {dimension_numbers = #tpu.dot_dimension_numbers<[1], [0], [0], [1], [0, 0, 1, 1], [], []>} : vector<32x256xbf16>, vector<256x256xbf16>, vector<32x256xf32> -> vector<32x256xf32>
    %33 = arith.addf %26, %32 : vector<32x256xf32>
    %34 = vector.extract_strided_slice %20 {offsets = [80, 0], sizes = [32, 256], strides = [1, 1]} : vector<256x256xbf16> to vector<32x256xbf16>
    %cst_27 = arith.constant dense<0.000000e+00> : vector<32x256xf32>
    %35 = tpu.matmul %34, %30, %cst_27 {dimension_numbers = #tpu.dot_dimension_numbers<[1], [0], [0], [1], [0, 0, 1, 1], [], []>} : vector<32x256xbf16>, vector<256x256xbf16>, vector<32x256xf32> -> vector<32x256xf32>
    %36 = arith.addf %29, %35 : vector<32x256xf32>
    %c512_28 = arith.constant 512 : index
    %c0_29 = arith.constant 0 : index
    %37 = vector.load %arg4[%c512_28, %c0_29] : memref<2304x256xbf16, #tpu.memory_space<vmem>>, vector<256x256xbf16>
    %38 = vector.extract_strided_slice %20 {offsets = [32, 0], sizes = [32, 256], strides = [1, 1]} : vector<256x256xbf16> to vector<32x256xbf16>
    %cst_30 = arith.constant dense<0.000000e+00> : vector<32x256xf32>
    %39 = tpu.matmul %38, %37, %cst_30 {dimension_numbers = #tpu.dot_dimension_numbers<[1], [0], [0], [1], [0, 0, 1, 1], [], []>} : vector<32x256xbf16>, vector<256x256xbf16>, vector<32x256xf32> -> vector<32x256xf32>
    %40 = arith.addf %33, %39 : vector<32x256xf32>
    %41 = vector.extract_strided_slice %20 {offsets = [96, 0], sizes = [32, 256], strides = [1, 1]} : vector<256x256xbf16> to vector<32x256xbf16>
    %cst_31 = arith.constant dense<0.000000e+00> : vector<32x256xf32>
    %42 = tpu.matmul %41, %37, %cst_31 {dimension_numbers = #tpu.dot_dimension_numbers<[1], [0], [0], [1], [0, 0, 1, 1], [], []>} : vector<32x256xbf16>, vector<256x256xbf16>, vector<32x256xf32> -> vector<32x256xf32>
    %43 = arith.addf %36, %42 : vector<32x256xf32>
    %c768_32 = arith.constant 768 : index
    %c0_33 = arith.constant 0 : index
    %44 = vector.load %arg4[%c768_32, %c0_33] : memref<2304x256xbf16, #tpu.memory_space<vmem>>, vector<256x256xbf16>
    %45 = vector.extract_strided_slice %20 {offsets = [64, 0], sizes = [32, 256], strides = [1, 1]} : vector<256x256xbf16> to vector<32x256xbf16>
    %cst_34 = arith.constant dense<0.000000e+00> : vector<32x256xf32>
    %46 = tpu.matmul %45, %44, %cst_34 {dimension_numbers = #tpu.dot_dimension_numbers<[1], [0], [0], [1], [0, 0, 1, 1], [], []>} : vector<32x256xbf16>, vector<256x256xbf16>, vector<32x256xf32> -> vector<32x256xf32>
    %47 = arith.addf %40, %46 : vector<32x256xf32>
    %48 = vector.extract_strided_slice %20 {offsets = [128, 0], sizes = [32, 256], strides = [1, 1]} : vector<256x256xbf16> to vector<32x256xbf16>
    %cst_35 = arith.constant dense<0.000000e+00> : vector<32x256xf32>
    %49 = tpu.matmul %48, %44, %cst_35 {dimension_numbers = #tpu.dot_dimension_numbers<[1], [0], [0], [1], [0, 0, 1, 1], [], []>} : vector<32x256xbf16>, vector<256x256xbf16>, vector<32x256xf32> -> vector<32x256xf32>
    %50 = arith.addf %43, %49 : vector<32x256xf32>
    %c1024 = arith.constant 1024 : index
    %c0_36 = arith.constant 0 : index
    %51 = vector.load %arg4[%c1024, %c0_36] : memref<2304x256xbf16, #tpu.memory_space<vmem>>, vector<256x256xbf16>
    %52 = vector.extract_strided_slice %20 {offsets = [80, 0], sizes = [32, 256], strides = [1, 1]} : vector<256x256xbf16> to vector<32x256xbf16>
    %cst_37 = arith.constant dense<0.000000e+00> : vector<32x256xf32>
    %53 = tpu.matmul %52, %51, %cst_37 {dimension_numbers = #tpu.dot_dimension_numbers<[1], [0], [0], [1], [0, 0, 1, 1], [], []>} : vector<32x256xbf16>, vector<256x256xbf16>, vector<32x256xf32> -> vector<32x256xf32>
    %54 = arith.addf %47, %53 : vector<32x256xf32>
    %55 = vector.extract_strided_slice %20 {offsets = [144, 0], sizes = [32, 256], strides = [1, 1]} : vector<256x256xbf16> to vector<32x256xbf16>
    %cst_38 = arith.constant dense<0.000000e+00> : vector<32x256xf32>
    %56 = tpu.matmul %55, %51, %cst_38 {dimension_numbers = #tpu.dot_dimension_numbers<[1], [0], [0], [1], [0, 0, 1, 1], [], []>} : vector<32x256xbf16>, vector<256x256xbf16>, vector<32x256xf32> -> vector<32x256xf32>
    %57 = arith.addf %50, %56 : vector<32x256xf32>
    %c1280 = arith.constant 1280 : index
    %c0_39 = arith.constant 0 : index
    %58 = vector.load %arg4[%c1280, %c0_39] : memref<2304x256xbf16, #tpu.memory_space<vmem>>, vector<256x256xbf16>
    %59 = vector.extract_strided_slice %20 {offsets = [96, 0], sizes = [32, 256], strides = [1, 1]} : vector<256x256xbf16> to vector<32x256xbf16>
    %cst_40 = arith.constant dense<0.000000e+00> : vector<32x256xf32>
    %60 = tpu.matmul %59, %58, %cst_40 {dimension_numbers = #tpu.dot_dimension_numbers<[1], [0], [0], [1], [0, 0, 1, 1], [], []>} : vector<32x256xbf16>, vector<256x256xbf16>, vector<32x256xf32> -> vector<32x256xf32>
    %61 = arith.addf %54, %60 : vector<32x256xf32>
    %62 = vector.extract_strided_slice %20 {offsets = [160, 0], sizes = [32, 256], strides = [1, 1]} : vector<256x256xbf16> to vector<32x256xbf16>
    %cst_41 = arith.constant dense<0.000000e+00> : vector<32x256xf32>
    %63 = tpu.matmul %62, %58, %cst_41 {dimension_numbers = #tpu.dot_dimension_numbers<[1], [0], [0], [1], [0, 0, 1, 1], [], []>} : vector<32x256xbf16>, vector<256x256xbf16>, vector<32x256xf32> -> vector<32x256xf32>
    %64 = arith.addf %57, %63 : vector<32x256xf32>
    %c1536 = arith.constant 1536 : index
    %c0_42 = arith.constant 0 : index
    %65 = vector.load %arg4[%c1536, %c0_42] : memref<2304x256xbf16, #tpu.memory_space<vmem>>, vector<256x256xbf16>
    %66 = vector.extract_strided_slice %20 {offsets = [128, 0], sizes = [32, 256], strides = [1, 1]} : vector<256x256xbf16> to vector<32x256xbf16>
    %cst_43 = arith.constant dense<0.000000e+00> : vector<32x256xf32>
    %67 = tpu.matmul %66, %65, %cst_43 {dimension_numbers = #tpu.dot_dimension_numbers<[1], [0], [0], [1], [0, 0, 1, 1], [], []>} : vector<32x256xbf16>, vector<256x256xbf16>, vector<32x256xf32> -> vector<32x256xf32>
    %68 = arith.addf %61, %67 : vector<32x256xf32>
    %69 = vector.extract_strided_slice %20 {offsets = [192, 0], sizes = [32, 256], strides = [1, 1]} : vector<256x256xbf16> to vector<32x256xbf16>
    %cst_44 = arith.constant dense<0.000000e+00> : vector<32x256xf32>
    %70 = tpu.matmul %69, %65, %cst_44 {dimension_numbers = #tpu.dot_dimension_numbers<[1], [0], [0], [1], [0, 0, 1, 1], [], []>} : vector<32x256xbf16>, vector<256x256xbf16>, vector<32x256xf32> -> vector<32x256xf32>
    %71 = arith.addf %64, %70 : vector<32x256xf32>
    %c1792 = arith.constant 1792 : index
    %c0_45 = arith.constant 0 : index
    %72 = vector.load %arg4[%c1792, %c0_45] : memref<2304x256xbf16, #tpu.memory_space<vmem>>, vector<256x256xbf16>
    %73 = vector.extract_strided_slice %20 {offsets = [144, 0], sizes = [32, 256], strides = [1, 1]} : vector<256x256xbf16> to vector<32x256xbf16>
    %cst_46 = arith.constant dense<0.000000e+00> : vector<32x256xf32>
    %74 = tpu.matmul %73, %72, %cst_46 {dimension_numbers = #tpu.dot_dimension_numbers<[1], [0], [0], [1], [0, 0, 1, 1], [], []>} : vector<32x256xbf16>, vector<256x256xbf16>, vector<32x256xf32> -> vector<32x256xf32>
    %75 = arith.addf %68, %74 : vector<32x256xf32>
    %76 = vector.extract_strided_slice %20 {offsets = [208, 0], sizes = [32, 256], strides = [1, 1]} : vector<256x256xbf16> to vector<32x256xbf16>
    %cst_47 = arith.constant dense<0.000000e+00> : vector<32x256xf32>
    %77 = tpu.matmul %76, %72, %cst_47 {dimension_numbers = #tpu.dot_dimension_numbers<[1], [0], [0], [1], [0, 0, 1, 1], [], []>} : vector<32x256xbf16>, vector<256x256xbf16>, vector<32x256xf32> -> vector<32x256xf32>
    %78 = arith.addf %71, %77 : vector<32x256xf32>
    %c2048 = arith.constant 2048 : index
    %c0_48 = arith.constant 0 : index
    %79 = vector.load %arg4[%c2048, %c0_48] : memref<2304x256xbf16, #tpu.memory_space<vmem>>, vector<256x256xbf16>
    %80 = vector.extract_strided_slice %20 {offsets = [160, 0], sizes = [32, 256], strides = [1, 1]} : vector<256x256xbf16> to vector<32x256xbf16>
    %cst_49 = arith.constant dense<0.000000e+00> : vector<32x256xf32>
    %81 = tpu.matmul %80, %79, %cst_49 {dimension_numbers = #tpu.dot_dimension_numbers<[1], [0], [0], [1], [0, 0, 1, 1], [], []>} : vector<32x256xbf16>, vector<256x256xbf16>, vector<32x256xf32> -> vector<32x256xf32>
    %82 = arith.addf %75, %81 : vector<32x256xf32>
    %83 = vector.extract_strided_slice %20 {offsets = [224, 0], sizes = [32, 256], strides = [1, 1]} : vector<256x256xbf16> to vector<32x256xbf16>
    %cst_50 = arith.constant dense<0.000000e+00> : vector<32x256xf32>
    %84 = tpu.matmul %83, %79, %cst_50 {dimension_numbers = #tpu.dot_dimension_numbers<[1], [0], [0], [1], [0, 0, 1, 1], [], []>} : vector<32x256xbf16>, vector<256x256xbf16>, vector<32x256xf32> -> vector<32x256xf32>
    %85 = arith.addf %78, %84 : vector<32x256xf32>
    %86 = arith.maximumf %82, %85 : vector<32x256xf32>
    %87 = vector.extract_strided_slice %86 {offsets = [0, 0], sizes = [16, 256], strides = [1, 1]} : vector<32x256xf32> to vector<16x256xf32>
    %88 = vector.extract_strided_slice %86 {offsets = [16, 0], sizes = [16, 256], strides = [1, 1]} : vector<32x256xf32> to vector<16x256xf32>
    %89 = arith.maximumf %87, %88 : vector<16x256xf32>
    %c0_51 = arith.constant 0 : index
    %c0_52 = arith.constant 0 : index
    %90 = vector.load %arg5[%c0_51, %c0_52] : memref<1x256xf32, #tpu.memory_space<vmem>>, vector<1x256xf32>
    %91 = vector.broadcast %90 : vector<1x256xf32> to vector<16x256xf32>
    %92 = arith.addf %89, %91 : vector<16x256xf32>
    %cst_53 = arith.constant 0.000000e+00 : f32
    %93 = vector.broadcast %cst_53 : f32 to vector<16x256xf32>
    %94 = arith.maximumf %92, %93 : vector<16x256xf32>
    %95 = arith.truncf %94 : vector<16x256xf32> to vector<16x256xbf16>
    %c0_54 = arith.constant 0 : index
    %c0_55 = arith.constant 0 : index
    %96 = vector.load %arg6[%c0_54, %c0_55] : memref<256x128xbf16, #tpu.memory_space<vmem>>, vector<256x128xbf16>
    %cst_56 = arith.constant dense<0.000000e+00> : vector<16x128xf32>
    %97 = tpu.matmul %95, %96, %cst_56 {dimension_numbers = #tpu.dot_dimension_numbers<[1], [0], [0], [1], [0, 0, 1, 1], [], []>} : vector<16x256xbf16>, vector<256x128xbf16>, vector<16x128xf32> -> vector<16x128xf32>
    %c0_57 = arith.constant 0 : index
    %c0_58 = arith.constant 0 : index
    %98 = vector.load %arg7[%c0_57, %c0_58] : memref<1x128xf32, #tpu.memory_space<vmem>>, vector<1x128xf32>
    %99 = vector.broadcast %98 : vector<1x128xf32> to vector<16x128xf32>
    %100 = arith.addf %97, %99 : vector<16x128xf32>
    %cst_59 = arith.constant 0.000000e+00 : f32
    %101 = vector.broadcast %cst_59 : f32 to vector<16x128xf32>
    %102 = arith.maximumf %100, %101 : vector<16x128xf32>
    %103 = arith.truncf %102 : vector<16x128xf32> to vector<16x128xbf16>
    %c0_60 = arith.constant 0 : index
    %c0_61 = arith.constant 0 : index
    %104 = vector.load %arg8[%c0_60, %c0_61] : memref<128x128xbf16, #tpu.memory_space<vmem>>, vector<128x128xbf16>
    %cst_62 = arith.constant dense<0.000000e+00> : vector<16x128xf32>
    %105 = tpu.matmul %103, %104, %cst_62 {dimension_numbers = #tpu.dot_dimension_numbers<[1], [0], [0], [1], [0, 0, 1, 1], [], []>} : vector<16x128xbf16>, vector<128x128xbf16>, vector<16x128xf32> -> vector<16x128xf32>
    %c0_63 = arith.constant 0 : index
    %c0_64 = arith.constant 0 : index
    %106 = vector.load %arg9[%c0_63, %c0_64] : memref<1x128xf32, #tpu.memory_space<vmem>>, vector<1x128xf32>
    %107 = vector.broadcast %106 : vector<1x128xf32> to vector<16x128xf32>
    %108 = arith.addf %105, %107 : vector<16x128xf32>
    %c0_65 = arith.constant 0 : index
    %c0_66 = arith.constant 0 : index
    %109 = vector.load %arg10[%c0_65, %c0_66] : memref<16x128xf32, #tpu.memory_space<vmem>>, vector<16x128xf32>
    tpu.vector_store %arg10[%c0_65, %c0_66], %108 {strides = array<i32>} : memref<16x128xf32, #tpu.memory_space<vmem>>, vector<16x128xf32>,
    return
  }
  func.func @transform_0(%arg0: i32) -> (i32, i32) {
    %c0_i32 = arith.constant 0 : i32
    %c0_i32_0 = arith.constant 0 : i32
    return %arg0, %c0_i32 : i32, i32
  }
  func.func @transform_1(%arg0: i32) -> (i32, i32) {
    %c0_i32 = arith.constant 0 : i32
    %c0_i32_0 = arith.constant 0 : i32
    %c0_i32_1 = arith.constant 0 : i32
    return %c0_i32, %c0_i32_0 : i32, i32
  }
  func.func @transform_2(%arg0: i32) -> (i32, i32) {
    %c0_i32 = arith.constant 0 : i32
    %c0_i32_0 = arith.constant 0 : i32
    %c0_i32_1 = arith.constant 0 : i32
    return %c0_i32, %c0_i32_0 : i32, i32
  }
  func.func @transform_3(%arg0: i32) -> (i32, i32) {
    %c0_i32 = arith.constant 0 : i32
    %c0_i32_0 = arith.constant 0 : i32
    %c0_i32_1 = arith.constant 0 : i32
    return %c0_i32, %c0_i32_0 : i32, i32
  }
  func.func @transform_4(%arg0: i32) -> (i32, i32) {
    %c0_i32 = arith.constant 0 : i32
    %c0_i32_0 = arith.constant 0 : i32
    %c0_i32_1 = arith.constant 0 : i32
    return %c0_i32, %c0_i32_0 : i32, i32
  }
  func.func @transform_5(%arg0: i32) -> (i32, i32) {
    %c0_i32 = arith.constant 0 : i32
    %c0_i32_0 = arith.constant 0 : i32
    %c0_i32_1 = arith.constant 0 : i32
    return %c0_i32, %c0_i32_0 : i32, i32
  }
  func.func @transform_6(%arg0: i32) -> (i32, i32) {
    %c0_i32 = arith.constant 0 : i32
    %c0_i32_0 = arith.constant 0 : i32
    %c0_i32_1 = arith.constant 0 : i32
    return %c0_i32, %c0_i32_0 : i32, i32
  }
  func.func @transform_7(%arg0: i32) -> (i32, i32) {
    %c0_i32 = arith.constant 0 : i32
    %c0_i32_0 = arith.constant 0 : i32
    %c0_i32_1 = arith.constant 0 : i32
    return %c0_i32, %c0_i32_0 : i32, i32
  }
  func.func @transform_8(%arg0: i32) -> (i32, i32) {
    %c0_i32 = arith.constant 0 : i32
    %c0_i32_0 = arith.constant 0 : i32
    %c0_i32_1 = arith.constant 0 : i32
    return %c0_i32, %c0_i32_0 : i32, i32
  }
  func.func @transform_9(%arg0: i32) -> (i32, i32) {
    %c0_i32 = arith.constant 0 : i32
    %c0_i32_0 = arith.constant 0 : i32
    return %arg0, %c0_i32 : i32, i32
  }
}

</mosaic_0001>

<bundles_post_ra>
// kernel: _lambda_.1
= control target key start
LH: loop header
LB: loop body
LE: loop exit
PB: predicated region body
PF: predicated region fallthrough
CT: control target
= control target key end

     0   :  { %v6113_v1 = vmov 0   ;;  %vm169_vm0 = vcmask 261120   ;;  %vm6115_vm1 = vmmov 0   ;;  %s8469_s1 = inlined_call_operand.vmem [shape: bf16[32,256], index: 1, kind: input, shape index: {}]   ;;  %s8470_s0 = inlined_call_operand.vmem [shape: bf16[1024,32], index: 0, kind: input, shape index: {}]   ;;  %s8471_s3 = inlined_call_operand.vmem [shape: bf16[2304,256], index: 3, kind: input, shape index: {}]   ;;  %s8472_s2 = inlined_call_operand.vmem [shape: f32[1,256], index: 2, kind: input, shape index: {}]   ;;  %s8473_s5 = inlined_call_operand.vmem [shape: bf16[256,128], index: 5, kind: input, shape index: {}]   ;;  %s8474_s7 = inlined_call_operand.vmem [shape: bf16[128,128], index: 7, kind: input, shape index: {}]   ;;  %s8475_s4 = inlined_call_operand.vmem [shape: f32[1,256], index: 4, kind: input, shape index: {}]   ;;  %s8476_s6 = inlined_call_operand.vmem [shape: f32[1,128], index: 6, kind: input, shape index: {}]   ;;  %s8477_s8 = inlined_call_operand.vmem [shape: f32[1,128], index: 8, kind: input, shape index: {}]   ;;  %s8478_s9 = inlined_call_operand.vmem [shape: f32[16,128], index: 9, kind: output, shape index: {}]  }
   0x1   :  { %v5587_v0 = vld [vmem:[%s8469_s1 + $0x4] ss:$8 sps:$4 sm:$0xff]   ;;  %250 = vmatprep.mubr.bf16.mxu0 %v6113_v1  ;;  %603 = vmatprep.mubr.bf16.mxu1 %v6113_v1  ;;  %v5589_v2 = vld [vmem:[%s8469_s1] ss:$8 sps:$4 sm:$0xff]   ;;  %v5590_v3 = vld [vmem:[%s8469_s1 + $0x14] ss:$8 sps:$4 sm:$0xff]  }
   0x2   :  { %218 = vmatprep.subr.bf16.mxu0 %v5587_v0  ;;  %571 = vmatprep.subr.bf16.mxu1 %v5587_v0  ;;  %v5592_v4 = vld [vmem:[%s8469_s1 + $0x10] ss:$8 sps:$4 sm:$0xff]   ;;  %v5593_v5 = vld [vmem:[%s8470_s0] sm:$0xff]   ;;  %v5595_v7 = vld [vmem:[%s8470_s0 + $0x8] sm:$0xff]  }
   0x3   :  { %219 = vmatpush1.bf16.msra.mxu0 %v5589_v2  ;;  %572 = vmatpush1.bf16.msra.mxu1 %v5589_v2  ;;  %v5594_v6 = vld [vmem:[%s8470_s0 + $0x80] sm:$0xff]   ;;  %v5596_v8 = vld [vmem:[%s8470_s0 + $0x88] sm:$0xff]   ;;  %v5597_v9 = vld [vmem:[%s8470_s0 + $0x10] sm:$0xff]  }
   0x4   :  { %220 = vmatprep.subr.bf16.mxu0 %v5590_v3  ;;  %573 = vmatprep.subr.bf16.mxu1 %v5590_v3  ;;  %v5598_v10 = vld [vmem:[%s8470_s0 + $0x90] sm:$0xff]   ;;  %v5599_v11 = vld [vmem:[%s8470_s0 + $0x18] sm:$0xff]   ;;  %v5601_v13 = vld [vmem:[%s8470_s0 + $0x20] sm:$0xff]  }
   0x5   :  { %v5600_v12 = vld [vmem:[%s8470_s0 + $0x98] sm:$0xff]   ;;  %v5602_v14 = vld [vmem:[%s8470_s0 + $0xa0] sm:$0xff]   ;;  %v5603_v15 = vld [vmem:[%s8470_s0 + $0x28] sm:$0xff]  }
   0x6   :  { %v5604_v16 = vld [vmem:[%s8470_s0 + $0xa8] sm:$0xff]   ;;  %v5605_v17 = vld [vmem:[%s8470_s0 + $0x30] sm:$0xff]   ;;  %v5607_v19 = vld [vmem:[%s8470_s0 + $0x38] sm:$0xff]  }
   0x7   :  { %221 = vmatpush1.bf16.msra.mxu0 %v5592_v4  ;;  %574 = vmatpush1.bf16.msra.mxu1 %v5592_v4  ;;  %v5606_v18 = vld [vmem:[%s8470_s0 + $0xb0] sm:$0xff]   ;;  %v5608_v20 = vld [vmem:[%s8470_s0 + $0xb8] sm:$0xff]   ;;  %v5609_v21 = vld [vmem:[%s8470_s0 + $0x40] sm:$0xff]  }
   0x8   :  { %988 = vmatprep.subr.bf16.mxu0 %v5587_v0  ;;  %1405 = vmatprep.subr.bf16.mxu1 %v5587_v0  ;;  %v5610_v22 = vld [vmem:[%s8470_s0 + $0xc0] sm:$0xff]   ;;  %v5611_v23 = vld [vmem:[%s8470_s0 + $0x48] sm:$0xff]   ;;  %v5613_v25 = vld [vmem:[%s8470_s0 + $0x50] sm:$0xff]  }
   0x9   :  { %v5612_v24 = vld [vmem:[%s8470_s0 + $0xc8] sm:$0xff]   ;;  %v5614_v26 = vld [vmem:[%s8470_s0 + $0xd0] sm:$0xff]   ;;  %v5615_v27 = vld [vmem:[%s8470_s0 + $0x58] sm:$0xff]  }
   0xa   :  { %4979 = vmatmul.mubr.msk.bf16.vlgmr.msra.gmra.mrb[0].mxu0 %vm169_vm0, %v5593_v5  ;;  %5011 = vmatmul.mubr.msk.bf16.vlgmr.msra.gmra.mrb[0].mxu1 %vm169_vm0, %v5594_v6  ;;  %v5616_v28 = vld [vmem:[%s8470_s0 + $0xd8] sm:$0xff]   ;;  %v5617_v29 = vld [vmem:[%s8470_s0 + $0x60] sm:$0xff]   ;;  %v5619_v31 = vld [vmem:[%s8470_s0 + $0x68] sm:$0xff]  }
   0xb   :  { %989 = vmatpush1.bf16.msra.mxu0 %v5589_v2  ;;  %1406 = vmatpush1.bf16.msra.mxu1 %v5589_v2  ;;  %v5618_v30 = vld [vmem:[%s8470_s0 + $0xe0] sm:$0xff]   ;;  %v5620_v32 = vld [vmem:[%s8470_s0 + $0xe8] sm:$0xff]   ;;  %v5621_v33 = vld [vmem:[%s8470_s0 + $0x70] sm:$0xff]  }
   0xc   :  { %260 = vmatprep.mubr.bf16.mxu0 %v6113_v1  ;;  %613 = vmatprep.mubr.bf16.mxu1 %v6113_v1  ;;  %v5622_v34 = vld [vmem:[%s8470_s0 + $0xf0] sm:$0xff]   ;;  %v5623_v35 = vld [vmem:[%s8470_s0 + $0x78] sm:$0xff]   ;;  %v5625_v37 = vld [vmem:[%s8470_s0 + $0x100] sm:$0xff]  }
   0xd   :  { %990 = vmatprep.subr.bf16.mxu0 %v5590_v3  ;;  %1407 = vmatprep.subr.bf16.mxu1 %v5590_v3  ;;  %v5624_v36 = vld [vmem:[%s8470_s0 + $0xf8] sm:$0xff]   ;;  %v5626_v38 = vld [vmem:[%s8470_s0 + $0x180] sm:$0xff]   ;;  %v5627_v39 = vld [vmem:[%s8470_s0 + $0x108] sm:$0xff]  }
   0xe   :  { %v5628_v40 = vld [vmem:[%s8470_s0 + $0x188] sm:$0xff]   ;;  %v5629_v43 = vld [vmem:[%s8470_s0 + $0x110] sm:$0xff]   ;;  %v5631_v47 = vld [vmem:[%s8470_s0 + $0x118] sm:$0xff]  }
   0xf   :  { %991 = vmatpush1.bf16.msra.mxu0 %v5592_v4  ;;  %1408 = vmatpush1.bf16.msra.mxu1 %v5592_v4  ;;  %v5657_v41 = vld [vmem:[%s8471_s3 + $0x100] ss:$8 sps:$4 sm:$0xff]   ;;  %v5659_v42 = vld [vmem:[%s8471_s3 + $0x104] ss:$8 sps:$4 sm:$0xff]   ;;  %v5630_v44 = vld [vmem:[%s8470_s0 + $0x190] sm:$0xff]  }
  0x10   :  { %2058 = vmatprep.subr.bf16.mxu0 %v5659_v42  ;;  %2324 = vmatprep.subr.bf16.mxu1 %v5659_v42  ;;  %v5660_v45 = vld [vmem:[%s8471_s3 + $0x110] ss:$8 sps:$4 sm:$0xff]   ;;  %v5662_v46 = vld [vmem:[%s8471_s3 + $0x114] ss:$8 sps:$4 sm:$0xff]   ;;  %v5663_v49 = vld [vmem:[%s8471_s3 + $0x120] ss:$8 sps:$4 sm:$0xff]  }
  0x11   :  { %v5632_v48 = vld [vmem:[%s8470_s0 + $0x198] sm:$0xff]   ;;  %v5665_v50 = vld [vmem:[%s8471_s3 + $0x124] ss:$8 sps:$4 sm:$0xff]   ;;  %v5669_v57 = vld [vmem:[%s8471_s3 + $0x140] ss:$8 sps:$4 sm:$0xff]  }
  0x12   :  { %4980 = vmatmul.mubr.msk.bf16.gmra.mrb[4].mxu0 %vm169_vm0, %v5595_v7  ;;  %5012 = vmatmul.mubr.msk.bf16.gmra.mrb[4].mxu1 %vm169_vm0, %v5596_v8  ;;  %v5633_v51 = vld [vmem:[%s8470_s0 + $0x120] sm:$0xff]   ;;  %v5666_v53 = vld [vmem:[%s8471_s3 + $0x130] ss:$8 sps:$4 sm:$0xff]   ;;  %v5668_v54 = vld [vmem:[%s8471_s3 + $0x134] ss:$8 sps:$4 sm:$0xff]  }
  0x13   :  { %270 = vmatprep.mubr.bf16.mxu0 %v6113_v1  ;;  %623 = vmatprep.mubr.bf16.mxu1 %v6113_v1  ;;  %v5634_v52 = vld [vmem:[%s8470_s0 + $0x1a0] sm:$0xff]   ;;  %v5635_v55 = vld [vmem:[%s8470_s0 + $0x128] sm:$0xff]   ;;  %v5637_v59 = vld [vmem:[%s8470_s0 + $0x130] sm:$0xff]  }
  0x14   :  { %v5636_v56 = vld [vmem:[%s8470_s0 + $0x1a8] sm:$0xff]   ;;  %v5638_v60 = vld [vmem:[%s8470_s0 + $0x1b0] sm:$0xff]   ;;  %v5639_v63 = vld [vmem:[%s8470_s0 + $0x138] sm:$0xff]  }
  0x15   :  { %v5671_v58 = vld [vmem:[%s8471_s3 + $0x144] ss:$8 sps:$4 sm:$0xff]   ;;  %v5672_v61 = vld [vmem:[%s8471_s3 + $0x150] ss:$8 sps:$4 sm:$0xff]   ;;  %v5674_v62 = vld [vmem:[%s8471_s3 + $0x154] ss:$8 sps:$4 sm:$0xff]  }
  0x16   :  { %v5640_v0 = vld [vmem:[%s8470_s0 + $0x1b8] sm:$0xff]   ;;  %v5675_v2 = vld [vmem:[%s8471_s3 + $0x160] ss:$8 sps:$4 sm:$0xff]   ;;  %v5677_v3 = vld [vmem:[%s8471_s3 + $0x164] ss:$8 sps:$4 sm:$0xff]  }
  0x17   :  { %v5641_v4 = vld [vmem:[%s8470_s0 + $0x140] sm:$0xff]   ;;  %v5678_v6 = vld [vmem:[%s8471_s3 + $0x170] ss:$8 sps:$4 sm:$0xff]   ;;  %v5680_v7 = vld [vmem:[%s8471_s3 + $0x174] ss:$8 sps:$4 sm:$0xff]  }
  0x18   :  { %v5642_v5 = vld [vmem:[%s8470_s0 + $0x1c0] sm:$0xff]   ;;  %v5643_v8 = vld [vmem:[%s8470_s0 + $0x148] sm:$0xff]  }
  0x1a   :  { %4981 = vmatmul.mubr.msk.bf16.gmra.mrb[8].mxu0 %vm169_vm0, %v5597_v9  ;;  %5013 = vmatmul.mubr.msk.bf16.gmra.mrb[8].mxu1 %vm169_vm0, %v5598_v10  ;;  %v5644_v9 = vld [vmem:[%s8470_s0 + $0x1c8] sm:$0xff]  }
  0x1b   :  { %280 = vmatprep.mubr.bf16.mxu0 %v6113_v1  ;;  %633 = vmatprep.mubr.bf16.mxu1 %v6113_v1  ;;  %v5681_v10 = vld [vmem:[%s8471_s3 + $0x180] ss:$8 sps:$4 sm:$0xff]  }
  0x22   :  { %4982 = vmatmul.mubr.msk.bf16.gmra.mrb[12].mxu0 %vm169_vm0, %v5599_v11  ;;  %5014 = vmatmul.mubr.msk.bf16.gmra.mrb[12].mxu1 %vm169_vm0, %v5600_v12  ;;  %v5683_v11 = vld [vmem:[%s8471_s3 + $0x184] ss:$8 sps:$4 sm:$0xff]   ;;  %v5645_v12 = vld [vmem:[%s8470_s0 + $0x150] sm:$0xff]  }
  0x23   :  { %290 = vmatprep.mubr.bf16.mxu0 %v6113_v1  ;;  %643 = vmatprep.mubr.bf16.mxu1 %v6113_v1 }
  0x2a   :  { %4983 = vmatmul.mubr.msk.bf16.gmra.mrb[16].mxu0 %vm169_vm0, %v5601_v13  ;;  %5015 = vmatmul.mubr.msk.bf16.gmra.mrb[16].mxu1 %vm169_vm0, %v5602_v14  ;;  %v5646_v13 = vld [vmem:[%s8470_s0 + $0x1d0] sm:$0xff]  }
  0x2b   :  { %300 = vmatprep.mubr.bf16.mxu0 %v6113_v1  ;;  %653 = vmatprep.mubr.bf16.mxu1 %v6113_v1  ;;  %v5686_v14 = vld [vmem:[%s8471_s3 + $0x194] ss:$8 sps:$4 sm:$0xff]  }
  0x32   :  { %4984 = vmatmul.mubr.msk.bf16.gmra.mrb[20].mxu0 %vm169_vm0, %v5603_v15  ;;  %5016 = vmatmul.mubr.msk.bf16.gmra.mrb[20].mxu1 %vm169_vm0, %v5604_v16  ;;  %v5684_v15 = vld [vmem:[%s8471_s3 + $0x190] ss:$8 sps:$4 sm:$0xff]   ;;  %v5687_v16 = vld [vmem:[%s8471_s3 + $0x1a0] ss:$8 sps:$4 sm:$0xff]  }
  0x33   :  { %310 = vmatprep.mubr.bf16.mxu0 %v6113_v1  ;;  %663 = vmatprep.mubr.bf16.mxu1 %v6113_v1 }
  0x3a   :  { %4985 = vmatmul.mubr.msk.bf16.gmra.mrb[24].mxu0 %vm169_vm0, %v5605_v17  ;;  %5017 = vmatmul.mubr.msk.bf16.gmra.mrb[24].mxu1 %vm169_vm0, %v5606_v18  ;;  %v5689_v17 = vld [vmem:[%s8471_s3 + $0x1a4] ss:$8 sps:$4 sm:$0xff]   ;;  %v5647_v18 = vld [vmem:[%s8470_s0 + $0x158] sm:$0xff]  }
  0x3b   :  { %320 = vmatprep.mubr.bf16.mxu0 %v6113_v1  ;;  %673 = vmatprep.mubr.bf16.mxu1 %v6113_v1 }
  0x42   :  { %4986 = vmatmul.mubr.msk.bf16.gmra.mrb[28].mxu0 %vm169_vm0, %v5607_v19  ;;  %5018 = vmatmul.mubr.msk.bf16.gmra.mrb[28].mxu1 %vm169_vm0, %v5608_v20 }
  0x43   :  { %330 = vmatprep.mubr.bf16.mxu0 %v6113_v1  ;;  %683 = vmatprep.mubr.bf16.mxu1 %v6113_v1 }
  0x4a   :  { %4987 = vmatmul.mubr.msk.bf16.gmra.mrb[32].mxu0 %vm169_vm0, %v5609_v21  ;;  %5019 = vmatmul.mubr.msk.bf16.gmra.mrb[32].mxu1 %vm169_vm0, %v5610_v22  ;;  %v5692_v21 = vld [vmem:[%s8471_s3 + $0x1b4] ss:$8 sps:$4 sm:$0xff]  }
  0x4b   :  { %340 = vmatprep.mubr.bf16.mxu0 %v6113_v1  ;;  %693 = vmatprep.mubr.bf16.mxu1 %v6113_v1 }
  0x52   :  { %4988 = vmatmul.mubr.msk.bf16.gmra.mrb[36].mxu0 %vm169_vm0, %v5611_v23  ;;  %5020 = vmatmul.mubr.msk.bf16.gmra.mrb[36].mxu1 %vm169_vm0, %v5612_v24 }
  0x53   :  { %350 = vmatprep.mubr.bf16.mxu0 %v6113_v1  ;;  %703 = vmatprep.mubr.bf16.mxu1 %v6113_v1 }
  0x5a   :  { %4989 = vmatmul.mubr.msk.bf16.gmra.mrb[40].mxu0 %vm169_vm0, %v5613_v25  ;;  %5021 = vmatmul.mubr.msk.bf16.gmra.mrb[40].mxu1 %vm169_vm0, %v5614_v26  ;;  %v5648_v25 = vld [vmem:[%s8470_s0 + $0x1d8] sm:$0xff]  }
  0x5b   :  { %360 = vmatprep.mubr.bf16.mxu0 %v6113_v1  ;;  %713 = vmatprep.mubr.bf16.mxu1 %v6113_v1  ;;  %v5690_v26 = vld [vmem:[%s8471_s3 + $0x1b0] ss:$8 sps:$4 sm:$0xff]  }
  0x62   :  { %4990 = vmatmul.mubr.msk.bf16.gmra.mrb[44].mxu0 %vm169_vm0, %v5615_v27  ;;  %5022 = vmatmul.mubr.msk.bf16.gmra.mrb[44].mxu1 %vm169_vm0, %v5616_v28 }
  0x63   :  { %370 = vmatprep.mubr.bf16.mxu0 %v6113_v1  ;;  %723 = vmatprep.mubr.bf16.mxu1 %v6113_v1 }
  0x6a   :  { %4991 = vmatmul.mubr.msk.bf16.gmra.mrb[48].mxu0 %vm169_vm0, %v5617_v29  ;;  %5023 = vmatmul.mubr.msk.bf16.gmra.mrb[48].mxu1 %vm169_vm0, %v5618_v30 }
  0x6b   :  { %380 = vmatprep.mubr.bf16.mxu0 %v6113_v1  ;;  %733 = vmatprep.mubr.bf16.mxu1 %v6113_v1 }
  0x72   :  { %4992 = vmatmul.mubr.msk.bf16.gmra.mrb[52].mxu0 %vm169_vm0, %v5619_v31  ;;  %5024 = vmatmul.mubr.msk.bf16.gmra.mrb[52].mxu1 %vm169_vm0, %v5620_v32 }
  0x73   :  { %390 = vmatprep.mubr.bf16.mxu0 %v6113_v1  ;;  %743 = vmatprep.mubr.bf16.mxu1 %v6113_v1 }
  0x7a   :  { %4993 = vmatmul.mubr.msk.bf16.gmra.mrb[56].mxu0 %vm169_vm0, %v5621_v33  ;;  %5025 = vmatmul.mubr.msk.bf16.gmra.mrb[56].mxu1 %vm169_vm0, %v5622_v34  ;;  %v5695_v34 = vld [vmem:[%s8471_s3 + $0x1c4] ss:$8 sps:$4 sm:$0xff]  }
  0x7b   :  { %400 = vmatprep.mubr.bf16.mxu0 %v6113_v1  ;;  %753 = vmatprep.mubr.bf16.mxu1 %v6113_v1 }
  0x82   :  { %4994 = vmatmul.mubr.msk.bf16.gmra.mrb[60].mxu0 %vm169_vm0, %v5623_v35  ;;  %5026 = vmatmul.mubr.msk.bf16.gmra.mrb[60].mxu1 %vm169_vm0, %v5624_v36  ;;  %v5693_v35 = vld [vmem:[%s8471_s3 + $0x1c0] ss:$8 sps:$4 sm:$0xff]  }
  0x83   :  { %1020 = vmatprep.mubr.bf16.mxu0 %v6113_v1  ;;  %1437 = vmatprep.mubr.bf16.mxu1 %v6113_v1  ;;  %v5649_v36 = vld [vmem:[%s8470_s0 + $0x160] sm:$0xff]  }
  0x8a   :  { %5043 = vmatmul.mubr.msk.bf16.vlgmr.msra.gmra.mrb[64].mxu0 %vm169_vm0, %v5625_v37  ;;  %5075 = vmatmul.mubr.msk.bf16.vlgmr.msra.gmra.mrb[64].mxu1 %vm169_vm0, %v5626_v38  ;;  %v5650_v37 = vld [vmem:[%s8470_s0 + $0x1e0] sm:$0xff]  }
  0x8b   :  { %1030 = vmatprep.mubr.bf16.mxu0 %v6113_v1  ;;  %1447 = vmatprep.mubr.bf16.mxu1 %v6113_v1 }
  0x8c   :  { %2059 = vmatpush1.bf16.msra.mxu0 %v5657_v41  ;;  %2325 = vmatpush1.bf16.msra.mxu1 %v5657_v41 }
  0x8d   :  { %2060 = vmatprep.subr.bf16.mxu0 %v5662_v46  ;;  %2326 = vmatprep.subr.bf16.mxu1 %v5662_v46 }
  0x90   :  { %2061 = vmatpush1.bf16.msra.mxu0 %v5660_v45  ;;  %2327 = vmatpush1.bf16.msra.mxu1 %v5660_v45 }
  0x91   :  { %2062 = vmatprep.subr.bf16.mxu0 %v5665_v50  ;;  %2328 = vmatprep.subr.bf16.mxu1 %v5665_v50 }
  0x92   :  { %5044 = vmatmul.mubr.msk.bf16.gmra.mrb[68].mxu0 %vm169_vm0, %v5627_v39  ;;  %5076 = vmatmul.mubr.msk.bf16.gmra.mrb[68].mxu1 %vm169_vm0, %v5628_v40  ;;  %v5698_v40 = vld [vmem:[%s8471_s3 + $0x1d4] ss:$8 sps:$4 sm:$0xff]  }
  0x93   :  { %1040 = vmatprep.mubr.bf16.mxu0 %v6113_v1  ;;  %1457 = vmatprep.mubr.bf16.mxu1 %v6113_v1 }
  0x94   :  { %2063 = vmatpush1.bf16.msra.mxu0 %v5663_v49  ;;  %2329 = vmatpush1.bf16.msra.mxu1 %v5663_v49 }
  0x95   :  { %2064 = vmatprep.subr.bf16.mxu0 %v5668_v54  ;;  %2330 = vmatprep.subr.bf16.mxu1 %v5668_v54  ;;  %v5651_v54 = vld [vmem:[%s8470_s0 + $0x168] sm:$0xff]  }
  0x98   :  { %2065 = vmatpush1.bf16.msra.mxu0 %v5666_v53  ;;  %2331 = vmatpush1.bf16.msra.mxu1 %v5666_v53  ;;  %v5699_v53 = vld [vmem:[%s8471_s3 + $0x1e0] ss:$8 sps:$4 sm:$0xff]  }
  0x99   :  { %2066 = vmatprep.subr.bf16.mxu0 %v5671_v58  ;;  %2332 = vmatprep.subr.bf16.mxu1 %v5671_v58  ;;  %v5704_v58 = vld [vmem:[%s8471_s3 + $0x1f4] ss:$8 sps:$4 sm:$0xff]  }
  0x9a   :  { %5045 = vmatmul.mubr.msk.bf16.gmra.mrb[72].mxu0 %vm169_vm0, %v5629_v43  ;;  %5077 = vmatmul.mubr.msk.bf16.gmra.mrb[72].mxu1 %vm169_vm0, %v5630_v44  ;;  %v5696_v44 = vld [vmem:[%s8471_s3 + $0x1d0] ss:$8 sps:$4 sm:$0xff]  }
  0x9b   :  { %1050 = vmatprep.mubr.bf16.mxu0 %v6113_v1  ;;  %1467 = vmatprep.mubr.bf16.mxu1 %v6113_v1 }
  0x9c   :  { %2067 = vmatpush1.bf16.msra.mxu0 %v5669_v57  ;;  %2333 = vmatpush1.bf16.msra.mxu1 %v5669_v57 }
  0x9d   :  { %2068 = vmatprep.subr.bf16.mxu0 %v5674_v62  ;;  %2334 = vmatprep.subr.bf16.mxu1 %v5674_v62  ;;  %v5702_v62 = vld [vmem:[%s8471_s3 + $0x1f0] ss:$8 sps:$4 sm:$0xff]  }
  0xa0   :  { %2069 = vmatpush1.bf16.msra.mxu0 %v5672_v61  ;;  %2335 = vmatpush1.bf16.msra.mxu1 %v5672_v61 }
  0xa1   :  { %2070 = vmatprep.subr.bf16.mxu0 %v5677_v3  ;;  %2336 = vmatprep.subr.bf16.mxu1 %v5677_v3 }
  0xa2   :  { %5046 = vmatmul.mubr.msk.bf16.gmra.mrb[76].mxu0 %vm169_vm0, %v5631_v47  ;;  %5078 = vmatmul.mubr.msk.bf16.gmra.mrb[76].mxu1 %vm169_vm0, %v5632_v48 }
  0xa3   :  { %1060 = vmatprep.mubr.bf16.mxu0 %v6113_v1  ;;  %1477 = vmatprep.mubr.bf16.mxu1 %v6113_v1 }
  0xa4   :  { %2071 = vmatpush1.bf16.msra.mxu0 %v5675_v2  ;;  %2337 = vmatpush1.bf16.msra.mxu1 %v5675_v2 }
  0xa5   :  { %2072 = vmatprep.subr.bf16.mxu0 %v5680_v7  ;;  %2338 = vmatprep.subr.bf16.mxu1 %v5680_v7  ;;  %v5707_v7 = vld [vmem:[%s8471_s3 + $0x4] ss:$8 sps:$4 sm:$0xff]  }
  0xa8   :  { %2073 = vmatpush1.bf16.msra.mxu0 %v5678_v6  ;;  %2339 = vmatpush1.bf16.msra.mxu1 %v5678_v6 }
  0xa9   :  { %2074 = vmatprep.subr.bf16.mxu0 %v5683_v11  ;;  %2340 = vmatprep.subr.bf16.mxu1 %v5683_v11 }
  0xaa   :  { %5047 = vmatmul.mubr.msk.bf16.gmra.mrb[80].mxu0 %vm169_vm0, %v5633_v51  ;;  %5079 = vmatmul.mubr.msk.bf16.gmra.mrb[80].mxu1 %vm169_vm0, %v5634_v52  ;;  %v5701_v52 = vld [vmem:[%s8471_s3 + $0x1e4] ss:$8 sps:$4 sm:$0xff]  }
  0xab   :  { %1070 = vmatprep.mubr.bf16.mxu0 %v6113_v1  ;;  %1487 = vmatprep.mubr.bf16.mxu1 %v6113_v1 }
  0xac   :  { %2075 = vmatpush1.bf16.msra.mxu0 %v5681_v10  ;;  %2341 = vmatpush1.bf16.msra.mxu1 %v5681_v10 }
  0xad   :  { %2076 = vmatprep.subr.bf16.mxu0 %v5686_v14  ;;  %2342 = vmatprep.subr.bf16.mxu1 %v5686_v14  ;;  %v5654_v14 = vld [vmem:[%s8470_s0 + $0x1f0] sm:$0xff]  }
  0xb0   :  { %2077 = vmatpush1.bf16.msra.mxu0 %v5684_v15  ;;  %2343 = vmatpush1.bf16.msra.mxu1 %v5684_v15 }
  0xb1   :  { %2078 = vmatprep.subr.bf16.mxu0 %v5689_v17  ;;  %2344 = vmatprep.subr.bf16.mxu1 %v5689_v17 }
  0xb2   :  { %5048 = vmatmul.mubr.msk.bf16.gmra.mrb[84].mxu0 %vm169_vm0, %v5635_v55  ;;  %5080 = vmatmul.mubr.msk.bf16.gmra.mrb[84].mxu1 %vm169_vm0, %v5636_v56  ;;  %v5652_v55 = vld [vmem:[%s8470_s0 + $0x1e8] sm:$0xff]  }
  0xb3   :  { %1080 = vmatprep.mubr.bf16.mxu0 %v6113_v1  ;;  %1497 = vmatprep.mubr.bf16.mxu1 %v6113_v1 }
  0xb4   :  { %2079 = vmatpush1.bf16.msra.mxu0 %v5687_v16  ;;  %2345 = vmatpush1.bf16.msra.mxu1 %v5687_v16 }
  0xb5   :  { %2080 = vmatprep.subr.bf16.mxu0 %v5692_v21  ;;  %2346 = vmatprep.subr.bf16.mxu1 %v5692_v21 }
  0xb8   :  { %2081 = vmatpush1.bf16.msra.mxu0 %v5690_v26  ;;  %2347 = vmatpush1.bf16.msra.mxu1 %v5690_v26 }
  0xb9   :  { %2082 = vmatprep.subr.bf16.mxu0 %v5695_v34  ;;  %2348 = vmatprep.subr.bf16.mxu1 %v5695_v34  ;;  %v5655_v34 = vld [vmem:[%s8470_s0 + $0x178] sm:$0xff]  }
  0xba   :  { %5049 = vmatmul.mubr.msk.bf16.gmra.mrb[88].mxu0 %vm169_vm0, %v5637_v59  ;;  %5081 = vmatmul.mubr.msk.bf16.gmra.mrb[88].mxu1 %vm169_vm0, %v5638_v60 }
  0xbb   :  { %1090 = vmatprep.mubr.bf16.mxu0 %v6113_v1  ;;  %1507 = vmatprep.mubr.bf16.mxu1 %v6113_v1 }
  0xbc   :  { %2083 = vmatpush1.bf16.msra.mxu0 %v5693_v35  ;;  %2349 = vmatpush1.bf16.msra.mxu1 %v5693_v35 }
  0xbd   :  { %2084 = vmatprep.subr.bf16.mxu0 %v5698_v40  ;;  %2350 = vmatprep.subr.bf16.mxu1 %v5698_v40 }
  0xc0   :  { %2085 = vmatpush1.bf16.msra.mxu0 %v5696_v44  ;;  %2351 = vmatpush1.bf16.msra.mxu1 %v5696_v44 }
  0xc1   :  { %2086 = vmatprep.subr.bf16.mxu0 %v5701_v52  ;;  %2352 = vmatprep.subr.bf16.mxu1 %v5701_v52  ;;  %v5656_v52 = vld [vmem:[%s8470_s0 + $0x1f8] sm:$0xff]  }
  0xc2   :  { %5050 = vmatmul.mubr.msk.bf16.gmra.mrb[92].mxu0 %vm169_vm0, %v5639_v63  ;;  %5082 = vmatmul.mubr.msk.bf16.gmra.mrb[92].mxu1 %vm169_vm0, %v5640_v0 }
  0xc3   :  { %1100 = vmatprep.mubr.bf16.mxu0 %v6113_v1  ;;  %1517 = vmatprep.mubr.bf16.mxu1 %v6113_v1 }
  0xc4   :  { %2087 = vmatpush1.bf16.msra.mxu0 %v5699_v53  ;;  %2353 = vmatpush1.bf16.msra.mxu1 %v5699_v53 }
  0xc5   :  { %2088 = vmatprep.subr.bf16.mxu0 %v5704_v58  ;;  %2354 = vmatprep.subr.bf16.mxu1 %v5704_v58 }
  0xc8   :  { %2089 = vmatpush1.bf16.msra.mxu0 %v5702_v62  ;;  %2355 = vmatpush1.bf16.msra.mxu1 %v5702_v62 }
  0xc9   :  { %2271 = vmatprep.subr.bf16.mxu0 %v5707_v7  ;;  %2377 = vmatprep.subr.bf16.mxu1 %v5707_v7 }
  0xca   :  { %5051 = vmatmul.mubr.msk.bf16.gmra.mrb[96].mxu0 %vm169_vm0, %v5641_v4  ;;  %5083 = vmatmul.mubr.msk.bf16.gmra.mrb[96].mxu1 %vm169_vm0, %v5642_v5 }
  0xcb   :  { %1110 = vmatprep.mubr.bf16.mxu0 %v6113_v1  ;;  %1527 = vmatprep.mubr.bf16.mxu1 %v6113_v1 }
  0xd2   :  { %5052 = vmatmul.mubr.msk.bf16.gmra.mrb[100].mxu0 %vm169_vm0, %v5643_v8  ;;  %5084 = vmatmul.mubr.msk.bf16.gmra.mrb[100].mxu1 %vm169_vm0, %v5644_v9  ;;  %v5653_v8 = vld [vmem:[%s8470_s0 + $0x170] sm:$0xff]  }
  0xd3   :  { %1120 = vmatprep.mubr.bf16.mxu0 %v6113_v1  ;;  %1537 = vmatprep.mubr.bf16.mxu1 %v6113_v1 }
  0xda   :  { %5053 = vmatmul.mubr.msk.bf16.gmra.mrb[104].mxu0 %vm169_vm0, %v5645_v12  ;;  %5085 = vmatmul.mubr.msk.bf16.gmra.mrb[104].mxu1 %vm169_vm0, %v5646_v13 }
  0xdb   :  { %1130 = vmatprep.mubr.bf16.mxu0 %v6113_v1  ;;  %1547 = vmatprep.mubr.bf16.mxu1 %v6113_v1 }
  0xdd   :  { %v6519_v19 = vpop.f32.mrb[0].mxu0  ;;  %v6521_v20 = vpop.f32.mrb[0].mxu1 }
  0xde   :  { %v6528_v23 = vpop.f32.mrb[1].mxu0  ;;  %v6530_v24 = vpop.f32.mrb[1].mxu1 }
  0xdf   :  { %v6540_v28 = vpop.f32.mrb[2].mxu0  ;;  %v6542_v29 = vpop.f32.mrb[2].mxu1 }
  0xe0   :  { %v6546_v31 = vpop.f32.mrb[3].mxu0  ;;  %v6548_v32 = vpop.f32.mrb[3].mxu1 }
  0xe2   :  { %5054 = vmatmul.mubr.msk.bf16.gmra.mrb[108].mxu0 %vm169_vm0, %v5647_v18  ;;  %5086 = vmatmul.mubr.msk.bf16.gmra.mrb[108].mxu1 %vm169_vm0, %v5648_v25 }
  0xe3   :  { %1140 = vmatprep.mubr.bf16.mxu0 %v6113_v1  ;;  %1557 = vmatprep.mubr.bf16.mxu1 %v6113_v1 }
  0xe5   :  { %v6568_v38 = vpop.f32.mrb[4].mxu0  ;;  %v6570_v39 = vpop.f32.mrb[4].mxu1 }
  0xe6   :  { %v6577_v42 = vpop.f32.mrb[5].mxu0  ;;  %v6579_v43 = vpop.f32.mrb[5].mxu1 }
  0xe7   :  { %v6586_v46 = vpop.f32.mrb[6].mxu0  ;;  %v6588_v47 = vpop.f32.mrb[6].mxu1 }
  0xe8   :  { %v6592_v49 = vpop.f32.mrb[7].mxu0  ;;  %v6594_v50 = vpop.f32.mrb[7].mxu1 }
  0xea   :  { %5055 = vmatmul.mubr.msk.bf16.gmra.mrb[112].mxu0 %vm169_vm0, %v5649_v36  ;;  %5087 = vmatmul.mubr.msk.bf16.gmra.mrb[112].mxu1 %vm169_vm0, %v5650_v37 }
  0xeb   :  { %1150 = vmatprep.mubr.bf16.mxu0 %v6113_v1  ;;  %1567 = vmatprep.mubr.bf16.mxu1 %v6113_v1 }
  0xed   :  { %v6614_v56 = vpop.f32.mrb[8].mxu0  ;;  %v6616_v57 = vpop.f32.mrb[8].mxu1 }
  0xee   :  { %v6623_v60 = vpop.f32.mrb[9].mxu0  ;;  %v6625_v61 = vpop.f32.mrb[9].mxu1 }
  0xef   :  { %v6632_v0 = vpop.f32.mrb[10].mxu0  ;;  %v6634_v2 = vpop.f32.mrb[10].mxu1 }
  0xf0   :  { %v6638_v4 = vpop.f32.mrb[11].mxu0  ;;  %v6640_v5 = vpop.f32.mrb[11].mxu1 }
  0xf2   :  { %5056 = vmatmul.mubr.msk.bf16.gmra.mrb[116].mxu0 %vm169_vm0, %v5651_v54  ;;  %5088 = vmatmul.mubr.msk.bf16.gmra.mrb[116].mxu1 %vm169_vm0, %v5652_v55 }
  0xf3   :  { %1160 = vmatprep.mubr.bf16.mxu0 %v6113_v1  ;;  %1577 = vmatprep.mubr.bf16.mxu1 %v6113_v1 }
  0xf5   :  { %v6654_v9 = vpop.f32.mrb[12].mxu0  ;;  %v6656_v10 = vpop.f32.mrb[12].mxu1 }
  0xf6   :  { %v6660_v12 = vpop.f32.mrb[13].mxu0  ;;  %v6662_v13 = vpop.f32.mrb[13].mxu1 }
  0xf7   :  { %v6669_v16 = vpop.f32.mrb[14].mxu0  ;;  %v6671_v17 = vpop.f32.mrb[14].mxu1 }
  0xf8   :  { %v6675_v21 = vpop.f32.mrb[15].mxu0  ;;  %v6677_v25 = vpop.f32.mrb[15].mxu1 }
  0xfa   :  { %5057 = vmatmul.mubr.msk.bf16.gmra.mrb[120].mxu0 %vm169_vm0, %v5653_v8  ;;  %5089 = vmatmul.mubr.msk.bf16.gmra.mrb[120].mxu1 %vm169_vm0, %v5654_v14 }
  0xfb   :  { %1170 = vmatprep.mubr.bf16.mxu0 %v6113_v1  ;;  %1587 = vmatprep.mubr.bf16.mxu1 %v6113_v1 }
  0xfd   :  { %v6688_v35 = vpop.f32.mrb[16].mxu0  ;;  %v6690_v36 = vpop.f32.mrb[16].mxu1 }
  0xfe   :  { %v6694_v40 = vpop.f32.mrb[17].mxu0  ;;  %v6696_v44 = vpop.f32.mrb[17].mxu1 }
  0xff   :  { %v6703_v53 = vpop.f32.mrb[18].mxu0  ;;  %v6705_v54 = vpop.f32.mrb[18].mxu1 }
 0x100   :  { %v6709_v58 = vpop.f32.mrb[19].mxu0  ;;  %v6711_v62 = vpop.f32.mrb[19].mxu1 }
 0x102   :  { %5058 = vmatmul.mubr.msk.bf16.gmra.mrb[124].mxu0 %vm169_vm0, %v5655_v34  ;;  %5090 = vmatmul.mubr.msk.bf16.gmra.mrb[124].mxu1 %vm169_vm0, %v5656_v52 }
 0x105   :  { %v6717_v8 = vpop.f32.mrb[20].mxu0  ;;  %v6719_v14 = vpop.f32.mrb[20].mxu1 }
 0x106   :  { %v6723_v37 = vpop.f32.mrb[21].mxu0  ;;  %v6725_v55 = vpop.f32.mrb[21].mxu1 }
 0x107   :  { %v6729_v18 = vpop.f32.mrb[22].mxu0  ;;  %v6731_v7 = vpop.f32.mrb[22].mxu1 }
 0x108   :  { %8569 = vst [vmem:[#allocation2_spill] sm:$0xff] %v6731_v7  ;;  %v6735_v52 = vpop.f32.mrb[23].mxu0  ;;  %v6737_v15 = vpop.f32.mrb[23].mxu1 }
 0x109   :  { %8570 = vst [vmem:[#allocation3_spill] sm:$0xff] %v6735_v52  ;;  %8571 = vst [vmem:[#allocation4_spill] sm:$0xff] %v6737_v15  ;;  %v8656_v52 = vmax.f32 %v6546_v31, %v6548_v32 }
 0x10d   :  { %v6741_v11 = vpop.f32.mrb[24].mxu0  ;;  %v6743_v6 = vpop.f32.mrb[24].mxu1 }
 0x10e   :  { %8572 = vst [vmem:[#allocation5_spill] sm:$0xff] %v6741_v11  ;;  %8573 = vst [vmem:[#allocation6_spill] sm:$0xff] %v6743_v6  ;;  %v6747_v3 = vpop.f32.mrb[25].mxu0  ;;  %v6749_v63 = vpop.f32.mrb[25].mxu1 }
 0x10f   :  { %8574 = vst [vmem:[#allocation7_spill] sm:$0xff] %v6747_v3  ;;  %8575 = vst [vmem:[#allocation8_spill] sm:$0xff] %v6749_v63  ;;  %v6753_v59 = vpop.f32.mrb[26].mxu0  ;;  %v6755_v51 = vpop.f32.mrb[26].mxu1 }
 0x110   :  { %8576 = vst [vmem:[#allocation9_spill] sm:$0xff] %v6753_v59  ;;  %8577 = vst [vmem:[#allocation10_spill] sm:$0xff] %v6755_v51  ;;  %v6759_v48 = vpop.f32.mrb[27].mxu0  ;;  %v6761_v45 = vpop.f32.mrb[27].mxu1 }
 0x111   :  { %8578 = vst [vmem:[#allocation11_spill] sm:$0xff] %v6759_v48  ;;  %8579 = vst [vmem:[#allocation12_spill] sm:$0xff] %v6761_v45 }
 0x115   :  { %v6765_v41 = vpop.f32.mrb[28].mxu0  ;;  %v6767_v33 = vpop.f32.mrb[28].mxu1 }
 0x116   :  { %8580 = vst [vmem:[#allocation13_spill] sm:$0xff] %v6765_v41  ;;  %8581 = vst [vmem:[#allocation14_spill] sm:$0xff] %v6767_v33  ;;  %v6771_v30 = vpop.f32.mrb[29].mxu0  ;;  %v6773_v27 = vpop.f32.mrb[29].mxu1 }
 0x117   :  { %8582 = vst [vmem:[#allocation15_spill] sm:$0xff] %v6771_v30  ;;  %8583 = vst [vmem:[#allocation16_spill] sm:$0xff] %v6773_v27  ;;  %v6777_v22 = vpop.f32.mrb[30].mxu0  ;;  %v6779_v51 = vpop.f32.mrb[30].mxu1 }
 0x118   :  { %8584 = vst [vmem:[#allocation17_spill] sm:$0xff] %v6777_v22  ;;  %8585 = vst [vmem:[#allocation18_spill] sm:$0xff] %v6779_v51  ;;  %v6783_v45 = vpop.f32.mrb[31].mxu0  ;;  %v6785_v48 = vpop.f32.mrb[31].mxu1 }
 0x119   :  { %8586 = vst [vmem:[#allocation19_spill] sm:$0xff] %v6783_v45  ;;  %8587 = vst [vmem:[#allocation20_spill] sm:$0xff] %v6785_v48 }
 0x11d   :  { %v6789_v33 = vpop.f32.mrb[32].mxu0  ;;  %v6791_v41 = vpop.f32.mrb[32].mxu1 }
 0x11e   :  { %8588 = vst [vmem:[#allocation21_spill] sm:$0xff] %v6789_v33  ;;  %8589 = vst [vmem:[#allocation22_spill] sm:$0xff] %v6791_v41  ;;  %v6795_v27 = vpop.f32.mrb[33].mxu0  ;;  %v6797_v30 = vpop.f32.mrb[33].mxu1 }
 0x11f   :  { %8590 = vst [vmem:[#allocation23_spill] sm:$0xff] %v6795_v27  ;;  %8591 = vst [vmem:[#allocation24_spill] sm:$0xff] %v6797_v30  ;;  %v6801_v51 = vpop.f32.mrb[34].mxu0  ;;  %v6803_v22 = vpop.f32.mrb[34].mxu1 }
 0x120   :  { %8592 = vst [vmem:[#allocation25_spill] sm:$0xff] %v6801_v51  ;;  %8593 = vst [vmem:[#allocation26_spill] sm:$0xff] %v6803_v22  ;;  %v6807_v48 = vpop.f32.mrb[35].mxu0  ;;  %v6809_v45 = vpop.f32.mrb[35].mxu1 }
 0x121   :  { %8594 = vst [vmem:[#allocation27_spill] sm:$0xff] %v6807_v48  ;;  %8595 = vst [vmem:[#allocation28_spill] sm:$0xff] %v6809_v45 }
 0x125   :  { %v6813_v41 = vpop.f32.mrb[36].mxu0  ;;  %v6815_v33 = vpop.f32.mrb[36].mxu1 }
 0x126   :  { %8596 = vst [vmem:[#allocation29_spill] sm:$0xff] %v6813_v41  ;;  %8597 = vst [vmem:[#allocation30_spill] sm:$0xff] %v6815_v33  ;;  %v6819_v30 = vpop.f32.mrb[37].mxu0  ;;  %v6821_v27 = vpop.f32.mrb[37].mxu1 }
 0x127   :  { %8598 = vst [vmem:[#allocation31_spill] sm:$0xff] %v6819_v30  ;;  %8599 = vst [vmem:[#allocation32_spill] sm:$0xff] %v6821_v27  ;;  %v6825_v22 = vpop.f32.mrb[38].mxu0  ;;  %v6827_v51 = vpop.f32.mrb[38].mxu1 }
 0x128   :  { %8600 = vst [vmem:[#allocation33_spill] sm:$0xff] %v6825_v22  ;;  %8601 = vst [vmem:[#allocation34_spill] sm:$0xff] %v6827_v51  ;;  %v6831_v45 = vpop.f32.mrb[39].mxu0  ;;  %v6833_v48 = vpop.f32.mrb[39].mxu1 }
 0x129   :  { %8602 = vst [vmem:[#allocation35_spill] sm:$0xff] %v6831_v45  ;;  %8603 = vst [vmem:[#allocation36_spill] sm:$0xff] %v6833_v48 }
 0x12d   :  { %v6837_v33 = vpop.f32.mrb[40].mxu0  ;;  %v6839_v41 = vpop.f32.mrb[40].mxu1 }
 0x12e   :  { %8604 = vst [vmem:[#allocation37_spill] sm:$0xff] %v6837_v33  ;;  %8605 = vst [vmem:[#allocation38_spill] sm:$0xff] %v6839_v41  ;;  %v6843_v27 = vpop.f32.mrb[41].mxu0  ;;  %v6845_v30 = vpop.f32.mrb[41].mxu1 }
 0x12f   :  { %8606 = vst [vmem:[#allocation39_spill] sm:$0xff] %v6843_v27  ;;  %8607 = vst [vmem:[#allocation40_spill] sm:$0xff] %v6845_v30  ;;  %v6849_v51 = vpop.f32.mrb[42].mxu0  ;;  %v6851_v22 = vpop.f32.mrb[42].mxu1 }
 0x130   :  { %8608 = vst [vmem:[#allocation41_spill] sm:$0xff] %v6849_v51  ;;  %8609 = vst [vmem:[#allocation42_spill] sm:$0xff] %v6851_v22  ;;  %v6855_v48 = vpop.f32.mrb[43].mxu0  ;;  %v6857_v45 = vpop.f32.mrb[43].mxu1 }
 0x131   :  { %8610 = vst [vmem:[#allocation43_spill] sm:$0xff] %v6855_v48  ;;  %8611 = vst [vmem:[#allocation44_spill] sm:$0xff] %v6857_v45 }
 0x135   :  { %v6861_v41 = vpop.f32.mrb[44].mxu0  ;;  %v6863_v33 = vpop.f32.mrb[44].mxu1 }
 0x136   :  { %8612 = vst [vmem:[#allocation45_spill] sm:$0xff] %v6861_v41  ;;  %8613 = vst [vmem:[#allocation46_spill] sm:$0xff] %v6863_v33  ;;  %v6867_v30 = vpop.f32.mrb[45].mxu0  ;;  %v6869_v27 = vpop.f32.mrb[45].mxu1 }
 0x137   :  { %8614 = vst [vmem:[#allocation47_spill] sm:$0xff] %v6867_v30  ;;  %8615 = vst [vmem:[#allocation48_spill] sm:$0xff] %v6869_v27  ;;  %v6873_v22 = vpop.f32.mrb[46].mxu0  ;;  %v6875_v51 = vpop.f32.mrb[46].mxu1 }
 0x138   :  { %8616 = vst [vmem:[#allocation49_spill] sm:$0xff] %v6873_v22  ;;  %8617 = vst [vmem:[#allocation50_spill] sm:$0xff] %v6875_v51  ;;  %v6879_v45 = vpop.f32.mrb[47].mxu0  ;;  %v6881_v48 = vpop.f32.mrb[47].mxu1 }
 0x139   :  { %8618 = vst [vmem:[#allocation51_spill] sm:$0xff] %v6879_v45  ;;  %8619 = vst [vmem:[#allocation52_spill] sm:$0xff] %v6881_v48 }
 0x13d   :  { %v6885_v33 = vpop.f32.mrb[48].mxu0  ;;  %v6887_v41 = vpop.f32.mrb[48].mxu1 }
 0x13e   :  { %8620 = vst [vmem:[#allocation53_spill] sm:$0xff] %v6885_v33  ;;  %8621 = vst [vmem:[#allocation54_spill] sm:$0xff] %v6887_v41  ;;  %v6891_v27 = vpop.f32.mrb[49].mxu0  ;;  %v6893_v30 = vpop.f32.mrb[49].mxu1 }
 0x13f   :  { %8622 = vst [vmem:[#allocation55_spill] sm:$0xff] %v6891_v27  ;;  %8623 = vst [vmem:[#allocation56_spill] sm:$0xff] %v6893_v30  ;;  %v6897_v51 = vpop.f32.mrb[50].mxu0  ;;  %v6899_v22 = vpop.f32.mrb[50].mxu1 }
 0x140   :  { %8624 = vst [vmem:[#allocation57_spill] sm:$0xff] %v6897_v51  ;;  %8625 = vst [vmem:[#allocation58_spill] sm:$0xff] %v6899_v22  ;;  %v6903_v48 = vpop.f32.mrb[51].mxu0  ;;  %v6905_v45 = vpop.f32.mrb[51].mxu1 }
 0x141   :  { %8626 = vst [vmem:[#allocation59_spill] sm:$0xff] %v6903_v48  ;;  %8627 = vst [vmem:[#allocation60_spill] sm:$0xff] %v6905_v45 }
 0x145   :  { %v6909_v41 = vpop.f32.mrb[52].mxu0  ;;  %v6911_v33 = vpop.f32.mrb[52].mxu1 }
 0x146   :  { %8628 = vst [vmem:[#allocation61_spill] sm:$0xff] %v6909_v41  ;;  %8629 = vst [vmem:[#allocation62_spill] sm:$0xff] %v6911_v33  ;;  %v6915_v30 = vpop.f32.mrb[53].mxu0  ;;  %v6917_v27 = vpop.f32.mrb[53].mxu1 }
 0x147   :  { %8630 = vst [vmem:[#allocation63_spill] sm:$0xff] %v6915_v30  ;;  %8631 = vst [vmem:[#allocation64_spill] sm:$0xff] %v6917_v27  ;;  %v6921_v22 = vpop.f32.mrb[54].mxu0  ;;  %v6923_v51 = vpop.f32.mrb[54].mxu1 }
 0x148   :  { %8632 = vst [vmem:[#allocation65_spill] sm:$0xff] %v6921_v22  ;;  %8633 = vst [vmem:[#allocation66_spill] sm:$0xff] %v6923_v51  ;;  %v6927_v45 = vpop.f32.mrb[55].mxu0  ;;  %v6929_v48 = vpop.f32.mrb[55].mxu1 }
 0x149   :  { %8634 = vst [vmem:[#allocation67_spill] sm:$0xff] %v6927_v45  ;;  %8635 = vst [vmem:[#allocation68_spill] sm:$0xff] %v6929_v48 }
 0x14d   :  { %v6933_v33 = vpop.f32.mrb[56].mxu0  ;;  %v6935_v41 = vpop.f32.mrb[56].mxu1 }
 0x14e   :  { %8636 = vst [vmem:[#allocation69_spill] sm:$0xff] %v6933_v33  ;;  %8637 = vst [vmem:[#allocation70_spill] sm:$0xff] %v6935_v41  ;;  %v6939_v27 = vpop.f32.mrb[57].mxu0  ;;  %v6941_v30 = vpop.f32.mrb[57].mxu1  ;;  %v1664_v41 = vlaneseq }
 0x14f   :  { %8638 = vst [vmem:[#allocation71_spill] sm:$0xff] %v6939_v27  ;;  %8639 = vst [vmem:[#allocation72_spill] sm:$0xff] %v6941_v30  ;;  %v6945_v51 = vpop.f32.mrb[58].mxu0  ;;  %v6947_v22 = vpop.f32.mrb[58].mxu1 }
 0x150   :  { %8640 = vst [vmem:[#allocation73_spill] sm:$0xff] %v6945_v51  ;;  %8641 = vst [vmem:[#allocation74_spill] sm:$0xff] %v6947_v22  ;;  %v6951_v48 = vpop.f32.mrb[59].mxu0  ;;  %v6953_v45 = vpop.f32.mrb[59].mxu1  ;;  %v6967_v34 = vshrl.u32 %v1664_v41, 7 }
 0x151   :  { %8642 = vst [vmem:[#allocation75_spill] sm:$0xff] %v6951_v48  ;;  %8643 = vst [vmem:[#allocation76_spill] sm:$0xff] %v6953_v45  ;;  %v1662_v22 = vld [vmem:[%s8472_s2] sm:$0x3]  ;;  %v8653_v45 = vmax.f32 %v6519_v19, %v6521_v20  ;;  %v8655_v19 = vmax.f32 %v6540_v28, %v6542_v29 }
 0x152   :  { %8648 = vst [vmem:[#allocation81_spill] sm:$0xff] %v6967_v34  ;;  %v8560_v41 = vsub.s32 0, %v6967_v34 }
 0x155   :  { %v6957_v33 = vpop.f32.mrb[60].mxu0  ;;  %v6959_v59 = vpop.f32.mrb[60].mxu1 }
 0x156   :  { %8644 = vst [vmem:[#allocation77_spill] sm:$0xff] %v6957_v33  ;;  %8645 = vst [vmem:[#allocation78_spill] sm:$0xff] %v6959_v59  ;;  %v6963_v30 = vpop.f32.mrb[61].mxu0  ;;  %v6965_v27 = vpop.f32.mrb[61].mxu1 }
 0x157   :  { %8646 = vst [vmem:[#allocation79_spill] sm:$0xff] %v6963_v30  ;;  %8647 = vst [vmem:[#allocation80_spill] sm:$0xff] %v6965_v27  ;;  %v6971_v51 = vpop.f32.mrb[62].mxu0  ;;  %v6973_v1 = vpop.f32.mrb[62].mxu1  ;;  %v8563_v27 = vsub.s32 1, %v6967_v34 }
 0x158   :  { %8649 = vst [vmem:[#allocation82_spill] sm:$0xff] %v6971_v51  ;;  %8650 = vst [vmem:[#allocation83_spill] sm:$0xff] %v6973_v1  ;;  %v6977_v48 = vpop.f32.mrb[63].mxu0  ;;  %v6979_v63 = vpop.f32.mrb[63].mxu1  ;;  %v6993_v51 = vrot.slane %v1662_v22, %v8560_v41 }
 0x159   :  { %8651 = vst [vmem:[#allocation84_spill] sm:$0xff] %v6977_v48  ;;  %8652 = vst [vmem:[#allocation85_spill] sm:$0xff] %v6979_v63  ;;  %v8654_v63 = vmax.f32 %v6528_v23, %v6530_v24  ;;  %v7000_v3 = vrot.slane %v1662_v22, %v8563_v27  ;;  %v8738_v27 = vld [vmem:[#allocation43_spill] sm:$0xff] }
 0x15d   :  { %v1022_v30 = vpop.f32.mrb[64].mxu0  ;;  %v1439_v59 = vpop.f32.mrb[64].mxu1 }
 0x15e   :  { %v1181_v1 = vmax.f32 %v8653_v45, %v1022_v30  ;;  %v1024_v33 = vpop.f32.mrb[65].mxu0  ;;  %v1441_v26 = vpop.f32.mrb[65].mxu1 }
 0x15f   :  { %v1182_v48 = vmax.f32 %v8654_v63, %v1024_v33  ;;  %v1026_v6 = vpop.f32.mrb[66].mxu0  ;;  %v1443_v11 = vpop.f32.mrb[66].mxu1 }
 0x160   :  { %v1598_v15 = vmax.f32 %v1181_v1, %v1439_v59  ;;  %v1183_v20 = vmax.f32 %v8655_v19, %v1026_v6  ;;  %v1028_v30 = vpop.f32.mrb[67].mxu0  ;;  %v1445_v45 = vpop.f32.mrb[67].mxu1 }
 0x161   :  { %v1599_v41 = vmax.f32 %v1182_v48, %v1441_v26  ;;  %v1184_v7 = vmax.f32 %v8656_v52, %v1028_v30  ;;  %v8657_v48 = vmax.f32 %v6568_v38, %v6570_v39 }
 0x162   :  { %v1674_v23 = vadd.f32 %v6993_v51, %v1598_v15  ;;  %v1600_v24 = vmax.f32 %v1183_v20, %v1443_v11  ;;  %v8658_v11 = vmax.f32 %v6577_v42, %v6579_v43 }
 0x163   :  { %v1675_v22 = vadd.f32 %v7000_v3, %v1599_v41  ;;  %v1601_v33 = vmax.f32 %v1184_v7, %v1445_v45  ;;  %v8659_v45 = vmax.f32 %v6586_v46, %v6588_v47 }
 0x164   :  { %v1676_v63 = vadd.f32 %v6993_v51, %v1600_v24  ;;  %v1738_v29 = vmax.f32 %v1674_v23, 0.0 }
 0x165   :  { %v1677_v59 = vadd.f32 %v7000_v3, %v1601_v33  ;;  %v1032_v1 = vpop.f32.mrb[68].mxu0  ;;  %v1449_v28 = vpop.f32.mrb[68].mxu1  ;;  %v1739_v52 = vmax.f32 %v1675_v22, 0.0  ;;  %v8660_v22 = vmax.f32 %v6592_v49, %v6594_v50  ;;  %v8661_v49 = vmax.f32 %v6614_v56, %v6616_v57 }
 0x166   :  { %v1740_v6 = vmax.f32 %v1676_v63, 0.0  ;;  %v1185_v26 = vmax.f32 %v8657_v48, %v1032_v1  ;;  %v1034_v31 = vpop.f32.mrb[69].mxu0  ;;  %v1451_v32 = vpop.f32.mrb[69].mxu1 }
 0x167   :  { %v1741_v15 = vmax.f32 %v1677_v59, 0.0  ;;  %v1186_v7 = vmax.f32 %v8658_v11, %v1034_v31  ;;  %v1036_v41 = vpop.f32.mrb[70].mxu0  ;;  %v1453_v19 = vpop.f32.mrb[70].mxu1 }
 0x168   :  { %v7018_v20 = vpack.c.bf16 %v1740_v6, %v1738_v29  ;;  %v1602_v30 = vmax.f32 %v1185_v26, %v1449_v28  ;;  %v1187_v23 = vmax.f32 %v8659_v45, %v1036_v41  ;;  %v1038_v24 = vpop.f32.mrb[71].mxu0  ;;  %v1455_v38 = vpop.f32.mrb[71].mxu1  ;;  %v8663_v45 = vmax.f32 %v6632_v0, %v6634_v2  ;;  %v7057_v0 = vld [vmem:[%s8471_s3 + $0x14] ss:$8 sps:$4 sm:$0xff]  }
 0x169   :  { %v1603_v39 = vmax.f32 %v1186_v7, %v1451_v32  ;;  %v1188_v33 = vmax.f32 %v8660_v22, %v1038_v24  ;;  %v7026_v63 = vpack.c.bf16 %v1741_v15, %v1739_v52  ;;  %v8662_v15 = vmax.f32 %v6623_v60, %v6625_v61  ;;  %v7051_v60 = vld [vmem:[%s8471_s3] ss:$8 sps:$4 sm:$0xff]  }
 0x16a   :  { %v1678_v42 = vadd.f32 %v6993_v51, %v1602_v30  ;;  %v1604_v43 = vmax.f32 %v1187_v23, %v1453_v19 }
 0x16b   :  { %v1679_v59 = vadd.f32 %v7000_v3, %v1603_v39  ;;  %v1605_v1 = vmax.f32 %v1188_v33, %v1455_v38  ;;  %v8664_v38 = vmax.f32 %v6638_v4, %v6640_v5 }
 0x16c   :  { %v1680_v28 = vadd.f32 %v6993_v51, %v1604_v43  ;;  %v1742_v6 = vmax.f32 %v1678_v42, 0.0 }
 0x16d   :  { %v1681_v46 = vadd.f32 %v7000_v3, %v1605_v1  ;;  %v1042_v47 = vpop.f32.mrb[72].mxu0  ;;  %v1459_v29 = vpop.f32.mrb[72].mxu1  ;;  %v1743_v32 = vmax.f32 %v1679_v59, 0.0  ;;  %v7068_v1 = vld [vmem:[%s8471_s3 + $0x10] ss:$8 sps:$4 sm:$0xff]  }
 0x16e   :  { %v1744_v48 = vmax.f32 %v1680_v28, 0.0  ;;  %v1189_v50 = vmax.f32 %v8661_v49, %v1042_v47  ;;  %v1044_v26 = vpop.f32.mrb[73].mxu0  ;;  %v1461_v31 = vpop.f32.mrb[73].mxu1  ;;  %v8665_v47 = vmax.f32 %v6654_v9, %v6656_v10  ;;  %v7077_v49 = vld [vmem:[%s8471_s3 + $0x24] ss:$8 sps:$4 sm:$0xff]   ;;  %v8667_v9 = vmax.f32 %v6669_v16, %v6671_v17 }
 0x16f   :  { %v1745_v52 = vmax.f32 %v1681_v46, 0.0  ;;  %v1190_v11 = vmax.f32 %v8662_v15, %v1044_v26  ;;  %v1046_v7 = vpop.f32.mrb[74].mxu0  ;;  %v1463_v41 = vpop.f32.mrb[74].mxu1 }
 0x170   :  { %v7038_v19 = vpack.c.bf16 %v1744_v48, %v1742_v6  ;;  %v1606_v30 = vmax.f32 %v1189_v50, %v1459_v29  ;;  %v1191_v23 = vmax.f32 %v8663_v45, %v1046_v7  ;;  %v1048_v24 = vpop.f32.mrb[75].mxu0  ;;  %v1465_v56 = vpop.f32.mrb[75].mxu1 }
 0x171   :  { %v1607_v57 = vmax.f32 %v1190_v11, %v1461_v31  ;;  %v1192_v39 = vmax.f32 %v8664_v38, %v1048_v24  ;;  %v7046_v22 = vpack.c.bf16 %v1745_v52, %v1743_v32  ;;  %v8666_v31 = vmax.f32 %v6660_v12, %v6662_v13  ;;  %v7096_v13 = vld [vmem:[%s8471_s3 + $0x20] ss:$8 sps:$4 sm:$0xff]  }
 0x172   :  { %v1682_v61 = vadd.f32 %v6993_v51, %v1606_v30  ;;  %v1608_v33 = vmax.f32 %v1191_v23, %v1463_v41  ;;  %v8668_v23 = vmax.f32 %v6675_v21, %v6677_v25 }
 0x173   :  { %v1683_v2 = vadd.f32 %v7000_v3, %v1607_v57  ;;  %v1609_v42 = vmax.f32 %v1192_v39, %v1465_v56  ;;  %2090 = vmatprep.mubr.bf16.mxu0 %v7046_v22  ;;  %v7103_v56 = vld [vmem:[%s8471_s3 + $0x34] ss:$8 sps:$4 sm:$0xff]  }
 0x174   :  { %v1684_v4 = vadd.f32 %v6993_v51, %v1608_v33  ;;  %2091 = vmatmul.mubr.bf16.vlgmr.msra.gmra.mrb[128].mxu0 %v7038_v19  ;;  %v1746_v28 = vmax.f32 %v1682_v61, 0.0  ;;  %v7115_v33 = vld [vmem:[%s8471_s3 + $0x30] ss:$8 sps:$4 sm:$0xff]  }
 0x175   :  { %v1685_v5 = vadd.f32 %v7000_v3, %v1609_v42  ;;  %2272 = vmatpush1.bf16.msra.mxu0 %v7051_v60  ;;  %v1052_v43 = vpop.f32.mrb[76].mxu0  ;;  %v1469_v59 = vpop.f32.mrb[76].mxu1  ;;  %v1747_v50 = vmax.f32 %v1683_v2, 0.0 }
 0x176   :  { %v1748_v46 = vmax.f32 %v1684_v4, 0.0  ;;  %v1193_v29 = vmax.f32 %v8665_v47, %v1052_v43  ;;  %v1054_v6 = vpop.f32.mrb[77].mxu0  ;;  %v1471_v48 = vpop.f32.mrb[77].mxu1  ;;  %2273 = vmatprep.subr.bf16.mxu0 %v7057_v0  ;;  %v8669_v4 = vmax.f32 %v6688_v35, %v6690_v36  ;;  %v8670_v47 = vmax.f32 %v6694_v40, %v6696_v44  ;;  %v7141_v40 = vld [vmem:[%s8471_s3 + $0x40] ss:$8 sps:$4 sm:$0xff]  }
 0x177   :  { %v1749_v26 = vmax.f32 %v1685_v5, 0.0  ;;  %v1194_v32 = vmax.f32 %v8666_v31, %v1054_v6  ;;  %v1056_v52 = vpop.f32.mrb[78].mxu0  ;;  %v1473_v15 = vpop.f32.mrb[78].mxu1  ;;  %v8671_v35 = vmax.f32 %v6703_v53, %v6705_v54 }
 0x178   :  { %v1610_v11 = vmax.f32 %v1193_v29, %v1469_v59  ;;  %v1195_v10 = vmax.f32 %v8667_v9, %v1056_v52  ;;  %v1058_v7 = vpop.f32.mrb[79].mxu0  ;;  %v1475_v41 = vpop.f32.mrb[79].mxu1  ;;  %v7085_v30 = vpack.c.bf16 %v1748_v46, %v1746_v28  ;;  %v7124_v28 = vld [vmem:[%s8471_s3 + $0x44] ss:$8 sps:$4 sm:$0xff]   ;;  %v7150_v9 = vld [vmem:[%s8471_s3 + $0x54] ss:$8 sps:$4 sm:$0xff]  }
 0x179   :  { %v1611_v45 = vmax.f32 %v1194_v32, %v1471_v48  ;;  %v1196_v24 = vmax.f32 %v8668_v23, %v1058_v7  ;;  %2274 = vmatpush1.bf16.msra.mxu0 %v7068_v1  ;;  %v7091_v12 = vpack.c.bf16 %v1749_v26, %v1747_v50  ;;  %v7159_v23 = vld [vmem:[%s8471_s3 + $0x50] ss:$8 sps:$4 sm:$0xff]  }
 0x17a   :  { %v1686_v16 = vadd.f32 %v6993_v51, %v1610_v11  ;;  %v1612_v17 = vmax.f32 %v1195_v10, %v1473_v15  ;;  %2275 = vmatprep.subr.bf16.mxu0 %v7077_v49  ;;  %v8672_v15 = vmax.f32 %v6709_v58, %v6711_v62 }
 0x17b   :  { %v1687_v21 = vadd.f32 %v7000_v3, %v1611_v45  ;;  %v1613_v25 = vmax.f32 %v1196_v24, %v1475_v41  ;;  %2100 = vmatprep.mubr.bf16.mxu0 %v7091_v12 }
 0x17c   :  { %v1688_v57 = vadd.f32 %v6993_v51, %v1612_v17  ;;  %2101 = vmatmul.mubr.bf16.gmra.mrb[132].mxu0 %v7085_v30  ;;  %v1750_v2 = vmax.f32 %v1686_v16, 0.0  ;;  %v8673_v17 = vmax.f32 %v6717_v8, %v6719_v14  ;;  %v8675_v14 = vld [vmem:[#allocation2_spill] sm:$0xff] }
 0x17d   :  { %v1689_v38 = vadd.f32 %v7000_v3, %v1613_v25  ;;  %2276 = vmatpush1.bf16.msra.mxu0 %v7096_v13  ;;  %v1062_v39 = vpop.f32.mrb[80].mxu0  ;;  %v1479_v61 = vpop.f32.mrb[80].mxu1  ;;  %2303 = vmatprep.mubr.bf16.mxu0 %v7026_v63  ;;  %v1751_v63 = vmax.f32 %v1687_v21, 0.0 }
 0x17e   :  { %v1752_v42 = vmax.f32 %v1688_v57, 0.0  ;;  %v1197_v5 = vmax.f32 %v8669_v4, %v1062_v39  ;;  %v1064_v43 = vpop.f32.mrb[81].mxu0  ;;  %v1481_v59 = vpop.f32.mrb[81].mxu1  ;;  %2277 = vmatprep.subr.bf16.mxu0 %v7103_v56 }
 0x17f   :  { %v1753_v46 = vmax.f32 %v1689_v38, 0.0  ;;  %v1198_v29 = vmax.f32 %v8670_v47, %v1064_v43  ;;  %v1066_v6 = vpop.f32.mrb[82].mxu0  ;;  %v1483_v48 = vpop.f32.mrb[82].mxu1  ;;  %v7168_v38 = vld [vmem:[%s8471_s3 + $0x64] ss:$8 sps:$4 sm:$0xff]  }
 0x180   :  { %v1614_v50 = vmax.f32 %v1197_v5, %v1479_v61  ;;  %v1199_v36 = vmax.f32 %v8671_v35, %v1066_v6  ;;  %v1068_v26 = vpop.f32.mrb[83].mxu0  ;;  %v1485_v31 = vpop.f32.mrb[83].mxu1  ;;  %v7132_v32 = vpack.c.bf16 %v1752_v42, %v1750_v2  ;;  %v8674_v2 = vmax.f32 %v6723_v37, %v6725_v55  ;;  %v8677_v6 = vld [vmem:[#allocation3_spill] sm:$0xff] }
 0x181   :  { %v1615_v52 = vmax.f32 %v1198_v29, %v1481_v59  ;;  %v1200_v11 = vmax.f32 %v8672_v15, %v1068_v26  ;;  %2278 = vmatpush1.bf16.msra.mxu0 %v7115_v33  ;;  %v7143_v44 = vpack.c.bf16 %v1753_v46, %v1751_v63  ;;  %v8676_v59 = vmax.f32 %v6729_v18, %v8675_v14  ;;  %v7185_v37 = vld [vmem:[%s8471_s3 + $0x60] ss:$8 sps:$4 sm:$0xff]   ;;  %v7194_v26 = vld [vmem:[%s8471_s3 + $0x74] ss:$8 sps:$4 sm:$0xff]  }
 0x182   :  { %v1690_v53 = vadd.f32 %v6993_v51, %v1614_v50  ;;  %v1616_v54 = vmax.f32 %v1199_v36, %v1483_v48  ;;  %2279 = vmatprep.subr.bf16.mxu0 %v7124_v28  ;;  %v8678_v48 = vld [vmem:[#allocation4_spill] sm:$0xff]  ;;  %v8686_v14 = vld [vmem:[#allocation9_spill] sm:$0xff] }
 0x183   :  { %v1691_v58 = vadd.f32 %v7000_v3, %v1615_v52  ;;  %v1617_v62 = vmax.f32 %v1200_v11, %v1485_v31  ;;  %v8679_v50 = vmax.f32 %v8677_v6, %v8678_v48 }
 0x184   :  { %v1692_v10 = vadd.f32 %v6993_v51, %v1616_v54  ;;  %v1754_v24 = vmax.f32 %v1690_v53, 0.0 }
 0x185   :  { %v1693_v7 = vadd.f32 %v7000_v3, %v1617_v62  ;;  %2280 = vmatpush1.bf16.msra.mxu0 %v7141_v40  ;;  %v1072_v41 = vpop.f32.mrb[84].mxu0  ;;  %v1489_v45 = vpop.f32.mrb[84].mxu1  ;;  %v1755_v39 = vmax.f32 %v1691_v58, 0.0  ;;  %v7203_v58 = vld [vmem:[%s8471_s3 + $0x70] ss:$8 sps:$4 sm:$0xff]  }
 0x186   :  { %v1756_v16 = vmax.f32 %v1692_v10, 0.0  ;;  %v1201_v21 = vmax.f32 %v8673_v17, %v1072_v41  ;;  %v1074_v25 = vpop.f32.mrb[85].mxu0  ;;  %v1491_v57 = vpop.f32.mrb[85].mxu1  ;;  %2281 = vmatprep.subr.bf16.mxu0 %v7150_v9  ;;  %v8681_v41 = vld [vmem:[#allocation6_spill] sm:$0xff] }
 0x187   :  { %v1757_v61 = vmax.f32 %v1693_v7, 0.0  ;;  %v1202_v42 = vmax.f32 %v8674_v2, %v1074_v25  ;;  %v1076_v4 = vpop.f32.mrb[86].mxu0  ;;  %v1493_v5 = vpop.f32.mrb[86].mxu1  ;;  %v8680_v7 = vld [vmem:[#allocation5_spill] sm:$0xff] }
 0x188   :  { %v7173_v43 = vpack.c.bf16 %v1756_v16, %v1754_v24  ;;  %v1618_v8 = vmax.f32 %v1201_v21, %v1489_v45  ;;  %v1203_v63 = vmax.f32 %v8676_v59, %v1076_v4  ;;  %v1078_v46 = vpop.f32.mrb[87].mxu0  ;;  %v1495_v47 = vpop.f32.mrb[87].mxu1  ;;  %v8682_v45 = vmax.f32 %v8680_v7, %v8681_v41  ;;  %v7212_v21 = vld [vmem:[%s8471_s3 + $0x84] ss:$8 sps:$4 sm:$0xff]  }
 0x189   :  { %v1619_v29 = vmax.f32 %v1202_v42, %v1491_v57  ;;  %v1204_v35 = vmax.f32 %v8679_v50, %v1078_v46  ;;  %2282 = vmatpush1.bf16.msra.mxu0 %v7159_v23  ;;  %v7187_v55 = vpack.c.bf16 %v1757_v61, %v1755_v39  ;;  %v8683_v39 = vld [vmem:[#allocation7_spill] sm:$0xff]  ;;  %v8684_v61 = vld [vmem:[#allocation8_spill] sm:$0xff]  ;;  %v8687_v59 = vld [vmem:[#allocation10_spill] sm:$0xff] }
 0x18a   :  { %v1694_v36 = vadd.f32 %v6993_v51, %v1618_v8  ;;  %v1620_v18 = vmax.f32 %v1203_v63, %v1493_v5  ;;  %2283 = vmatprep.subr.bf16.mxu0 %v7168_v38  ;;  %v8685_v2 = vmax.f32 %v8683_v39, %v8684_v61  ;;  %v8688_v63 = vmax.f32 %v8686_v14, %v8687_v59  ;;  %v8689_v50 = vld [vmem:[#allocation11_spill] sm:$0xff]  ;;  %v8696_v59 = vld [vmem:[#allocation16_spill] sm:$0xff] }
 0x18b   :  { %v1695_v31 = vadd.f32 %v7000_v3, %v1619_v29  ;;  %v1621_v52 = vmax.f32 %v1204_v35, %v1495_v47  ;;  %v8690_v35 = vld [vmem:[#allocation12_spill] sm:$0xff]  ;;  %v8695_v14 = vld [vmem:[#allocation15_spill] sm:$0xff] }
 0x18c   :  { %v1696_v15 = vadd.f32 %v6993_v51, %v1620_v18  ;;  %v1758_v62 = vmax.f32 %v1694_v36, 0.0  ;;  %v8691_v36 = vmax.f32 %v8689_v50, %v8690_v35  ;;  %v8698_v50 = vld [vmem:[#allocation17_spill] sm:$0xff]  ;;  %v8699_v35 = vld [vmem:[#allocation18_spill] sm:$0xff] }
 0x18d   :  { %v1697_v11 = vadd.f32 %v7000_v3, %v1621_v52  ;;  %2284 = vmatpush1.bf16.msra.mxu0 %v7185_v37  ;;  %v1082_v53 = vpop.f32.mrb[88].mxu0  ;;  %v1499_v54 = vpop.f32.mrb[88].mxu1  ;;  %v1759_v25 = vmax.f32 %v1695_v31, 0.0  ;;  %v7231_v52 = vld [vmem:[%s8471_s3 + $0x80] ss:$8 sps:$4 sm:$0xff]  }
 0x18e   :  { %v1760_v10 = vmax.f32 %v1696_v15, 0.0  ;;  %v1205_v24 = vmax.f32 %v8682_v45, %v1082_v53  ;;  %v1084_v16 = vpop.f32.mrb[89].mxu0  ;;  %2285 = vmatprep.subr.bf16.mxu0 %v7194_v26  ;;  %v1501_v17 = vpop.f32.mrb[89].mxu1  ;;  %v7238_v53 = vld [vmem:[%s8471_s3 + $0x94] ss:$8 sps:$4 sm:$0xff]  }
 0x18f   :  { %v1761_v57 = vmax.f32 %v1697_v11, 0.0  ;;  %v1206_v42 = vmax.f32 %v8685_v2, %v1084_v16  ;;  %v1086_v4 = vpop.f32.mrb[90].mxu0  ;;  %v1503_v5 = vpop.f32.mrb[90].mxu1 }
 0x190   :  { %v7217_v8 = vpack.c.bf16 %v1760_v10, %v1758_v62  ;;  %v1207_v46 = vmax.f32 %v8688_v63, %v1086_v4  ;;  %v1622_v47 = vmax.f32 %v1205_v24, %v1499_v54  ;;  %v1088_v29 = vpop.f32.mrb[91].mxu0  ;;  %v1505_v6 = vpop.f32.mrb[91].mxu1  ;;  %v7250_v24 = vld [vmem:[%s8471_s3 + $0x90] ss:$8 sps:$4 sm:$0xff]   ;;  %v8697_v63 = vmax.f32 %v8695_v14, %v8696_v59  ;;  %v8705_v59 = vld [vmem:[#allocation22_spill] sm:$0xff] }
 0x191   :  { %v7222_v48 = vpack.c.bf16 %v1761_v57, %v1759_v25  ;;  %v1208_v18 = vmax.f32 %v8691_v36, %v1088_v29  ;;  %v1623_v31 = vmax.f32 %v1206_v42, %v1501_v17  ;;  %2286 = vmatpush1.bf16.msra.mxu0 %v7203_v58  ;;  %v8692_v25 = vld [vmem:[#allocation13_spill] sm:$0xff]  ;;  %v8693_v57 = vld [vmem:[#allocation14_spill] sm:$0xff]  ;;  %v8700_v36 = vmax.f32 %v8698_v50, %v8699_v35 }
 0x192   :  { %v1698_v15 = vadd.f32 %v6993_v51, %v1622_v47  ;;  %v1624_v11 = vmax.f32 %v1207_v46, %v1503_v5  ;;  %2287 = vmatprep.subr.bf16.mxu0 %v7212_v21  ;;  %v8694_v39 = vmax.f32 %v8692_v25, %v8693_v57  ;;  %v7288_v25 = vld [vmem:[%s8471_s3 + $0xb4] ss:$8 sps:$4 sm:$0xff]  }
 0x193   :  { %v1699_v54 = vadd.f32 %v7000_v3, %v1623_v31  ;;  %v1625_v62 = vmax.f32 %v1208_v18, %v1505_v6  ;;  %2356 = vmatprep.mubr.bf16.mxu1 %v7222_v48  ;;  %v8704_v14 = vld [vmem:[#allocation21_spill] sm:$0xff] }
 0x194   :  { %v1700_v10 = vadd.f32 %v6993_v51, %v1624_v11  ;;  %2357 = vmatmul.mubr.bf16.vlgmr.msra.gmra.mrb[128].mxu1 %v7217_v8  ;;  %v1762_v16 = vmax.f32 %v1698_v15, 0.0 }
 0x195   :  { %v1701_v7 = vadd.f32 %v7000_v3, %v1625_v62  ;;  %2288 = vmatpush1.bf16.msra.mxu0 %v7231_v52  ;;  %2378 = vmatpush1.bf16.msra.mxu1 %v7051_v60  ;;  %v1092_v41 = vpop.f32.mrb[92].mxu0  ;;  %v1509_v45 = vpop.f32.mrb[92].mxu1  ;;  %v7260_v60 = vld [vmem:[%s8471_s3 + $0xa4] ss:$8 sps:$4 sm:$0xff]   ;;  %v1763_v4 = vmax.f32 %v1699_v54, 0.0  ;;  %v8702_v54 = vld [vmem:[#allocation20_spill] sm:$0xff] }
 0x196   :  { %v1764_v17 = vmax.f32 %v1700_v10, 0.0  ;;  %v1209_v61 = vmax.f32 %v8694_v39, %v1092_v41  ;;  %v1094_v2 = vpop.f32.mrb[93].mxu0  ;;  %2289 = vmatprep.subr.bf16.mxu0 %v7238_v53  ;;  %2379 = vmatprep.subr.bf16.mxu1 %v7057_v0  ;;  %v1511_v42 = vpop.f32.mrb[93].mxu1  ;;  %v8701_v62 = vld [vmem:[#allocation19_spill] sm:$0xff] }
 0x197   :  { %v1765_v5 = vmax.f32 %v1701_v7, 0.0  ;;  %v1210_v46 = vmax.f32 %v8697_v63, %v1094_v2  ;;  %v1096_v47 = vpop.f32.mrb[94].mxu0  ;;  %v1513_v29 = vpop.f32.mrb[94].mxu1  ;;  %v8703_v10 = vmax.f32 %v8701_v62, %v8702_v54  ;;  %v8706_v63 = vmax.f32 %v8704_v14, %v8705_v59  ;;  %v8710_v54 = vld [vmem:[#allocation25_spill] sm:$0xff] }
 0x198   :  { %v7265_v6 = vpack.c.bf16 %v1764_v17, %v1762_v16  ;;  %v1211_v0 = vmax.f32 %v8700_v36, %v1096_v47  ;;  %v1626_v18 = vmax.f32 %v1209_v61, %v1509_v45  ;;  %v1098_v31 = vpop.f32.mrb[95].mxu0  ;;  %v1515_v15 = vpop.f32.mrb[95].mxu1  ;;  %v7280_v16 = vld [vmem:[%s8471_s3 + $0xa0] ss:$8 sps:$4 sm:$0xff]  }
 0x199   :  { %v7270_v11 = vpack.c.bf16 %v1765_v5, %v1763_v4  ;;  %v1212_v7 = vmax.f32 %v8703_v10, %v1098_v31  ;;  %v1627_v41 = vmax.f32 %v1210_v46, %v1511_v42  ;;  %2290 = vmatpush1.bf16.msra.mxu0 %v7250_v24  ;;  %2380 = vmatpush1.bf16.msra.mxu1 %v7068_v1  ;;  %v7300_v42 = vld [vmem:[%s8471_s3 + $0xb0] ss:$8 sps:$4 sm:$0xff]   ;;  %v8707_v36 = vld [vmem:[#allocation23_spill] sm:$0xff]  ;;  %v8711_v10 = vld [vmem:[#allocation26_spill] sm:$0xff] }
 0x19a   :  { %v1702_v45 = vadd.f32 %v6993_v51, %v1626_v18  ;;  %v1628_v17 = vmax.f32 %v1211_v0, %v1513_v29  ;;  %2291 = vmatprep.subr.bf16.mxu0 %v7260_v60  ;;  %2381 = vmatprep.subr.bf16.mxu1 %v7077_v49  ;;  %v8708_v0 = vld [vmem:[#allocation24_spill] sm:$0xff] }
 0x19b   :  { %v1703_v57 = vadd.f32 %v7000_v3, %v1627_v41  ;;  %v1629_v1 = vmax.f32 %v1212_v7, %v1515_v15  ;;  %2366 = vmatprep.mubr.bf16.mxu1 %v7270_v11  ;;  %v8709_v18 = vmax.f32 %v8707_v36, %v8708_v0  ;;  %v8712_v7 = vmax.f32 %v8710_v54, %v8711_v10 }
 0x19c   :  { %v1704_v39 = vadd.f32 %v6993_v51, %v1628_v17  ;;  %2367 = vmatmul.mubr.bf16.gmra.mrb[132].mxu1 %v7265_v6  ;;  %v1766_v4 = vmax.f32 %v1702_v45, 0.0 }
 0x19d   :  { %v1705_v61 = vadd.f32 %v7000_v3, %v1629_v1  ;;  %2292 = vmatpush1.bf16.msra.mxu0 %v7280_v16  ;;  %2382 = vmatpush1.bf16.msra.mxu1 %v7096_v13  ;;  %v1102_v49 = vpop.f32.mrb[96].mxu0  ;;  %v1519_v2 = vpop.f32.mrb[96].mxu1  ;;  %v7310_v13 = vld [vmem:[%s8471_s3 + $0xc4] ss:$8 sps:$4 sm:$0xff]   ;;  %v1767_v50 = vmax.f32 %v1703_v57, 0.0  ;;  %v8714_v57 = vld [vmem:[#allocation28_spill] sm:$0xff] }
 0x19e   :  { %v1768_v5 = vmax.f32 %v1704_v39, 0.0  ;;  %v1213_v46 = vmax.f32 %v8706_v63, %v1102_v49  ;;  %2409 = vmatprep.mubr.bf16.mxu1 %v7187_v55  ;;  %v1104_v47 = vpop.f32.mrb[97].mxu0  ;;  %2293 = vmatprep.subr.bf16.mxu0 %v7288_v25  ;;  %v1521_v29 = vpop.f32.mrb[97].mxu1  ;;  %v8713_v49 = vld [vmem:[#allocation27_spill] sm:$0xff] }
 0x19f   :  { %v1769_v35 = vmax.f32 %v1705_v61, 0.0  ;;  %v1214_v31 = vmax.f32 %v8709_v18, %v1104_v47  ;;  %v1106_v15 = vpop.f32.mrb[98].mxu0  ;;  %2383 = vmatprep.subr.bf16.mxu1 %v7103_v56  ;;  %v1523_v62 = vpop.f32.mrb[98].mxu1  ;;  %v8715_v61 = vmax.f32 %v8713_v49, %v8714_v57  ;;  %v7329_v56 = vld [vmem:[%s8471_s3 + $0xc0] ss:$8 sps:$4 sm:$0xff]   ;;  %v8716_v18 = vld [vmem:[#allocation29_spill] sm:$0xff] }
 0x1a0   :  { %v1215_v41 = vmax.f32 %v8712_v7, %v1106_v15  ;;  %v1630_v45 = vmax.f32 %v1213_v46, %v1519_v2  ;;  %v1108_v17 = vpop.f32.mrb[99].mxu0  ;;  %v1525_v1 = vpop.f32.mrb[99].mxu1  ;;  %v7319_v39 = vpack.c.bf16 %v1768_v5, %v1766_v4  ;;  %v7339_v5 = vld [vmem:[%s8471_s3 + $0xd4] ss:$8 sps:$4 sm:$0xff]  }
 0x1a1   :  { %v1216_v14 = vmax.f32 %v8715_v61, %v1108_v17  ;;  %v1631_v59 = vmax.f32 %v1214_v31, %v1521_v29  ;;  %2294 = vmatpush1.bf16.msra.mxu0 %v7300_v42  ;;  %2384 = vmatpush1.bf16.msra.mxu1 %v7115_v33  ;;  %v7331_v63 = vpack.c.bf16 %v1769_v35, %v1767_v50  ;;  %v8717_v31 = vld [vmem:[#allocation30_spill] sm:$0xff]  ;;  %v8720_v17 = vld [vmem:[#allocation32_spill] sm:$0xff] }
 0x1a2   :  { %v1706_v2 = vadd.f32 %v6993_v51, %v1630_v45  ;;  %v1632_v4 = vmax.f32 %v1215_v41, %v1523_v62  ;;  %2295 = vmatprep.subr.bf16.mxu0 %v7310_v13  ;;  %2385 = vmatprep.subr.bf16.mxu1 %v7124_v28  ;;  %v7349_v28 = vld [vmem:[%s8471_s3 + $0xd0] ss:$8 sps:$4 sm:$0xff]   ;;  %v8718_v15 = vmax.f32 %v8716_v18, %v8717_v31  ;;  %v8719_v45 = vld [vmem:[#allocation31_spill] sm:$0xff] }
 0x1a3   :  { %v1707_v33 = vadd.f32 %v7000_v3, %v1631_v59  ;;  %v1633_v46 = vmax.f32 %v1216_v14, %v1525_v1  ;;  %v8721_v1 = vmax.f32 %v8719_v45, %v8720_v17  ;;  %v8723_v59 = vld [vmem:[#allocation33_spill] sm:$0xff]  ;;  %v8726_v18 = vld [vmem:[#allocation35_spill] sm:$0xff]  ;;  %v8727_v31 = vld [vmem:[#allocation36_spill] sm:$0xff] }
 0x1a4   :  { %v1708_v47 = vadd.f32 %v6993_v51, %v1632_v4  ;;  %v1770_v36 = vmax.f32 %v1706_v2, 0.0  ;;  %v8724_v2 = vld [vmem:[#allocation34_spill] sm:$0xff] }
 0x1a5   :  { %v1709_v29 = vadd.f32 %v7000_v3, %v1633_v46  ;;  %2296 = vmatpush1.bf16.msra.mxu0 %v7329_v56  ;;  %2386 = vmatpush1.bf16.msra.mxu1 %v7141_v40  ;;  %v1112_v50 = vpop.f32.mrb[100].mxu0  ;;  %v1529_v35 = vpop.f32.mrb[100].mxu1  ;;  %v7359_v40 = vld [vmem:[%s8471_s3 + $0xe4] ss:$8 sps:$4 sm:$0xff]   ;;  %v1771_v7 = vmax.f32 %v1707_v33, 0.0  ;;  %v8725_v4 = vmax.f32 %v8723_v59, %v8724_v2 }
 0x1a6   :  { %v1772_v0 = vmax.f32 %v1708_v47, 0.0  ;;  %v1217_v62 = vmax.f32 %v8718_v15, %v1112_v50  ;;  %v1114_v54 = vpop.f32.mrb[101].mxu0  ;;  %2297 = vmatprep.subr.bf16.mxu0 %v7339_v5  ;;  %2387 = vmatprep.subr.bf16.mxu1 %v7150_v9  ;;  %v1531_v10 = vpop.f32.mrb[101].mxu1  ;;  %v8728_v15 = vmax.f32 %v8726_v18, %v8727_v31  ;;  %v8733_v18 = vld [vmem:[#allocation40_spill] sm:$0xff] }
 0x1a7   :  { %v1773_v41 = vmax.f32 %v1709_v29, 0.0  ;;  %v1218_v49 = vmax.f32 %v8721_v1, %v1114_v54  ;;  %v1116_v57 = vpop.f32.mrb[102].mxu0  ;;  %v1533_v61 = vpop.f32.mrb[102].mxu1  ;;  %v7387_v54 = vld [vmem:[%s8471_s3 + $0xf4] ss:$8 sps:$4 sm:$0xff]  }
 0x1a8   :  { %v7364_v14 = vpack.c.bf16 %v1772_v0, %v1770_v36  ;;  %v1219_v9 = vmax.f32 %v8725_v4, %v1116_v57  ;;  %v1634_v46 = vmax.f32 %v1217_v62, %v1529_v35  ;;  %v1118_v47 = vpop.f32.mrb[103].mxu0  ;;  %v1535_v50 = vpop.f32.mrb[103].mxu1  ;;  %v7377_v36 = vld [vmem:[%s8471_s3 + $0xe0] ss:$8 sps:$4 sm:$0xff]   ;;  %v8729_v57 = vld [vmem:[#allocation37_spill] sm:$0xff] }
 0x1a9   :  { %v1220_v33 = vmax.f32 %v8728_v15, %v1118_v47  ;;  %v1635_v29 = vmax.f32 %v1218_v49, %v1531_v10  ;;  %2298 = vmatpush1.bf16.msra.mxu0 %v7349_v28  ;;  %2388 = vmatpush1.bf16.msra.mxu1 %v7159_v23  ;;  %v7379_v0 = vpack.c.bf16 %v1773_v41, %v1771_v7 }
 0x1aa   :  { %8722 = vst [vmem:[#allocation2_spill] sm:$0xff] %v7364_v14  ;;  %v1710_v35 = vadd.f32 %v6993_v51, %v1634_v46  ;;  %v1636_v62 = vmax.f32 %v1219_v9, %v1533_v61  ;;  %2299 = vmatprep.subr.bf16.mxu0 %v7359_v40  ;;  %2389 = vmatprep.subr.bf16.mxu1 %v7168_v38  ;;  %v7397_v38 = vld [vmem:[%s8471_s3 + $0xf0] ss:$8 sps:$4 sm:$0xff]   ;;  %v8730_v61 = vld [vmem:[#allocation38_spill] sm:$0xff] }
 0x1ab   :  { %v1711_v23 = vadd.f32 %v7000_v3, %v1635_v29  ;;  %v1637_v10 = vmax.f32 %v1220_v33, %v1535_v50  ;;  %v8731_v59 = vmax.f32 %v8729_v57, %v8730_v61  ;;  %v8732_v50 = vld [vmem:[#allocation39_spill] sm:$0xff] }
 0x1ac   :  { %v1712_v45 = vadd.f32 %v6993_v51, %v1636_v62  ;;  %v1774_v1 = vmax.f32 %v1710_v35, 0.0  ;;  %v8734_v31 = vmax.f32 %v8732_v50, %v8733_v18  ;;  %v8735_v62 = vld [vmem:[#allocation41_spill] sm:$0xff]  ;;  %v8742_v50 = vld [vmem:[#allocation46_spill] sm:$0xff] }
 0x1ad   :  { %v1713_v7 = vadd.f32 %v7000_v3, %v1637_v10  ;;  %2300 = vmatpush1.bf16.msra.mxu0 %v7377_v36  ;;  %2390 = vmatpush1.bf16.msra.mxu1 %v7185_v37  ;;  %v1122_v41 = vpop.f32.mrb[104].mxu0  ;;  %v1539_v17 = vpop.f32.mrb[104].mxu1  ;;  %v7407_v37 = vld [vmem:[%s8471_s3 + $0x204] ss:$8 sps:$4 sm:$0xff]   ;;  %v1775_v46 = vmax.f32 %v1711_v23, 0.0  ;;  %v8739_v23 = vld [vmem:[#allocation44_spill] sm:$0xff] }
 0x1ae   :  { %v1776_v49 = vmax.f32 %v1712_v45, 0.0  ;;  %v1221_v2 = vmax.f32 %v8731_v59, %v1122_v41  ;;  %v1124_v4 = vpop.f32.mrb[105].mxu0  ;;  %2301 = vmatprep.subr.bf16.mxu0 %v7387_v54  ;;  %2391 = vmatprep.subr.bf16.mxu1 %v7194_v26  ;;  %v1541_v9 = vpop.f32.mrb[105].mxu1  ;;  %v8736_v10 = vld [vmem:[#allocation42_spill] sm:$0xff] }
 0x1af   :  { %v1777_v47 = vmax.f32 %v1713_v7, 0.0  ;;  %v1222_v15 = vmax.f32 %v8734_v31, %v1124_v4  ;;  %v1126_v33 = vpop.f32.mrb[106].mxu0  ;;  %v1543_v29 = vpop.f32.mrb[106].mxu1  ;;  %v8737_v45 = vmax.f32 %v8735_v62, %v8736_v10  ;;  %v8740_v7 = vmax.f32 %v8738_v27, %v8739_v23  ;;  %v7436_v4 = vld [vmem:[%s8471_s3 + $0x214] ss:$8 sps:$4 sm:$0xff]   ;;  %v8748_v23 = vld [vmem:[#allocation50_spill] sm:$0xff] }
 0x1b0   :  { %v7412_v35 = vpack.c.bf16 %v1776_v49, %v1774_v1  ;;  %v1638_v41 = vmax.f32 %v1221_v2, %v1539_v17  ;;  %v1128_v57 = vpop.f32.mrb[107].mxu0  ;;  %v1545_v61 = vpop.f32.mrb[107].mxu1  ;;  %v7429_v17 = vld [vmem:[%s8471_s3 + $0x200] ss:$8 sps:$4 sm:$0xff]   ;;  %v8745_v62 = vld [vmem:[#allocation48_spill] sm:$0xff] }
 0x1b1   :  { %v1223_v26 = vmax.f32 %v8737_v45, %v1126_v33  ;;  %v7417_v59 = vpack.c.bf16 %v1777_v47, %v1775_v46  ;;  %v1224_v34 = vmax.f32 %v8740_v7, %v1128_v57  ;;  %v1639_v14 = vmax.f32 %v1222_v15, %v1541_v9  ;;  %2302 = vmatpush1.bf16.msra.mxu0 %v7397_v38 }
 0x1b2   :  { %2392 = vmatpush1.bf16.msra.mxu1 %v7203_v58  ;;  %v1714_v1 = vadd.f32 %v6993_v51, %v1638_v41  ;;  %2622 = vmatprep.subr.bf16.mxu0 %v7407_v37 }
 0x1b3   :  { %v1640_v49 = vmax.f32 %v1223_v26, %v1543_v29  ;;  %2393 = vmatprep.subr.bf16.mxu1 %v7212_v21  ;;  %v1715_v27 = vadd.f32 %v7000_v3, %v1639_v14  ;;  %v1641_v2 = vmax.f32 %v1224_v34, %v1545_v61  ;;  %v8741_v34 = vld [vmem:[#allocation45_spill] sm:$0xff]  ;;  %v8744_v29 = vld [vmem:[#allocation47_spill] sm:$0xff] }
 0x1b4   :  { %2304 = vmatmul.mubr.bf16.vlgmr.msra.gmra.mrb[128].mxu0 %v7018_v20  ;;  %v1778_v47 = vmax.f32 %v1714_v1, 0.0  ;;  %v8743_v18 = vmax.f32 %v8741_v34, %v8742_v50  ;;  %v7451_v20 = vld [vmem:[%s8471_s3 + $0x210] ss:$8 sps:$4 sm:$0xff]   ;;  %v8746_v10 = vmax.f32 %v8744_v29, %v8745_v62 }
 0x1b5   :  { %v1716_v58 = vadd.f32 %v6993_v51, %v1640_v49  ;;  %v1717_v21 = vadd.f32 %v7000_v3, %v1641_v2  ;;  %2313 = vmatprep.mubr.bf16.mxu0 %v7046_v22  ;;  %v1132_v9 = vpop.f32.mrb[108].mxu0  ;;  %v1549_v46 = vpop.f32.mrb[108].mxu1  ;;  %2623 = vmatpush1.bf16.msra.mxu0 %v7429_v17  ;;  %v8747_v61 = vld [vmem:[#allocation49_spill] sm:$0xff] }
 0x1b6   :  { %2394 = vmatpush1.bf16.msra.mxu1 %v7231_v52  ;;  %v1225_v31 = vmax.f32 %v8743_v18, %v1132_v9  ;;  %v1134_v15 = vpop.f32.mrb[109].mxu0  ;;  %v1551_v22 = vpop.f32.mrb[109].mxu1  ;;  %v1779_v52 = vmax.f32 %v1715_v27, 0.0  ;;  %2624 = vmatprep.subr.bf16.mxu0 %v7436_v4  ;;  %v8749_v7 = vmax.f32 %v8747_v61, %v8748_v23  ;;  %v8751_v9 = vld [vmem:[#allocation52_spill] sm:$0xff] }
 0x1b7   :  { %v1780_v14 = vmax.f32 %v1716_v58, 0.0  ;;  %2395 = vmatprep.subr.bf16.mxu1 %v7238_v53  ;;  %v1781_v33 = vmax.f32 %v1717_v21, 0.0  ;;  %v1226_v45 = vmax.f32 %v8746_v10, %v1134_v15  ;;  %v1136_v26 = vpop.f32.mrb[110].mxu0  ;;  %v1553_v41 = vpop.f32.mrb[110].mxu1  ;;  %v7460_v53 = vld [vmem:[%s8471_s3 + $0x224] ss:$8 sps:$4 sm:$0xff]  }
 0x1b8   :  { %v1227_v1 = vmax.f32 %v8749_v7, %v1136_v26  ;;  %v1642_v49 = vmax.f32 %v1225_v31, %v1549_v46  ;;  %v1138_v27 = vpop.f32.mrb[111].mxu0  ;;  %v1555_v2 = vpop.f32.mrb[111].mxu1  ;;  %v8750_v21 = vld [vmem:[#allocation51_spill] sm:$0xff]  ;;  %v8753_v10 = vld [vmem:[#allocation53_spill] sm:$0xff] }
 0x1b9   :  { %v7462_v57 = vpack.c.bf16 %v1780_v14, %v1778_v47  ;;  %v7467_v58 = vpack.c.bf16 %v1781_v33, %v1779_v52  ;;  %v8752_v34 = vmax.f32 %v8750_v21, %v8751_v9  ;;  %v1643_v18 = vmax.f32 %v1226_v45, %v1551_v22  ;;  %2625 = vmatpush1.bf16.msra.mxu0 %v7451_v20  ;;  %v7479_v46 = vld [vmem:[%s8471_s3 + $0x220] ss:$8 sps:$4 sm:$0xff]   ;;  %v8759_v9 = vld [vmem:[#allocation57_spill] sm:$0xff] }
 0x1ba   :  { %2396 = vmatpush1.bf16.msra.mxu1 %v7250_v24  ;;  %v1718_v15 = vadd.f32 %v6993_v51, %v1642_v49  ;;  %v1644_v47 = vmax.f32 %v1227_v1, %v1553_v41  ;;  %2626 = vmatprep.subr.bf16.mxu0 %v7460_v53  ;;  %v7486_v24 = vld [vmem:[%s8471_s3 + $0x234] ss:$8 sps:$4 sm:$0xff]   ;;  %v8754_v45 = vld [vmem:[#allocation54_spill] sm:$0xff]  ;;  %v8756_v7 = vld [vmem:[#allocation55_spill] sm:$0xff] }
 0x1bb   :  { %v1228_v50 = vmax.f32 %v8752_v34, %v1138_v27  ;;  %2397 = vmatprep.subr.bf16.mxu1 %v7260_v60  ;;  %v1719_v14 = vadd.f32 %v7000_v3, %v1643_v18  ;;  %v8755_v26 = vmax.f32 %v8753_v10, %v8754_v45  ;;  %v8757_v1 = vld [vmem:[#allocation56_spill] sm:$0xff]  ;;  %v8760_v34 = vld [vmem:[#allocation58_spill] sm:$0xff] }
 0x1bc   :  { %v1720_v22 = vadd.f32 %v6993_v51, %v1644_v47  ;;  %2314 = vmatmul.mubr.bf16.gmra.mrb[132].mxu0 %v7038_v19  ;;  %v1782_v29 = vmax.f32 %v1718_v15, 0.0  ;;  %v7501_v19 = vld [vmem:[%s8471_s3 + $0x230] ss:$8 sps:$4 sm:$0xff]   ;;  %v8758_v49 = vmax.f32 %v8756_v7, %v8757_v1 }
 0x1bd   :  { %v1645_v31 = vmax.f32 %v1228_v50, %v1555_v2  ;;  %2654 = vmatprep.mubr.bf16.mxu0 %v7091_v12  ;;  %v1142_v52 = vpop.f32.mrb[112].mxu0  ;;  %v1559_v33 = vpop.f32.mrb[112].mxu1  ;;  %2627 = vmatpush1.bf16.msra.mxu0 %v7479_v46  ;;  %v1783_v12 = vmax.f32 %v1719_v14, 0.0  ;;  %v8761_v50 = vmax.f32 %v8759_v9, %v8760_v34  ;;  %v7549_v34 = vld [vmem:[%s8471_s3 + $0x250] ss:$8 sps:$4 sm:$0xff]  }
 0x1be   :  { %2398 = vmatpush1.bf16.msra.mxu1 %v7280_v16  ;;  %v1784_v62 = vmax.f32 %v1720_v22, 0.0  ;;  %v1229_v41 = vmax.f32 %v8755_v26, %v1142_v52  ;;  %v1144_v61 = vpop.f32.mrb[113].mxu0  ;;  %v1561_v16 = vpop.f32.mrb[113].mxu1  ;;  %2628 = vmatprep.subr.bf16.mxu0 %v7486_v24  ;;  %v8762_v22 = vld [vmem:[#allocation59_spill] sm:$0xff] }
 0x1bf   :  { %v1721_v60 = vadd.f32 %v7000_v3, %v1645_v31  ;;  %2399 = vmatprep.subr.bf16.mxu1 %v7288_v25  ;;  %v1230_v27 = vmax.f32 %v8758_v49, %v1144_v61  ;;  %v1146_v2 = vpop.f32.mrb[114].mxu0  ;;  %v1563_v21 = vpop.f32.mrb[114].mxu1  ;;  %v7510_v25 = vld [vmem:[%s8471_s3 + $0x244] ss:$8 sps:$4 sm:$0xff]   ;;  %v8765_v49 = vld [vmem:[#allocation61_spill] sm:$0xff] }
 0x1c0   :  { %v1231_v18 = vmax.f32 %v8761_v50, %v1146_v2  ;;  %v1646_v15 = vmax.f32 %v1229_v41, %v1559_v33  ;;  %v1148_v47 = vpop.f32.mrb[115].mxu0  ;;  %v1565_v14 = vpop.f32.mrb[115].mxu1  ;;  %v7515_v31 = vpack.c.bf16 %v1784_v62, %v1782_v29  ;;  %v7529_v33 = vld [vmem:[%s8471_s3 + $0x240] ss:$8 sps:$4 sm:$0xff]  }
 0x1c1   :  { %v1785_v23 = vmax.f32 %v1721_v60, 0.0  ;;  %v8763_v60 = vld [vmem:[#allocation60_spill] sm:$0xff]  ;;  %v1647_v45 = vmax.f32 %v1230_v27, %v1561_v16  ;;  %2629 = vmatpush1.bf16.msra.mxu0 %v7501_v19  ;;  %v8766_v27 = vld [vmem:[#allocation62_spill] sm:$0xff] }
 0x1c2   :  { %v8764_v52 = vmax.f32 %v8762_v22, %v8763_v60  ;;  %2400 = vmatpush1.bf16.msra.mxu1 %v7300_v42  ;;  %v1722_v61 = vadd.f32 %v6993_v51, %v1646_v15  ;;  %v1648_v7 = vmax.f32 %v1231_v18, %v1563_v21  ;;  %2630 = vmatprep.subr.bf16.mxu0 %v7510_v25  ;;  %v7536_v42 = vld [vmem:[%s8471_s3 + $0x254] ss:$8 sps:$4 sm:$0xff]   ;;  %v8768_v15 = vld [vmem:[#allocation63_spill] sm:$0xff] }
 0x1c3   :  { %v7521_v26 = vpack.c.bf16 %v1785_v23, %v1783_v12  ;;  %2401 = vmatprep.subr.bf16.mxu1 %v7310_v13  ;;  %v1723_v29 = vadd.f32 %v7000_v3, %v1647_v45  ;;  %v8767_v2 = vmax.f32 %v8765_v49, %v8766_v27  ;;  %v8772_v45 = vld [vmem:[#allocation65_spill] sm:$0xff]  ;;  %v8776_v49 = vld [vmem:[#allocation68_spill] sm:$0xff] }
 0x1c4   :  { %v1232_v10 = vmax.f32 %v8764_v52, %v1148_v47  ;;  %v1724_v41 = vadd.f32 %v6993_v51, %v1648_v7  ;;  %v1786_v23 = vmax.f32 %v1722_v61, 0.0  ;;  %v8769_v47 = vld [vmem:[#allocation64_spill] sm:$0xff]  ;;  %v8773_v61 = vld [vmem:[#allocation66_spill] sm:$0xff] }
 0x1c5   :  { %v1152_v13 = vpop.f32.mrb[116].mxu0  ;;  %v1569_v12 = vpop.f32.mrb[116].mxu1  ;;  %2631 = vmatpush1.bf16.msra.mxu0 %v7529_v33  ;;  %v8774_v7 = vmax.f32 %v8772_v45, %v8773_v61 }
 0x1c6   :  { %v1649_v62 = vmax.f32 %v1232_v10, %v1565_v14  ;;  %2402 = vmatpush1.bf16.msra.mxu1 %v7329_v56  ;;  %v1788_v1 = vmax.f32 %v1724_v41, 0.0  ;;  %v1233_v21 = vmax.f32 %v8767_v2, %v1152_v13  ;;  %v1154_v9 = vpop.f32.mrb[117].mxu0  ;;  %v1571_v50 = vpop.f32.mrb[117].mxu1  ;;  %v1787_v56 = vmax.f32 %v1723_v29, 0.0  ;;  %2632 = vmatprep.subr.bf16.mxu0 %v7536_v42  ;;  %v8775_v13 = vld [vmem:[#allocation67_spill] sm:$0xff] }
 0x1c7   :  { %2403 = vmatprep.subr.bf16.mxu1 %v7339_v5  ;;  %v8770_v14 = vmax.f32 %v8768_v15, %v8769_v47  ;;  %v1156_v60 = vpop.f32.mrb[118].mxu0  ;;  %v1573_v52 = vpop.f32.mrb[118].mxu1  ;;  %v7558_v5 = vld [vmem:[%s8471_s3 + $0x264] ss:$8 sps:$4 sm:$0xff]   ;;  %v8777_v27 = vmax.f32 %v8775_v13, %v8776_v49  ;;  %v8782_v13 = vld [vmem:[#allocation72_spill] sm:$0xff] }
 0x1c8   :  { %v1725_v16 = vadd.f32 %v7000_v3, %v1649_v62  ;;  %v7560_v10 = vpack.c.bf16 %v1788_v1, %v1786_v23  ;;  %v1235_v29 = vmax.f32 %v8774_v7, %v1156_v60  ;;  %v1650_v62 = vmax.f32 %v1233_v21, %v1569_v12  ;;  %v1158_v41 = vpop.f32.mrb[119].mxu0  ;;  %v7577_v12 = vld [vmem:[%s8471_s3 + $0x260] ss:$8 sps:$4 sm:$0xff]   ;;  %v8778_v60 = vld [vmem:[#allocation69_spill] sm:$0xff] }
 0x1c9   :  { %v1234_v22 = vmax.f32 %v8770_v14, %v1154_v9  ;;  %v1236_v2 = vmax.f32 %v8777_v27, %v1158_v41  ;;  %2633 = vmatpush1.bf16.msra.mxu0 %v7549_v34 }
 0x1ca   :  { %v1789_v18 = vmax.f32 %v1725_v16, 0.0  ;;  %8771 = vst [vmem:[#allocation3_spill] sm:$0xff] %v7560_v10  ;;  %v1575_v16 = vpop.f32.mrb[119].mxu1  ;;  %2404 = vmatpush1.bf16.msra.mxu1 %v7349_v28  ;;  %v1726_v47 = vadd.f32 %v6993_v51, %v1650_v62  ;;  %v1652_v23 = vmax.f32 %v1235_v29, %v1573_v52  ;;  %2634 = vmatprep.subr.bf16.mxu0 %v7558_v5  ;;  %v7584_v28 = vld [vmem:[%s8471_s3 + $0x274] ss:$8 sps:$4 sm:$0xff]   ;;  %v8779_v52 = vld [vmem:[#allocation70_spill] sm:$0xff] }
 0x1cb   :  { %v1651_v9 = vmax.f32 %v1234_v22, %v1571_v50  ;;  %2405 = vmatprep.subr.bf16.mxu1 %v7359_v40  ;;  %v1653_v21 = vmax.f32 %v1236_v2, %v1575_v16  ;;  %v8780_v45 = vmax.f32 %v8778_v60, %v8779_v52  ;;  %v7597_v29 = vld [vmem:[%s8471_s3 + $0x270] ss:$8 sps:$4 sm:$0xff]   ;;  %v8781_v16 = vld [vmem:[#allocation71_spill] sm:$0xff] }
 0x1cc   :  { %v7569_v15 = vpack.c.bf16 %v1789_v18, %v1787_v56  ;;  %v1728_v50 = vadd.f32 %v6993_v51, %v1652_v23  ;;  %v1790_v14 = vmax.f32 %v1726_v47, 0.0  ;;  %v8783_v49 = vmax.f32 %v8781_v16, %v8782_v13  ;;  %v8784_v47 = vld [vmem:[#allocation73_spill] sm:$0xff]  ;;  %v8785_v23 = vld [vmem:[#allocation74_spill] sm:$0xff]  ;;  %v8788_v52 = vld [vmem:[#allocation75_spill] sm:$0xff] }
 0x1cd   :  { %v1727_v1 = vadd.f32 %v7000_v3, %v1651_v9  ;;  %v1729_v56 = vadd.f32 %v7000_v3, %v1653_v21  ;;  %v1162_v40 = vpop.f32.mrb[120].mxu0  ;;  %v1579_v18 = vpop.f32.mrb[120].mxu1  ;;  %2635 = vmatpush1.bf16.msra.mxu0 %v7577_v12  ;;  %v8786_v21 = vmax.f32 %v8784_v47, %v8785_v23 }
 0x1ce   :  { %2406 = vmatpush1.bf16.msra.mxu1 %v7377_v36  ;;  %v1792_v22 = vmax.f32 %v1728_v50, 0.0  ;;  %v1237_v61 = vmax.f32 %v8780_v45, %v1162_v40  ;;  %v1164_v7 = vpop.f32.mrb[121].mxu0  ;;  %v1581_v62 = vpop.f32.mrb[121].mxu1  ;;  %2636 = vmatprep.subr.bf16.mxu0 %v7584_v28  ;;  %v8789_v45 = vld [vmem:[#allocation76_spill] sm:$0xff] }
 0x1cf   :  { %2407 = vmatprep.subr.bf16.mxu1 %v7387_v54  ;;  %v1791_v36 = vmax.f32 %v1727_v1, 0.0  ;;  %v1793_v41 = vmax.f32 %v1729_v56, 0.0  ;;  %v1238_v27 = vmax.f32 %v8783_v49, %v1164_v7  ;;  %v1166_v2 = vpop.f32.mrb[122].mxu0  ;;  %v1583_v9 = vpop.f32.mrb[122].mxu1  ;;  %v7606_v54 = vld [vmem:[%s8471_s3 + $0x284] ss:$8 sps:$4 sm:$0xff]   ;;  %v8790_v7 = vmax.f32 %v8788_v52, %v8789_v45 }
 0x1d0   :  { %v1239_v50 = vmax.f32 %v8786_v21, %v1166_v2  ;;  %v1654_v40 = vmax.f32 %v1237_v61, %v1579_v18  ;;  %v1168_v1 = vpop.f32.mrb[123].mxu0  ;;  %v1585_v56 = vpop.f32.mrb[123].mxu1  ;;  %v7611_v60 = vpack.c.bf16 %v1792_v22, %v1790_v14  ;;  %v7624_v18 = vld [vmem:[%s8471_s3 + $0x280] ss:$8 sps:$4 sm:$0xff]   ;;  %v8792_v2 = vld [vmem:[#allocation77_spill] sm:$0xff] }
 0x1d1   :  { %v1240_v16 = vmax.f32 %v8790_v7, %v1168_v1  ;;  %v1655_v13 = vmax.f32 %v1238_v27, %v1581_v62  ;;  %v7617_v49 = vpack.c.bf16 %v1793_v41, %v1791_v36  ;;  %2637 = vmatpush1.bf16.msra.mxu0 %v7597_v29  ;;  %v8795_v52 = vld [vmem:[#allocation79_spill] sm:$0xff] }
 0x1d2   :  { %8787 = vst [vmem:[#allocation4_spill] sm:$0xff] %v7611_v60  ;;  %2408 = vmatpush1.bf16.msra.mxu1 %v7397_v38  ;;  %v1730_v10 = vadd.f32 %v6993_v51, %v1654_v40  ;;  %v1656_v47 = vmax.f32 %v1239_v50, %v1583_v9  ;;  %2638 = vmatprep.subr.bf16.mxu0 %v7606_v54  ;;  %v7632_v38 = vld [vmem:[%s8471_s3 + $0x294] ss:$8 sps:$4 sm:$0xff]   ;;  %v8793_v9 = vld [vmem:[#allocation78_spill] sm:$0xff]  ;;  %v7646_v40 = vld [vmem:[%s8471_s3 + $0x290] ss:$8 sps:$4 sm:$0xff]  }
 0x1d3   :  { %8791 = vst [vmem:[#allocation5_spill] sm:$0xff] %v7617_v49  ;;  %2683 = vmatprep.subr.bf16.mxu1 %v7407_v37  ;;  %v1731_v14 = vadd.f32 %v7000_v3, %v1655_v13  ;;  %v1657_v22 = vmax.f32 %v1240_v16, %v1585_v56  ;;  %v8794_v23 = vmax.f32 %v8792_v2, %v8793_v9 }
 0x1d4   :  { %v1732_v61 = vadd.f32 %v6993_v51, %v1656_v47  ;;  %v1794_v41 = vmax.f32 %v1730_v10, 0.0  ;;  %v8796_v10 = vld [vmem:[#allocation80_spill] sm:$0xff]  ;;  %v7656_v47 = vld [vmem:[%s8471_s3 + $0x2a4] ss:$8 sps:$4 sm:$0xff]  }
 0x1d5   :  { %2410 = vmatmul.mubr.bf16.vlgmr.msra.gmra.mrb[128].mxu1 %v7173_v43  ;;  %v1733_v62 = vadd.f32 %v7000_v3, %v1657_v22  ;;  %v1172_v37 = vpop.f32.mrb[124].mxu0  ;;  %v1589_v36 = vpop.f32.mrb[124].mxu1  ;;  %2639 = vmatpush1.bf16.msra.mxu0 %v7624_v18  ;;  %v8797_v45 = vmax.f32 %v8795_v52, %v8796_v10  ;;  %v8798_v22 = vld [vmem:[#allocation82_spill] sm:$0xff] }
 0x1d6   :  { %2419 = vmatprep.mubr.bf16.mxu1 %v7222_v48  ;;  %2684 = vmatpush1.bf16.msra.mxu1 %v7429_v17  ;;  %v1796_v27 = vmax.f32 %v1732_v61, 0.0  ;;  %v1241_v21 = vmax.f32 %v8794_v23, %v1172_v37  ;;  %v1174_v50 = vpop.f32.mrb[125].mxu0  ;;  %v1591_v1 = vpop.f32.mrb[125].mxu1  ;;  %v1795_v17 = vmax.f32 %v1731_v14, 0.0  ;;  %v8799_v61 = vld [vmem:[#allocation83_spill] sm:$0xff]  ;;  %v8801_v23 = vld [vmem:[#allocation84_spill] sm:$0xff] }
 0x1d7   :  { %2685 = vmatprep.subr.bf16.mxu1 %v7436_v4  ;;  %v1797_v56 = vmax.f32 %v1733_v62, 0.0  ;;  %v1242_v7 = vmax.f32 %v8797_v45, %v1174_v50  ;;  %v1176_v16 = vpop.f32.mrb[126].mxu0  ;;  %2640 = vmatprep.subr.bf16.mxu0 %v7632_v38  ;;  %v1593_v13 = vpop.f32.mrb[126].mxu1  ;;  %v8800_v37 = vmax.f32 %v8798_v22, %v8799_v61  ;;  %v8802_v50 = vld [vmem:[#allocation85_spill] sm:$0xff] }
 0x1d8   :  { %v1658_v2 = vmax.f32 %v1241_v21, %v1589_v36  ;;  %v1178_v14 = vpop.f32.mrb[127].mxu0  ;;  %v1595_v62 = vpop.f32.mrb[127].mxu1  ;;  %v7661_v9 = vpack.c.bf16 %v1796_v27, %v1794_v41  ;;  %v8803_v52 = vmax.f32 %v8801_v23, %v8802_v50  ;;  %v7674_v36 = vld [vmem:[%s8471_s3 + $0x2a0] ss:$8 sps:$4 sm:$0xff]   ;;  %v5824_v61 = vld [vmem:[%s8471_s3 + $0x374] ss:$8 sps:$4 sm:$0xff]  }
 0x1d9   :  { %v1243_v4 = vmax.f32 %v8800_v37, %v1176_v16  ;;  %v1659_v45 = vmax.f32 %v1242_v7, %v1591_v1  ;;  %v7667_v60 = vpack.c.bf16 %v1797_v56, %v1795_v17  ;;  %2641 = vmatpush1.bf16.msra.mxu0 %v7646_v40  ;;  %v5786_v56 = vld [vmem:[%s8471_s3 + $0x2b0] ss:$8 sps:$4 sm:$0xff]   ;;  %v5789_v16 = vld [vmem:[%s8471_s3 + $0x2c0] ss:$8 sps:$4 sm:$0xff]   ;;  %v5833_v23 = vld [vmem:[%s8471_s3 + $0x3a4] ss:$8 sps:$4 sm:$0xff]  }
 0x1da   :  { %v1244_v10 = vmax.f32 %v8803_v52, %v1178_v14  ;;  %2686 = vmatpush1.bf16.msra.mxu1 %v7451_v20  ;;  %v1734_v49 = vadd.f32 %v6993_v51, %v1658_v2  ;;  %2642 = vmatprep.subr.bf16.mxu0 %v7656_v47  ;;  %v7682_v20 = vld [vmem:[%s8471_s3 + $0x2b4] ss:$8 sps:$4 sm:$0xff]   ;;  %v5822_v37 = vld [vmem:[%s8471_s3 + $0x370] ss:$8 sps:$4 sm:$0xff]   ;;  %v5825_v2 = vld [vmem:[%s8471_s3 + $0x380] ss:$8 sps:$4 sm:$0xff]  }
 0x1db   :  { %v1660_v22 = vmax.f32 %v1243_v4, %v1593_v13  ;;  %2687 = vmatprep.subr.bf16.mxu1 %v7460_v53  ;;  %v1735_v41 = vadd.f32 %v7000_v3, %v1659_v45  ;;  %v5797_v13 = vld [vmem:[%s8471_s3 + $0x2e4] ss:$8 sps:$4 sm:$0xff]   ;;  %v5830_v14 = vld [vmem:[%s8471_s3 + $0x394] ss:$8 sps:$4 sm:$0xff]   ;;  %v5831_v50 = vld [vmem:[%s8471_s3 + $0x3a0] ss:$8 sps:$4 sm:$0xff]  }
 0x1dc   :  { %v1661_v27 = vmax.f32 %v1244_v10, %v1595_v62  ;;  %v1798_v53 = vmax.f32 %v1734_v49, 0.0  ;;  %v5827_v4 = vld [vmem:[%s8471_s3 + $0x384] ss:$8 sps:$4 sm:$0xff]   ;;  %v5828_v62 = vld [vmem:[%s8471_s3 + $0x390] ss:$8 sps:$4 sm:$0xff]  }
 0x1dd   :  { %v1736_v21 = vadd.f32 %v6993_v51, %v1660_v22  ;;  %2420 = vmatmul.mubr.bf16.gmra.mrb[132].mxu1 %v7217_v8  ;;  %2643 = vmatpush1.bf16.msra.mxu0 %v7674_v36  ;;  %v1799_v7 = vmax.f32 %v1735_v41, 0.0  ;;  %v5836_v52 = vld [vmem:[%s8471_s3 + $0x3b4] ss:$8 sps:$4 sm:$0xff]   ;;  %v5834_v10 = vld [vmem:[%s8471_s3 + $0x3b0] ss:$8 sps:$4 sm:$0xff]  }
 0x1de   :  { %v1737_v1 = vadd.f32 %v7000_v3, %v1661_v27  ;;  %2688 = vmatpush1.bf16.msra.mxu1 %v7479_v46  ;;  %2715 = vmatprep.mubr.bf16.mxu1 %v7270_v11  ;;  %v5791_v3 = vld [vmem:[%s8471_s3 + $0x2c4] ss:$8 sps:$4 sm:$0xff]   ;;  %v5837_v22 = vld [vmem:[%s8471_s3 + $0x3c0] ss:$8 sps:$4 sm:$0xff]   ;;  %v5840_v41 = vld [vmem:[%s8471_s3 + $0x3d0] ss:$8 sps:$4 sm:$0xff]  }
 0x1df   :  { %v1800_v17 = vmax.f32 %v1736_v21, 0.0  ;;  %2689 = vmatprep.subr.bf16.mxu1 %v7486_v24  ;;  %2644 = vmatprep.subr.bf16.mxu0 %v7682_v20  ;;  %v5794_v24 = vld [vmem:[%s8471_s3 + $0x2d4] ss:$8 sps:$4 sm:$0xff]   ;;  %v5839_v45 = vld [vmem:[%s8471_s3 + $0x3c4] ss:$8 sps:$4 sm:$0xff]  }
 0x1e0   :  { %v1801_v51 = vmax.f32 %v1737_v1, 0.0  ;;  %v5845_v27 = vld [vmem:[%s8471_s3 + $0x3e4] ss:$8 sps:$4 sm:$0xff]   ;;  %v5848_v21 = vld [vmem:[%s8471_s3 + $0x3f4] ss:$8 sps:$4 sm:$0xff]  }
 0x1e1   :  { %v7698_v46 = vpack.c.bf16 %v1800_v17, %v1798_v53  ;;  %2645 = vmatpush1.bf16.msra.mxu0 %v5786_v56  ;;  %v5846_v1 = vld [vmem:[%s8471_s3 + $0x3f0] ss:$8 sps:$4 sm:$0xff]   ;;  %v5851_v53 = vld [vmem:[%s8471_s3 + $0x404] ss:$8 sps:$4 sm:$0xff]   ;;  %v5849_v17 = vld [vmem:[%s8471_s3 + $0x400] ss:$8 sps:$4 sm:$0xff]  }
 0x1e2   :  { %2690 = vmatpush1.bf16.msra.mxu1 %v7501_v19  ;;  %v7701_v49 = vpack.c.bf16 %v1801_v51, %v1799_v7  ;;  %2646 = vmatprep.subr.bf16.mxu0 %v5791_v3  ;;  %v5792_v19 = vld [vmem:[%s8471_s3 + $0x2d0] ss:$8 sps:$4 sm:$0xff]   ;;  %v5857_v51 = vld [vmem:[%s8471_s3 + $0x424] ss:$8 sps:$4 sm:$0xff]  }
 0x1e3   :  { %2691 = vmatprep.subr.bf16.mxu1 %v7510_v25  ;;  %v5795_v25 = vld [vmem:[%s8471_s3 + $0x2e0] ss:$8 sps:$4 sm:$0xff]   ;;  %v5852_v7 = vld [vmem:[%s8471_s3 + $0x410] ss:$8 sps:$4 sm:$0xff]  }
 0x1e5   :  { %2647 = vmatpush1.bf16.msra.mxu0 %v5789_v16 }
 0x1e6   :  { %2692 = vmatpush1.bf16.msra.mxu1 %v7529_v33  ;;  %2648 = vmatprep.subr.bf16.mxu0 %v5794_v24  ;;  %v5800_v33 = vld [vmem:[%s8471_s3 + $0x2f4] ss:$8 sps:$4 sm:$0xff]  }
 0x1e7   :  { %2693 = vmatprep.subr.bf16.mxu1 %v7536_v42  ;;  %v5798_v42 = vld [vmem:[%s8471_s3 + $0x2f0] ss:$8 sps:$4 sm:$0xff]  }
 0x1e9   :  { %2649 = vmatpush1.bf16.msra.mxu0 %v5792_v19 }
 0x1ea   :  { %2694 = vmatpush1.bf16.msra.mxu1 %v7549_v34  ;;  %2650 = vmatprep.subr.bf16.mxu0 %v5797_v13  ;;  %v5803_v34 = vld [vmem:[%s8471_s3 + $0x304] ss:$8 sps:$4 sm:$0xff]  }
 0x1eb   :  { %2695 = vmatprep.subr.bf16.mxu1 %v7558_v5  ;;  %v5801_v5 = vld [vmem:[%s8471_s3 + $0x300] ss:$8 sps:$4 sm:$0xff]  }
 0x1ed   :  { %2651 = vmatpush1.bf16.msra.mxu0 %v5795_v25 }
 0x1ee   :  { %2696 = vmatpush1.bf16.msra.mxu1 %v7577_v12  ;;  %2652 = vmatprep.subr.bf16.mxu0 %v5800_v33  ;;  %v5806_v12 = vld [vmem:[%s8471_s3 + $0x314] ss:$8 sps:$4 sm:$0xff]  }
 0x1ef   :  { %2697 = vmatprep.subr.bf16.mxu1 %v7584_v28  ;;  %v5804_v28 = vld [vmem:[%s8471_s3 + $0x310] ss:$8 sps:$4 sm:$0xff]  }
 0x1f1   :  { %2653 = vmatpush1.bf16.msra.mxu0 %v5798_v42 }
 0x1f2   :  { %2698 = vmatpush1.bf16.msra.mxu1 %v7597_v29  ;;  %2936 = vmatprep.subr.bf16.mxu0 %v5803_v34  ;;  %v5809_v29 = vld [vmem:[%s8471_s3 + $0x324] ss:$8 sps:$4 sm:$0xff]  }
 0x1f3   :  { %2699 = vmatprep.subr.bf16.mxu1 %v7606_v54  ;;  %v5810_v54 = vld [vmem:[%s8471_s3 + $0x330] ss:$8 sps:$4 sm:$0xff]  }
 0x1f4   :  { %2655 = vmatmul.mubr.bf16.vlgmr.msra.gmra.mrb[128].mxu0 %v7085_v30  ;;  %v5807_v30 = vld [vmem:[%s8471_s3 + $0x320] ss:$8 sps:$4 sm:$0xff]  }
 0x1f5   :  { %2664 = vmatprep.mubr.bf16.mxu0 %v7143_v44  ;;  %2937 = vmatpush1.bf16.msra.mxu0 %v5801_v5  ;;  %v5812_v44 = vld [vmem:[%s8471_s3 + $0x334] ss:$8 sps:$4 sm:$0xff]  }
 0x1f6   :  { %2700 = vmatpush1.bf16.msra.mxu1 %v7624_v18  ;;  %2938 = vmatprep.subr.bf16.mxu0 %v5806_v12  ;;  %v5815_v18 = vld [vmem:[%s8471_s3 + $0x344] ss:$8 sps:$4 sm:$0xff]  }
 0x1f7   :  { %2701 = vmatprep.subr.bf16.mxu1 %v7632_v38  ;;  %v5816_v38 = vld [vmem:[%s8471_s3 + $0x350] ss:$8 sps:$4 sm:$0xff]  }
 0x1f9   :  { %2939 = vmatpush1.bf16.msra.mxu0 %v5804_v28 }
 0x1fa   :  { %2702 = vmatpush1.bf16.msra.mxu1 %v7646_v40  ;;  %2940 = vmatprep.subr.bf16.mxu0 %v5809_v29  ;;  %v5821_v40 = vld [vmem:[%s8471_s3 + $0x364] ss:$8 sps:$4 sm:$0xff]  }
 0x1fb   :  { %2703 = vmatprep.subr.bf16.mxu1 %v7656_v47  ;;  %v5819_v47 = vld [vmem:[%s8471_s3 + $0x360] ss:$8 sps:$4 sm:$0xff]  }
 0x1fc   :  { %2665 = vmatmul.mubr.bf16.gmra.mrb[132].mxu0 %v7132_v32  ;;  %v5813_v32 = vld [vmem:[%s8471_s3 + $0x340] ss:$8 sps:$4 sm:$0xff]  }
 0x1fd   :  { %2941 = vmatpush1.bf16.msra.mxu0 %v5807_v30  ;;  %2968 = vmatprep.mubr.bf16.mxu0 %v7187_v55  ;;  %v5818_v55 = vld [vmem:[%s8471_s3 + $0x354] ss:$8 sps:$4 sm:$0xff]  }
 0x1fe   :  { %2704 = vmatpush1.bf16.msra.mxu1 %v7674_v36  ;;  %2942 = vmatprep.subr.bf16.mxu0 %v5812_v44  ;;  %v5842_v36 = vld [vmem:[%s8471_s3 + $0x3d4] ss:$8 sps:$4 sm:$0xff]  }
 0x1ff   :  { %2705 = vmatprep.subr.bf16.mxu1 %v7682_v20  ;;  %v5843_v20 = vld [vmem:[%s8471_s3 + $0x3e0] ss:$8 sps:$4 sm:$0xff]  }
 0x201   :  { %2943 = vmatpush1.bf16.msra.mxu0 %v5810_v54 }
 0x202   :  { %2706 = vmatpush1.bf16.msra.mxu1 %v5786_v56  ;;  %2944 = vmatprep.subr.bf16.mxu0 %v5815_v18  ;;  %v5854_v56 = vld [vmem:[%s8471_s3 + $0x414] ss:$8 sps:$4 sm:$0xff]  }
 0x203   :  { %2707 = vmatprep.subr.bf16.mxu1 %v5791_v3  ;;  %v5860_v3 = vld [vmem:[%s8471_s3 + $0x434] ss:$8 sps:$4 sm:$0xff]  }
 0x205   :  { %2945 = vmatpush1.bf16.msra.mxu0 %v5813_v32 }
 0x206   :  { %2708 = vmatpush1.bf16.msra.mxu1 %v5789_v16  ;;  %2946 = vmatprep.subr.bf16.mxu0 %v5818_v55  ;;  %v5858_v16 = vld [vmem:[%s8471_s3 + $0x430] ss:$8 sps:$4 sm:$0xff]  }
 0x207   :  { %2709 = vmatprep.subr.bf16.mxu1 %v5794_v24  ;;  %v5863_v24 = vld [vmem:[%s8471_s3 + $0x444] ss:$8 sps:$4 sm:$0xff]  }
 0x209   :  { %2947 = vmatpush1.bf16.msra.mxu0 %v5816_v38 }
 0x20a   :  { %2710 = vmatpush1.bf16.msra.mxu1 %v5792_v19  ;;  %2948 = vmatprep.subr.bf16.mxu0 %v5821_v40  ;;  %v5861_v19 = vld [vmem:[%s8471_s3 + $0x440] ss:$8 sps:$4 sm:$0xff]  }
 0x20b   :  { %2711 = vmatprep.subr.bf16.mxu1 %v5797_v13  ;;  %v5864_v13 = vld [vmem:[%s8471_s3 + $0x450] ss:$8 sps:$4 sm:$0xff]  }
 0x20d   :  { %2949 = vmatpush1.bf16.msra.mxu0 %v5819_v47 }
 0x20e   :  { %2712 = vmatpush1.bf16.msra.mxu1 %v5795_v25  ;;  %2950 = vmatprep.subr.bf16.mxu0 %v5824_v61  ;;  %v5869_v25 = vld [vmem:[%s8471_s3 + $0x464] ss:$8 sps:$4 sm:$0xff]  }
 0x20f   :  { %2713 = vmatprep.subr.bf16.mxu1 %v5800_v33  ;;  %v5867_v33 = vld [vmem:[%s8471_s3 + $0x460] ss:$8 sps:$4 sm:$0xff]  }
 0x211   :  { %2951 = vmatpush1.bf16.msra.mxu0 %v5822_v37 }
 0x212   :  { %2714 = vmatpush1.bf16.msra.mxu1 %v5798_v42  ;;  %2952 = vmatprep.subr.bf16.mxu0 %v5827_v4  ;;  %v5872_v42 = vld [vmem:[%s8471_s3 + $0x474] ss:$8 sps:$4 sm:$0xff]  }
 0x213   :  { %2997 = vmatprep.subr.bf16.mxu1 %v5803_v34  ;;  %v5870_v34 = vld [vmem:[%s8471_s3 + $0x470] ss:$8 sps:$4 sm:$0xff]  }
 0x215   :  { %2716 = vmatmul.mubr.bf16.vlgmr.msra.gmra.mrb[128].mxu1 %v7265_v6  ;;  %2953 = vmatpush1.bf16.msra.mxu0 %v5825_v2 }
 0x216   :  { %2725 = vmatprep.mubr.bf16.mxu1 %v7331_v63  ;;  %2998 = vmatpush1.bf16.msra.mxu1 %v5801_v5  ;;  %v5875_v5 = vld [vmem:[%s8471_s3 + $0x484] ss:$8 sps:$4 sm:$0xff]  }
 0x217   :  { %2999 = vmatprep.subr.bf16.mxu1 %v5806_v12  ;;  %2954 = vmatprep.subr.bf16.mxu0 %v5830_v14  ;;  %v5873_v12 = vld [vmem:[%s8471_s3 + $0x480] ss:$8 sps:$4 sm:$0xff]  }
 0x219   :  { %2955 = vmatpush1.bf16.msra.mxu0 %v5828_v62 }
 0x21a   :  { %3000 = vmatpush1.bf16.msra.mxu1 %v5804_v28  ;;  %2956 = vmatprep.subr.bf16.mxu0 %v5833_v23  ;;  %v5878_v28 = vld [vmem:[%s8471_s3 + $0x494] ss:$8 sps:$4 sm:$0xff]  }
 0x21b   :  { %3001 = vmatprep.subr.bf16.mxu1 %v5809_v29  ;;  %v8804_v29 = vld [vmem:[#allocation2_spill] sm:$0xff] }
 0x21d   :  { %2726 = vmatmul.mubr.bf16.gmra.mrb[132].mxu1 %v7319_v39  ;;  %2957 = vmatpush1.bf16.msra.mxu0 %v5831_v50 }
 0x21e   :  { %3002 = vmatpush1.bf16.msra.mxu1 %v5807_v30  ;;  %3029 = vmatprep.mubr.bf16.mxu1 %v7379_v0  ;;  %v5876_v30 = vld [vmem:[%s8471_s3 + $0x490] ss:$8 sps:$4 sm:$0xff]  }
 0x21f   :  { %3003 = vmatprep.subr.bf16.mxu1 %v5812_v44  ;;  %2958 = vmatprep.subr.bf16.mxu0 %v5836_v52  ;;  %v5881_v44 = vld [vmem:[%s8471_s3 + $0x4a4] ss:$8 sps:$4 sm:$0xff]  }
 0x221   :  { %2959 = vmatpush1.bf16.msra.mxu0 %v5834_v10 }
 0x222   :  { %3004 = vmatpush1.bf16.msra.mxu1 %v5810_v54  ;;  %2960 = vmatprep.subr.bf16.mxu0 %v5839_v45  ;;  %v5879_v54 = vld [vmem:[%s8471_s3 + $0x4a0] ss:$8 sps:$4 sm:$0xff]  }
 0x223   :  { %3005 = vmatprep.subr.bf16.mxu1 %v5815_v18  ;;  %v5884_v18 = vld [vmem:[%s8471_s3 + $0x4b4] ss:$8 sps:$4 sm:$0xff]  }
 0x225   :  { %2961 = vmatpush1.bf16.msra.mxu0 %v5837_v22 }
 0x226   :  { %3006 = vmatpush1.bf16.msra.mxu1 %v5813_v32  ;;  %2962 = vmatprep.subr.bf16.mxu0 %v5842_v36  ;;  %v5882_v32 = vld [vmem:[%s8471_s3 + $0x4b0] ss:$8 sps:$4 sm:$0xff]  }
 0x227   :  { %3007 = vmatprep.subr.bf16.mxu1 %v5818_v55  ;;  %v5887_v55 = vld [vmem:[%s8471_s3 + $0x4c4] ss:$8 sps:$4 sm:$0xff]  }
 0x229   :  { %2963 = vmatpush1.bf16.msra.mxu0 %v5840_v41 }
 0x22a   :  { %3008 = vmatpush1.bf16.msra.mxu1 %v5816_v38  ;;  %2964 = vmatprep.subr.bf16.mxu0 %v5845_v27  ;;  %v5885_v38 = vld [vmem:[%s8471_s3 + $0x4c0] ss:$8 sps:$4 sm:$0xff]  }
 0x22b   :  { %3009 = vmatprep.subr.bf16.mxu1 %v5821_v40  ;;  %v5890_v40 = vld [vmem:[%s8471_s3 + $0x4d4] ss:$8 sps:$4 sm:$0xff]  }
 0x22d   :  { %2965 = vmatpush1.bf16.msra.mxu0 %v5843_v20 }
 0x22e   :  { %3010 = vmatpush1.bf16.msra.mxu1 %v5819_v47  ;;  %2966 = vmatprep.subr.bf16.mxu0 %v5848_v21  ;;  %v5888_v47 = vld [vmem:[%s8471_s3 + $0x4d0] ss:$8 sps:$4 sm:$0xff]  }
 0x22f   :  { %3011 = vmatprep.subr.bf16.mxu1 %v5824_v61  ;;  %v5893_v61 = vld [vmem:[%s8471_s3 + $0x4e4] ss:$8 sps:$4 sm:$0xff]  }
 0x231   :  { %2967 = vmatpush1.bf16.msra.mxu0 %v5846_v1 }
 0x232   :  { %3012 = vmatpush1.bf16.msra.mxu1 %v5822_v37  ;;  %3250 = vmatprep.subr.bf16.mxu0 %v5851_v53  ;;  %v5891_v37 = vld [vmem:[%s8471_s3 + $0x4e0] ss:$8 sps:$4 sm:$0xff]  }
 0x233   :  { %3013 = vmatprep.subr.bf16.mxu1 %v5827_v4  ;;  %v5896_v4 = vld [vmem:[%s8471_s3 + $0x4f4] ss:$8 sps:$4 sm:$0xff]  }
 0x234   :  { %2969 = vmatmul.mubr.bf16.vlgmr.msra.gmra.mrb[128].mxu0 %v7173_v43  ;;  %v5855_v43 = vld [vmem:[%s8471_s3 + $0x420] ss:$8 sps:$4 sm:$0xff]  }
 0x235   :  { %2978 = vmatprep.mubr.bf16.mxu0 %v7222_v48  ;;  %3251 = vmatpush1.bf16.msra.mxu0 %v5849_v17 }
 0x236   :  { %3014 = vmatpush1.bf16.msra.mxu1 %v5825_v2  ;;  %3252 = vmatprep.subr.bf16.mxu0 %v5854_v56  ;;  %v5894_v2 = vld [vmem:[%s8471_s3 + $0x4f0] ss:$8 sps:$4 sm:$0xff]  }
 0x237   :  { %3015 = vmatprep.subr.bf16.mxu1 %v5830_v14  ;;  %v5899_v14 = vld [vmem:[%s8471_s3 + $0x504] ss:$8 sps:$4 sm:$0xff]  }
 0x239   :  { %3253 = vmatpush1.bf16.msra.mxu0 %v5852_v7 }
 0x23a   :  { %3016 = vmatpush1.bf16.msra.mxu1 %v5828_v62  ;;  %3254 = vmatprep.subr.bf16.mxu0 %v5857_v51  ;;  %v5897_v62 = vld [vmem:[%s8471_s3 + $0x500] ss:$8 sps:$4 sm:$0xff]  }
 0x23b   :  { %3017 = vmatprep.subr.bf16.mxu1 %v5833_v23  ;;  %v5902_v23 = vld [vmem:[%s8471_s3 + $0x514] ss:$8 sps:$4 sm:$0xff]  }
 0x23c   :  { %2979 = vmatmul.mubr.bf16.gmra.mrb[132].mxu0 %v7217_v8 }
 0x23d   :  { %3255 = vmatpush1.bf16.msra.mxu0 %v5855_v43  ;;  %3282 = vmatprep.mubr.bf16.mxu0 %v7222_v48  ;;  %v5866_v48 = vld [vmem:[%s8471_s3 + $0x454] ss:$8 sps:$4 sm:$0xff]  }
 0x23e   :  { %3018 = vmatpush1.bf16.msra.mxu1 %v5831_v50  ;;  %3256 = vmatprep.subr.bf16.mxu0 %v5860_v3  ;;  %v5900_v50 = vld [vmem:[%s8471_s3 + $0x510] ss:$8 sps:$4 sm:$0xff]  }
 0x23f   :  { %3019 = vmatprep.subr.bf16.mxu1 %v5836_v52  ;;  %v5905_v52 = vld [vmem:[%s8471_s3 + $0x524] ss:$8 sps:$4 sm:$0xff]  }
 0x241   :  { %3257 = vmatpush1.bf16.msra.mxu0 %v5858_v16 }
 0x242   :  { %3020 = vmatpush1.bf16.msra.mxu1 %v5834_v10  ;;  %3258 = vmatprep.subr.bf16.mxu0 %v5863_v24  ;;  %v5908_v10 = vld [vmem:[%s8471_s3 + $0x534] ss:$8 sps:$4 sm:$0xff]  }
 0x243   :  { %3021 = vmatprep.subr.bf16.mxu1 %v5839_v45  ;;  %v5906_v45 = vld [vmem:[%s8471_s3 + $0x530] ss:$8 sps:$4 sm:$0xff]  }
 0x245   :  { %3259 = vmatpush1.bf16.msra.mxu0 %v5861_v19 }
 0x246   :  { %3022 = vmatpush1.bf16.msra.mxu1 %v5837_v22  ;;  %3260 = vmatprep.subr.bf16.mxu0 %v5866_v48  ;;  %v5911_v22 = vld [vmem:[%s8471_s3 + $0x544] ss:$8 sps:$4 sm:$0xff]  }
 0x247   :  { %3023 = vmatprep.subr.bf16.mxu1 %v5842_v36  ;;  %v5909_v36 = vld [vmem:[%s8471_s3 + $0x540] ss:$8 sps:$4 sm:$0xff]  }
 0x249   :  { %3261 = vmatpush1.bf16.msra.mxu0 %v5864_v13 }
 0x24a   :  { %3024 = vmatpush1.bf16.msra.mxu1 %v5840_v41  ;;  %3262 = vmatprep.subr.bf16.mxu0 %v5869_v25  ;;  %v5912_v41 = vld [vmem:[%s8471_s3 + $0x550] ss:$8 sps:$4 sm:$0xff]  }
 0x24b   :  { %3025 = vmatprep.subr.bf16.mxu1 %v5845_v27  ;;  %v5917_v27 = vld [vmem:[%s8471_s3 + $0x564] ss:$8 sps:$4 sm:$0xff]  }
 0x24d   :  { %3263 = vmatpush1.bf16.msra.mxu0 %v5867_v33 }
 0x24e   :  { %3026 = vmatpush1.bf16.msra.mxu1 %v5843_v20  ;;  %3264 = vmatprep.subr.bf16.mxu0 %v5872_v42  ;;  %v5915_v20 = vld [vmem:[%s8471_s3 + $0x560] ss:$8 sps:$4 sm:$0xff]  }
 0x24f   :  { %3027 = vmatprep.subr.bf16.mxu1 %v5848_v21  ;;  %v5920_v21 = vld [vmem:[%s8471_s3 + $0x574] ss:$8 sps:$4 sm:$0xff]  }
 0x251   :  { %3265 = vmatpush1.bf16.msra.mxu0 %v5870_v34 }
 0x252   :  { %3028 = vmatpush1.bf16.msra.mxu1 %v5846_v1  ;;  %3266 = vmatprep.subr.bf16.mxu0 %v5875_v5  ;;  %v5918_v1 = vld [vmem:[%s8471_s3 + $0x570] ss:$8 sps:$4 sm:$0xff]  }
 0x253   :  { %3311 = vmatprep.subr.bf16.mxu1 %v5851_v53  ;;  %v5923_v53 = vld [vmem:[%s8471_s3 + $0x584] ss:$8 sps:$4 sm:$0xff]  }
 0x255   :  { %3030 = vmatmul.mubr.bf16.vlgmr.msra.gmra.mrb[128].mxu1 %v8804_v29  ;;  %3267 = vmatpush1.bf16.msra.mxu0 %v5873_v12 }
 0x256   :  { %3039 = vmatprep.mubr.bf16.mxu1 %v7417_v59  ;;  %3312 = vmatpush1.bf16.msra.mxu1 %v5849_v17  ;;  %v5921_v17 = vld [vmem:[%s8471_s3 + $0x580] ss:$8 sps:$4 sm:$0xff]  }
 0x257   :  { %3313 = vmatprep.subr.bf16.mxu1 %v5854_v56  ;;  %3268 = vmatprep.subr.bf16.mxu0 %v5878_v28  ;;  %v5926_v56 = vld [vmem:[%s8471_s3 + $0x594] ss:$8 sps:$4 sm:$0xff]  }
 0x259   :  { %3269 = vmatpush1.bf16.msra.mxu0 %v5876_v30 }
 0x25a   :  { %3314 = vmatpush1.bf16.msra.mxu1 %v5852_v7  ;;  %3270 = vmatprep.subr.bf16.mxu0 %v5881_v44  ;;  %v5924_v7 = vld [vmem:[%s8471_s3 + $0x590] ss:$8 sps:$4 sm:$0xff]  }
 0x25b   :  { %3315 = vmatprep.subr.bf16.mxu1 %v5857_v51  ;;  %v5929_v51 = vld [vmem:[%s8471_s3 + $0x5a4] ss:$8 sps:$4 sm:$0xff]  }
 0x25d   :  { %3040 = vmatmul.mubr.bf16.gmra.mrb[132].mxu1 %v7412_v35  ;;  %3271 = vmatpush1.bf16.msra.mxu0 %v5879_v54 }
 0x25e   :  { %3316 = vmatpush1.bf16.msra.mxu1 %v5855_v43  ;;  %3343 = vmatprep.mubr.bf16.mxu1 %v7417_v59  ;;  %v5927_v43 = vld [vmem:[%s8471_s3 + $0x5a0] ss:$8 sps:$4 sm:$0xff]  }
 0x25f   :  { %3317 = vmatprep.subr.bf16.mxu1 %v5860_v3  ;;  %3272 = vmatprep.subr.bf16.mxu0 %v5884_v18  ;;  %v5932_v3 = vld [vmem:[%s8471_s3 + $0x5b4] ss:$8 sps:$4 sm:$0xff]  }
 0x261   :  { %3273 = vmatpush1.bf16.msra.mxu0 %v5882_v32 }
 0x262   :  { %3318 = vmatpush1.bf16.msra.mxu1 %v5858_v16  ;;  %3274 = vmatprep.subr.bf16.mxu0 %v5887_v55  ;;  %v5930_v16 = vld [vmem:[%s8471_s3 + $0x5b0] ss:$8 sps:$4 sm:$0xff]  }
 0x263   :  { %3319 = vmatprep.subr.bf16.mxu1 %v5863_v24  ;;  %v5935_v24 = vld [vmem:[%s8471_s3 + $0x5c4] ss:$8 sps:$4 sm:$0xff]  }
 0x265   :  { %3275 = vmatpush1.bf16.msra.mxu0 %v5885_v38 }
 0x266   :  { %3320 = vmatpush1.bf16.msra.mxu1 %v5861_v19  ;;  %3276 = vmatprep.subr.bf16.mxu0 %v5890_v40  ;;  %v5933_v19 = vld [vmem:[%s8471_s3 + $0x5c0] ss:$8 sps:$4 sm:$0xff]  }
 0x267   :  { %3321 = vmatprep.subr.bf16.mxu1 %v5866_v48  ;;  %v5938_v48 = vld [vmem:[%s8471_s3 + $0x5d4] ss:$8 sps:$4 sm:$0xff]  }
 0x269   :  { %3277 = vmatpush1.bf16.msra.mxu0 %v5888_v47 }
 0x26a   :  { %3322 = vmatpush1.bf16.msra.mxu1 %v5864_v13  ;;  %3278 = vmatprep.subr.bf16.mxu0 %v5893_v61  ;;  %v5936_v13 = vld [vmem:[%s8471_s3 + $0x5d0] ss:$8 sps:$4 sm:$0xff]  }
 0x26b   :  { %3323 = vmatprep.subr.bf16.mxu1 %v5869_v25  ;;  %v5941_v25 = vld [vmem:[%s8471_s3 + $0x5e4] ss:$8 sps:$4 sm:$0xff]  }
 0x26d   :  { %3279 = vmatpush1.bf16.msra.mxu0 %v5891_v37 }
 0x26e   :  { %3324 = vmatpush1.bf16.msra.mxu1 %v5867_v33  ;;  %3280 = vmatprep.subr.bf16.mxu0 %v5896_v4  ;;  %v5939_v33 = vld [vmem:[%s8471_s3 + $0x5e0] ss:$8 sps:$4 sm:$0xff]  }
 0x26f   :  { %3325 = vmatprep.subr.bf16.mxu1 %v5872_v42  ;;  %v5944_v42 = vld [vmem:[%s8471_s3 + $0x5f4] ss:$8 sps:$4 sm:$0xff]  }
 0x271   :  { %3281 = vmatpush1.bf16.msra.mxu0 %v5894_v2 }
 0x272   :  { %3326 = vmatpush1.bf16.msra.mxu1 %v5870_v34  ;;  %3564 = vmatprep.subr.bf16.mxu0 %v5899_v14  ;;  %v5942_v34 = vld [vmem:[%s8471_s3 + $0x5f0] ss:$8 sps:$4 sm:$0xff]  }
 0x273   :  { %3327 = vmatprep.subr.bf16.mxu1 %v5875_v5  ;;  %v5947_v5 = vld [vmem:[%s8471_s3 + $0x604] ss:$8 sps:$4 sm:$0xff]  }
 0x274   :  { %3283 = vmatmul.mubr.bf16.vlgmr.msra.gmra.mrb[128].mxu0 %v7217_v8  ;;  %v5903_v8 = vld [vmem:[%s8471_s3 + $0x520] ss:$8 sps:$4 sm:$0xff]  }
 0x275   :  { %3292 = vmatprep.mubr.bf16.mxu0 %v7270_v11  ;;  %3565 = vmatpush1.bf16.msra.mxu0 %v5897_v62 }
 0x276   :  { %3328 = vmatpush1.bf16.msra.mxu1 %v5873_v12  ;;  %3566 = vmatprep.subr.bf16.mxu0 %v5902_v23  ;;  %v5945_v12 = vld [vmem:[%s8471_s3 + $0x600] ss:$8 sps:$4 sm:$0xff]  }
 0x277   :  { %3329 = vmatprep.subr.bf16.mxu1 %v5878_v28  ;;  %v5950_v28 = vld [vmem:[%s8471_s3 + $0x614] ss:$8 sps:$4 sm:$0xff]  }
 0x279   :  { %3567 = vmatpush1.bf16.msra.mxu0 %v5900_v50 }
 0x27a   :  { %3330 = vmatpush1.bf16.msra.mxu1 %v5876_v30  ;;  %3568 = vmatprep.subr.bf16.mxu0 %v5905_v52  ;;  %v5948_v30 = vld [vmem:[%s8471_s3 + $0x610] ss:$8 sps:$4 sm:$0xff]  }
 0x27b   :  { %3331 = vmatprep.subr.bf16.mxu1 %v5881_v44  ;;  %v5953_v44 = vld [vmem:[%s8471_s3 + $0x624] ss:$8 sps:$4 sm:$0xff]  }
 0x27c   :  { %3293 = vmatmul.mubr.bf16.gmra.mrb[132].mxu0 %v7265_v6 }
 0x27d   :  { %3569 = vmatpush1.bf16.msra.mxu0 %v5903_v8  ;;  %3596 = vmatprep.mubr.bf16.mxu0 %v7270_v11  ;;  %v5914_v11 = vld [vmem:[%s8471_s3 + $0x554] ss:$8 sps:$4 sm:$0xff]  }
 0x27e   :  { %3332 = vmatpush1.bf16.msra.mxu1 %v5879_v54  ;;  %3570 = vmatprep.subr.bf16.mxu0 %v5908_v10  ;;  %v5954_v54 = vld [vmem:[%s8471_s3 + $0x630] ss:$8 sps:$4 sm:$0xff]  }
 0x27f   :  { %3333 = vmatprep.subr.bf16.mxu1 %v5884_v18  ;;  %v5959_v18 = vld [vmem:[%s8471_s3 + $0x644] ss:$8 sps:$4 sm:$0xff]  }
 0x281   :  { %3571 = vmatpush1.bf16.msra.mxu0 %v5906_v45 }
 0x282   :  { %3334 = vmatpush1.bf16.msra.mxu1 %v5882_v32  ;;  %3572 = vmatprep.subr.bf16.mxu0 %v5911_v22  ;;  %v5960_v32 = vld [vmem:[%s8471_s3 + $0x650] ss:$8 sps:$4 sm:$0xff]  }
 0x283   :  { %3335 = vmatprep.subr.bf16.mxu1 %v5887_v55  ;;  %v5965_v55 = vld [vmem:[%s8471_s3 + $0x664] ss:$8 sps:$4 sm:$0xff]  }
 0x285   :  { %3573 = vmatpush1.bf16.msra.mxu0 %v5909_v36 }
 0x286   :  { %3336 = vmatpush1.bf16.msra.mxu1 %v5885_v38  ;;  %3574 = vmatprep.subr.bf16.mxu0 %v5914_v11  ;;  %v5963_v38 = vld [vmem:[%s8471_s3 + $0x660] ss:$8 sps:$4 sm:$0xff]  }
 0x287   :  { %3337 = vmatprep.subr.bf16.mxu1 %v5890_v40  ;;  %v5968_v40 = vld [vmem:[%s8471_s3 + $0x674] ss:$8 sps:$4 sm:$0xff]  }
 0x289   :  { %3575 = vmatpush1.bf16.msra.mxu0 %v5912_v41 }
 0x28a   :  { %3338 = vmatpush1.bf16.msra.mxu1 %v5888_v47  ;;  %3576 = vmatprep.subr.bf16.mxu0 %v5917_v27  ;;  %v5966_v47 = vld [vmem:[%s8471_s3 + $0x670] ss:$8 sps:$4 sm:$0xff]  }
 0x28b   :  { %3339 = vmatprep.subr.bf16.mxu1 %v5893_v61  ;;  %v5971_v61 = vld [vmem:[%s8471_s3 + $0x684] ss:$8 sps:$4 sm:$0xff]  }
 0x28d   :  { %3577 = vmatpush1.bf16.msra.mxu0 %v5915_v20 }
 0x28e   :  { %3340 = vmatpush1.bf16.msra.mxu1 %v5891_v37  ;;  %3578 = vmatprep.subr.bf16.mxu0 %v5920_v21  ;;  %v5969_v37 = vld [vmem:[%s8471_s3 + $0x680] ss:$8 sps:$4 sm:$0xff]  }
 0x28f   :  { %3341 = vmatprep.subr.bf16.mxu1 %v5896_v4  ;;  %v5974_v4 = vld [vmem:[%s8471_s3 + $0x694] ss:$8 sps:$4 sm:$0xff]  }
 0x291   :  { %3579 = vmatpush1.bf16.msra.mxu0 %v5918_v1 }
 0x292   :  { %3342 = vmatpush1.bf16.msra.mxu1 %v5894_v2  ;;  %3580 = vmatprep.subr.bf16.mxu0 %v5923_v53  ;;  %v5972_v2 = vld [vmem:[%s8471_s3 + $0x690] ss:$8 sps:$4 sm:$0xff]  }
 0x293   :  { %3625 = vmatprep.subr.bf16.mxu1 %v5899_v14  ;;  %v5977_v14 = vld [vmem:[%s8471_s3 + $0x6a4] ss:$8 sps:$4 sm:$0xff]  }
 0x295   :  { %3344 = vmatmul.mubr.bf16.vlgmr.msra.gmra.mrb[128].mxu1 %v7412_v35  ;;  %3581 = vmatpush1.bf16.msra.mxu0 %v5921_v17 }
 0x296   :  { %3353 = vmatprep.mubr.bf16.mxu1 %v7467_v58  ;;  %3626 = vmatpush1.bf16.msra.mxu1 %v5897_v62  ;;  %v5975_v62 = vld [vmem:[%s8471_s3 + $0x6a0] ss:$8 sps:$4 sm:$0xff]  }
 0x297   :  { %3627 = vmatprep.subr.bf16.mxu1 %v5902_v23  ;;  %3582 = vmatprep.subr.bf16.mxu0 %v5926_v56  ;;  %v5980_v23 = vld [vmem:[%s8471_s3 + $0x6b4] ss:$8 sps:$4 sm:$0xff]  }
 0x299   :  { %3583 = vmatpush1.bf16.msra.mxu0 %v5924_v7 }
 0x29a   :  { %3628 = vmatpush1.bf16.msra.mxu1 %v5900_v50  ;;  %3584 = vmatprep.subr.bf16.mxu0 %v5929_v51  ;;  %v5978_v50 = vld [vmem:[%s8471_s3 + $0x6b0] ss:$8 sps:$4 sm:$0xff]  }
 0x29b   :  { %3629 = vmatprep.subr.bf16.mxu1 %v5905_v52  ;;  %v5983_v52 = vld [vmem:[%s8471_s3 + $0x6c4] ss:$8 sps:$4 sm:$0xff]  }
 0x29d   :  { %3354 = vmatmul.mubr.bf16.gmra.mrb[132].mxu1 %v7462_v57  ;;  %3585 = vmatpush1.bf16.msra.mxu0 %v5927_v43 }
 0x29e   :  { %3630 = vmatpush1.bf16.msra.mxu1 %v5903_v8  ;;  %3657 = vmatprep.mubr.bf16.mxu1 %v7467_v58  ;;  %v5981_v8 = vld [vmem:[%s8471_s3 + $0x6c0] ss:$8 sps:$4 sm:$0xff]  }
 0x29f   :  { %3631 = vmatprep.subr.bf16.mxu1 %v5908_v10  ;;  %3586 = vmatprep.subr.bf16.mxu0 %v5932_v3  ;;  %v5984_v10 = vld [vmem:[%s8471_s3 + $0x6d0] ss:$8 sps:$4 sm:$0xff]  }
 0x2a1   :  { %3587 = vmatpush1.bf16.msra.mxu0 %v5930_v16 }
 0x2a2   :  { %3632 = vmatpush1.bf16.msra.mxu1 %v5906_v45  ;;  %3588 = vmatprep.subr.bf16.mxu0 %v5935_v24  ;;  %v5989_v45 = vld [vmem:[%s8471_s3 + $0x6e4] ss:$8 sps:$4 sm:$0xff]  }
 0x2a3   :  { %3633 = vmatprep.subr.bf16.mxu1 %v5911_v22  ;;  %v5987_v22 = vld [vmem:[%s8471_s3 + $0x6e0] ss:$8 sps:$4 sm:$0xff]  }
 0x2a5   :  { %3589 = vmatpush1.bf16.msra.mxu0 %v5933_v19 }
 0x2a6   :  { %3634 = vmatpush1.bf16.msra.mxu1 %v5909_v36  ;;  %3590 = vmatprep.subr.bf16.mxu0 %v5938_v48  ;;  %v5992_v36 = vld [vmem:[%s8471_s3 + $0x6f4] ss:$8 sps:$4 sm:$0xff]  }
 0x2a7   :  { %3635 = vmatprep.subr.bf16.mxu1 %v5914_v11  ;;  %v5990_v11 = vld [vmem:[%s8471_s3 + $0x6f0] ss:$8 sps:$4 sm:$0xff]  }
 0x2a9   :  { %3591 = vmatpush1.bf16.msra.mxu0 %v5936_v13 }
 0x2aa   :  { %3636 = vmatpush1.bf16.msra.mxu1 %v5912_v41  ;;  %3592 = vmatprep.subr.bf16.mxu0 %v5941_v25  ;;  %v5995_v41 = vld [vmem:[%s8471_s3 + $0x704] ss:$8 sps:$4 sm:$0xff]  }
 0x2ab   :  { %3637 = vmatprep.subr.bf16.mxu1 %v5917_v27  ;;  %v5993_v27 = vld [vmem:[%s8471_s3 + $0x700] ss:$8 sps:$4 sm:$0xff]  }
 0x2ad   :  { %3593 = vmatpush1.bf16.msra.mxu0 %v5939_v33 }
 0x2ae   :  { %3638 = vmatpush1.bf16.msra.mxu1 %v5915_v20  ;;  %3594 = vmatprep.subr.bf16.mxu0 %v5944_v42  ;;  %v5998_v20 = vld [vmem:[%s8471_s3 + $0x714] ss:$8 sps:$4 sm:$0xff]  }
 0x2af   :  { %3639 = vmatprep.subr.bf16.mxu1 %v5920_v21  ;;  %v5996_v21 = vld [vmem:[%s8471_s3 + $0x710] ss:$8 sps:$4 sm:$0xff]  }
 0x2b1   :  { %3595 = vmatpush1.bf16.msra.mxu0 %v5942_v34 }
 0x2b2   :  { %3640 = vmatpush1.bf16.msra.mxu1 %v5918_v1  ;;  %3878 = vmatprep.subr.bf16.mxu0 %v5947_v5  ;;  %v6001_v1 = vld [vmem:[%s8471_s3 + $0x724] ss:$8 sps:$4 sm:$0xff]  }
 0x2b3   :  { %3641 = vmatprep.subr.bf16.mxu1 %v5923_v53  ;;  %v6004_v53 = vld [vmem:[%s8471_s3 + $0x734] ss:$8 sps:$4 sm:$0xff]  }
 0x2b4   :  { %3597 = vmatmul.mubr.bf16.vlgmr.msra.gmra.mrb[128].mxu0 %v7265_v6  ;;  %v5951_v6 = vld [vmem:[%s8471_s3 + $0x620] ss:$8 sps:$4 sm:$0xff]  }
 0x2b5   :  { %3606 = vmatprep.mubr.bf16.mxu0 %v7331_v63  ;;  %3879 = vmatpush1.bf16.msra.mxu0 %v5945_v12  ;;  %v5956_v63 = vld [vmem:[%s8471_s3 + $0x634] ss:$8 sps:$4 sm:$0xff]  }
 0x2b6   :  { %3642 = vmatpush1.bf16.msra.mxu1 %v5921_v17  ;;  %3880 = vmatprep.subr.bf16.mxu0 %v5950_v28  ;;  %v6002_v17 = vld [vmem:[%s8471_s3 + $0x730] ss:$8 sps:$4 sm:$0xff]  }
 0x2b7   :  { %3643 = vmatprep.subr.bf16.mxu1 %v5926_v56  ;;  %v6007_v56 = vld [vmem:[%s8471_s3 + $0x744] ss:$8 sps:$4 sm:$0xff]  }
 0x2b9   :  { %3881 = vmatpush1.bf16.msra.mxu0 %v5948_v30 }
 0x2ba   :  { %3644 = vmatpush1.bf16.msra.mxu1 %v5924_v7  ;;  %3882 = vmatprep.subr.bf16.mxu0 %v5953_v44  ;;  %v6005_v7 = vld [vmem:[%s8471_s3 + $0x740] ss:$8 sps:$4 sm:$0xff]  }
 0x2bb   :  { %3645 = vmatprep.subr.bf16.mxu1 %v5929_v51  ;;  %v6008_v51 = vld [vmem:[%s8471_s3 + $0x750] ss:$8 sps:$4 sm:$0xff]  }
 0x2bc   :  { %3607 = vmatmul.mubr.bf16.gmra.mrb[132].mxu0 %v7319_v39  ;;  %v5957_v39 = vld [vmem:[%s8471_s3 + $0x640] ss:$8 sps:$4 sm:$0xff]  }
 0x2bd   :  { %3883 = vmatpush1.bf16.msra.mxu0 %v5951_v6  ;;  %3910 = vmatprep.mubr.bf16.mxu0 %v7379_v0  ;;  %v5962_v0 = vld [vmem:[%s8471_s3 + $0x654] ss:$8 sps:$4 sm:$0xff]  }
 0x2be   :  { %3646 = vmatpush1.bf16.msra.mxu1 %v5927_v43  ;;  %3884 = vmatprep.subr.bf16.mxu0 %v5956_v63  ;;  %v6013_v43 = vld [vmem:[%s8471_s3 + $0x764] ss:$8 sps:$4 sm:$0xff]  }
 0x2bf   :  { %3647 = vmatprep.subr.bf16.mxu1 %v5932_v3  ;;  %v6011_v3 = vld [vmem:[%s8471_s3 + $0x760] ss:$8 sps:$4 sm:$0xff]  }
 0x2c1   :  { %3885 = vmatpush1.bf16.msra.mxu0 %v5954_v54 }
 0x2c2   :  { %3648 = vmatpush1.bf16.msra.mxu1 %v5930_v16  ;;  %3886 = vmatprep.subr.bf16.mxu0 %v5959_v18  ;;  %v6016_v16 = vld [vmem:[%s8471_s3 + $0x774] ss:$8 sps:$4 sm:$0xff]  }
 0x2c3   :  { %3649 = vmatprep.subr.bf16.mxu1 %v5935_v24  ;;  %v6014_v24 = vld [vmem:[%s8471_s3 + $0x770] ss:$8 sps:$4 sm:$0xff]  }
 0x2c5   :  { %3887 = vmatpush1.bf16.msra.mxu0 %v5957_v39 }
 0x2c6   :  { %3650 = vmatpush1.bf16.msra.mxu1 %v5933_v19  ;;  %3888 = vmatprep.subr.bf16.mxu0 %v5962_v0  ;;  %v6019_v19 = vld [vmem:[%s8471_s3 + $0x784] ss:$8 sps:$4 sm:$0xff]  }
 0x2c7   :  { %3651 = vmatprep.subr.bf16.mxu1 %v5938_v48  ;;  %v6017_v48 = vld [vmem:[%s8471_s3 + $0x780] ss:$8 sps:$4 sm:$0xff]  }
 0x2c9   :  { %3889 = vmatpush1.bf16.msra.mxu0 %v5960_v32 }
 0x2ca   :  { %3652 = vmatpush1.bf16.msra.mxu1 %v5936_v13  ;;  %3890 = vmatprep.subr.bf16.mxu0 %v5965_v55  ;;  %v6022_v13 = vld [vmem:[%s8471_s3 + $0x794] ss:$8 sps:$4 sm:$0xff]  }
 0x2cb   :  { %3653 = vmatprep.subr.bf16.mxu1 %v5941_v25  ;;  %v8805_v25 = vld [vmem:[#allocation3_spill] sm:$0xff] }
 0x2cd   :  { %3891 = vmatpush1.bf16.msra.mxu0 %v5963_v38 }
 0x2ce   :  { %3654 = vmatpush1.bf16.msra.mxu1 %v5939_v33  ;;  %3892 = vmatprep.subr.bf16.mxu0 %v5968_v40  ;;  %v8806_v33 = vld [vmem:[#allocation5_spill] sm:$0xff] }
 0x2cf   :  { %3655 = vmatprep.subr.bf16.mxu1 %v5944_v42  ;;  %v6020_v42 = vld [vmem:[%s8471_s3 + $0x790] ss:$8 sps:$4 sm:$0xff]  }
 0x2d1   :  { %3893 = vmatpush1.bf16.msra.mxu0 %v5966_v47 }
 0x2d2   :  { %3656 = vmatpush1.bf16.msra.mxu1 %v5942_v34  ;;  %3894 = vmatprep.subr.bf16.mxu0 %v5971_v61  ;;  %v6025_v34 = vld [vmem:[%s8471_s3 + $0x7a4] ss:$8 sps:$4 sm:$0xff]  }
 0x2d3   :  { %3939 = vmatprep.subr.bf16.mxu1 %v5947_v5  ;;  %v6023_v5 = vld [vmem:[%s8471_s3 + $0x7a0] ss:$8 sps:$4 sm:$0xff]  }
 0x2d5   :  { %3658 = vmatmul.mubr.bf16.vlgmr.msra.gmra.mrb[128].mxu1 %v7462_v57  ;;  %3895 = vmatpush1.bf16.msra.mxu0 %v5969_v37 }
 0x2d6   :  { %3667 = vmatprep.mubr.bf16.mxu1 %v7521_v26  ;;  %3940 = vmatpush1.bf16.msra.mxu1 %v5945_v12  ;;  %v6028_v12 = vld [vmem:[%s8471_s3 + $0x7b4] ss:$8 sps:$4 sm:$0xff]  }
 0x2d7   :  { %3941 = vmatprep.subr.bf16.mxu1 %v5950_v28  ;;  %3896 = vmatprep.subr.bf16.mxu0 %v5974_v4  ;;  %v8807_v28 = vld [vmem:[#allocation4_spill] sm:$0xff] }
 0x2d9   :  { %3897 = vmatpush1.bf16.msra.mxu0 %v5972_v2 }
 0x2da   :  { %3942 = vmatpush1.bf16.msra.mxu1 %v5948_v30  ;;  %3898 = vmatprep.subr.bf16.mxu0 %v5977_v14  ;;  %v6026_v30 = vld [vmem:[%s8471_s3 + $0x7b0] ss:$8 sps:$4 sm:$0xff]  }
 0x2db   :  { %3943 = vmatprep.subr.bf16.mxu1 %v5953_v44  ;;  %v6031_v44 = vld [vmem:[%s8471_s3 + $0x7c4] ss:$8 sps:$4 sm:$0xff]  }
 0x2dd   :  { %3668 = vmatmul.mubr.bf16.gmra.mrb[132].mxu1 %v7515_v31  ;;  %3899 = vmatpush1.bf16.msra.mxu0 %v5975_v62 }
 0x2de   :  { %3944 = vmatpush1.bf16.msra.mxu1 %v5951_v6  ;;  %3971 = vmatprep.mubr.bf16.mxu1 %v7569_v15  ;;  %v5986_v15 = vld [vmem:[%s8471_s3 + $0x6d4] ss:$8 sps:$4 sm:$0xff]   ;;  %v6029_v6 = vld [vmem:[%s8471_s3 + $0x7c0] ss:$8 sps:$4 sm:$0xff]  }
 0x2df   :  { %3945 = vmatprep.subr.bf16.mxu1 %v5956_v63  ;;  %3900 = vmatprep.subr.bf16.mxu0 %v5980_v23  ;;  %v6034_v63 = vld [vmem:[%s8471_s3 + $0x7d4] ss:$8 sps:$4 sm:$0xff]  }
 0x2e1   :  { %3901 = vmatpush1.bf16.msra.mxu0 %v5978_v50 }
 0x2e2   :  { %3946 = vmatpush1.bf16.msra.mxu1 %v5954_v54  ;;  %3902 = vmatprep.subr.bf16.mxu0 %v5983_v52  ;;  %v6032_v54 = vld [vmem:[%s8471_s3 + $0x7d0] ss:$8 sps:$4 sm:$0xff]  }
 0x2e3   :  { %3947 = vmatprep.subr.bf16.mxu1 %v5959_v18  ;;  %v6037_v18 = vld [vmem:[%s8471_s3 + $0x7e4] ss:$8 sps:$4 sm:$0xff]  }
 0x2e5   :  { %3903 = vmatpush1.bf16.msra.mxu0 %v5981_v8 }
 0x2e6   :  { %3948 = vmatpush1.bf16.msra.mxu1 %v5957_v39  ;;  %3904 = vmatprep.subr.bf16.mxu0 %v5986_v15  ;;  %v6035_v39 = vld [vmem:[%s8471_s3 + $0x7e0] ss:$8 sps:$4 sm:$0xff]  }
 0x2e7   :  { %3949 = vmatprep.subr.bf16.mxu1 %v5962_v0  ;;  %v6040_v0 = vld [vmem:[%s8471_s3 + $0x7f4] ss:$8 sps:$4 sm:$0xff]  }
 0x2e9   :  { %3905 = vmatpush1.bf16.msra.mxu0 %v5984_v10 }
 0x2ea   :  { %3950 = vmatpush1.bf16.msra.mxu1 %v5960_v32  ;;  %3906 = vmatprep.subr.bf16.mxu0 %v5989_v45  ;;  %v6038_v32 = vld [vmem:[%s8471_s3 + $0x7f0] ss:$8 sps:$4 sm:$0xff]  }
 0x2eb   :  { %3951 = vmatprep.subr.bf16.mxu1 %v5965_v55  ;;  %v6043_v55 = vld [vmem:[%s8471_s3 + $0x804] ss:$8 sps:$4 sm:$0xff]  }
 0x2ed   :  { %3907 = vmatpush1.bf16.msra.mxu0 %v5987_v22 }
 0x2ee   :  { %3952 = vmatpush1.bf16.msra.mxu1 %v5963_v38  ;;  %3908 = vmatprep.subr.bf16.mxu0 %v5992_v36  ;;  %v6041_v38 = vld [vmem:[%s8471_s3 + $0x800] ss:$8 sps:$4 sm:$0xff]  }
 0x2ef   :  { %3953 = vmatprep.subr.bf16.mxu1 %v5968_v40  ;;  %v6046_v40 = vld [vmem:[%s8471_s3 + $0x814] ss:$8 sps:$4 sm:$0xff]  }
 0x2f1   :  { %3909 = vmatpush1.bf16.msra.mxu0 %v5990_v11 }
 0x2f2   :  { %3954 = vmatpush1.bf16.msra.mxu1 %v5966_v47  ;;  %4192 = vmatprep.subr.bf16.mxu0 %v5995_v41  ;;  %v6044_v47 = vld [vmem:[%s8471_s3 + $0x810] ss:$8 sps:$4 sm:$0xff]  }
 0x2f3   :  { %3955 = vmatprep.subr.bf16.mxu1 %v5971_v61  ;;  %v6049_v61 = vld [vmem:[%s8471_s3 + $0x824] ss:$8 sps:$4 sm:$0xff]  }
 0x2f4   :  { %3911 = vmatmul.mubr.bf16.vlgmr.msra.gmra.mrb[128].mxu0 %v8804_v29  ;;  %v5999_v29 = vld [vmem:[%s8471_s3 + $0x720] ss:$8 sps:$4 sm:$0xff]  }
 0x2f5   :  { %3920 = vmatprep.mubr.bf16.mxu0 %v7417_v59  ;;  %4193 = vmatpush1.bf16.msra.mxu0 %v5993_v27 }
 0x2f6   :  { %3956 = vmatpush1.bf16.msra.mxu1 %v5969_v37  ;;  %4194 = vmatprep.subr.bf16.mxu0 %v5998_v20  ;;  %v6052_v37 = vld [vmem:[%s8471_s3 + $0x834] ss:$8 sps:$4 sm:$0xff]  }
 0x2f7   :  { %3957 = vmatprep.subr.bf16.mxu1 %v5974_v4  ;;  %v6050_v4 = vld [vmem:[%s8471_s3 + $0x830] ss:$8 sps:$4 sm:$0xff]  }
 0x2f9   :  { %4195 = vmatpush1.bf16.msra.mxu0 %v5996_v21 }
 0x2fa   :  { %3958 = vmatpush1.bf16.msra.mxu1 %v5972_v2  ;;  %4196 = vmatprep.subr.bf16.mxu0 %v6001_v1  ;;  %v6055_v2 = vld [vmem:[%s8471_s3 + $0x844] ss:$8 sps:$4 sm:$0xff]  }
 0x2fb   :  { %3959 = vmatprep.subr.bf16.mxu1 %v5977_v14  ;;  %v6053_v14 = vld [vmem:[%s8471_s3 + $0x840] ss:$8 sps:$4 sm:$0xff]  }
 0x2fc   :  { %3921 = vmatmul.mubr.bf16.gmra.mrb[132].mxu0 %v7412_v35 }
 0x2fd   :  { %4197 = vmatpush1.bf16.msra.mxu0 %v5999_v29  ;;  %4224 = vmatprep.mubr.bf16.mxu0 %v7417_v59  ;;  %v6010_v59 = vld [vmem:[%s8471_s3 + $0x754] ss:$8 sps:$4 sm:$0xff]  }
 0x2fe   :  { %3960 = vmatpush1.bf16.msra.mxu1 %v5975_v62  ;;  %4198 = vmatprep.subr.bf16.mxu0 %v6004_v53  ;;  %v6056_v62 = vld [vmem:[%s8471_s3 + $0x850] ss:$8 sps:$4 sm:$0xff]  }
 0x2ff   :  { %3961 = vmatprep.subr.bf16.mxu1 %v5980_v23  ;;  %v6061_v23 = vld [vmem:[%s8471_s3 + $0x864] ss:$8 sps:$4 sm:$0xff]  }
 0x301   :  { %4199 = vmatpush1.bf16.msra.mxu0 %v6002_v17 }
 0x302   :  { %3962 = vmatpush1.bf16.msra.mxu1 %v5978_v50  ;;  %4200 = vmatprep.subr.bf16.mxu0 %v6007_v56  ;;  %v6059_v50 = vld [vmem:[%s8471_s3 + $0x860] ss:$8 sps:$4 sm:$0xff]  }
 0x303   :  { %3963 = vmatprep.subr.bf16.mxu1 %v5983_v52  ;;  %v6064_v52 = vld [vmem:[%s8471_s3 + $0x874] ss:$8 sps:$4 sm:$0xff]  }
 0x305   :  { %4201 = vmatpush1.bf16.msra.mxu0 %v6005_v7 }
 0x306   :  { %3964 = vmatpush1.bf16.msra.mxu1 %v5981_v8  ;;  %4202 = vmatprep.subr.bf16.mxu0 %v6010_v59  ;;  %v6062_v8 = vld [vmem:[%s8471_s3 + $0x870] ss:$8 sps:$4 sm:$0xff]  }
 0x307   :  { %3965 = vmatprep.subr.bf16.mxu1 %v5986_v15  ;;  %v6067_v15 = vld [vmem:[%s8471_s3 + $0x884] ss:$8 sps:$4 sm:$0xff]  }
 0x309   :  { %4203 = vmatpush1.bf16.msra.mxu0 %v6008_v51 }
 0x30a   :  { %3966 = vmatpush1.bf16.msra.mxu1 %v5984_v10  ;;  %4204 = vmatprep.subr.bf16.mxu0 %v6013_v43  ;;  %v6065_v10 = vld [vmem:[%s8471_s3 + $0x880] ss:$8 sps:$4 sm:$0xff]  }
 0x30b   :  { %3967 = vmatprep.subr.bf16.mxu1 %v5989_v45  ;;  %v6070_v45 = vld [vmem:[%s8471_s3 + $0x894] ss:$8 sps:$4 sm:$0xff]  }
 0x30d   :  { %4205 = vmatpush1.bf16.msra.mxu0 %v6011_v3 }
 0x30e   :  { %3968 = vmatpush1.bf16.msra.mxu1 %v5987_v22  ;;  %4206 = vmatprep.subr.bf16.mxu0 %v6016_v16  ;;  %v6068_v22 = vld [vmem:[%s8471_s3 + $0x890] ss:$8 sps:$4 sm:$0xff]  }
 0x30f   :  { %3969 = vmatprep.subr.bf16.mxu1 %v5992_v36  ;;  %v6073_v36 = vld [vmem:[%s8471_s3 + $0x8a4] ss:$8 sps:$4 sm:$0xff]  }
 0x311   :  { %4207 = vmatpush1.bf16.msra.mxu0 %v6014_v24 }
 0x312   :  { %3970 = vmatpush1.bf16.msra.mxu1 %v5990_v11  ;;  %4208 = vmatprep.subr.bf16.mxu0 %v6019_v19  ;;  %v6071_v11 = vld [vmem:[%s8471_s3 + $0x8a0] ss:$8 sps:$4 sm:$0xff]  }
 0x313   :  { %4253 = vmatprep.subr.bf16.mxu1 %v5995_v41  ;;  %v6076_v41 = vld [vmem:[%s8471_s3 + $0x8b4] ss:$8 sps:$4 sm:$0xff]  }
 0x315   :  { %3972 = vmatmul.mubr.bf16.vlgmr.msra.gmra.mrb[128].mxu1 %v8805_v25  ;;  %4209 = vmatpush1.bf16.msra.mxu0 %v6017_v48  ;;  %v6114_v25 = vmov 0.0  }
 0x316   :  { %3981 = vmatprep.mubr.bf16.mxu1 %v8806_v33  ;;  %4254 = vmatpush1.bf16.msra.mxu1 %v5993_v27  ;;  %v6074_v27 = vld [vmem:[%s8471_s3 + $0x8b0] ss:$8 sps:$4 sm:$0xff]  }
 0x317   :  { %4255 = vmatprep.subr.bf16.mxu1 %v5998_v20  ;;  %4210 = vmatprep.subr.bf16.mxu0 %v6022_v13  ;;  %v6079_v20 = vld [vmem:[%s8471_s3 + $0x8c4] ss:$8 sps:$4 sm:$0xff]  }
 0x319   :  { %4211 = vmatpush1.bf16.msra.mxu0 %v6020_v42 }
 0x31a   :  { %4256 = vmatpush1.bf16.msra.mxu1 %v5996_v21  ;;  %4212 = vmatprep.subr.bf16.mxu0 %v6025_v34  ;;  %v6077_v21 = vld [vmem:[%s8471_s3 + $0x8c0] ss:$8 sps:$4 sm:$0xff]  }
 0x31b   :  { %4257 = vmatprep.subr.bf16.mxu1 %v6001_v1  ;;  %v6080_v1 = vld [vmem:[%s8471_s3 + $0x8d0] ss:$8 sps:$4 sm:$0xff]  }
 0x31d   :  { %3982 = vmatmul.mubr.bf16.gmra.mrb[132].mxu1 %v8807_v28  ;;  %4213 = vmatpush1.bf16.msra.mxu0 %v6023_v5 }
 0x31e   :  { %4258 = vmatpush1.bf16.msra.mxu1 %v5999_v29  ;;  %4285 = vmatprep.mubr.bf16.mxu1 %v8806_v33  ;;  %v6085_v29 = vld [vmem:[%s8471_s3 + $0x8e4] ss:$8 sps:$4 sm:$0xff]  }
 0x31f   :  { %4259 = vmatprep.subr.bf16.mxu1 %v6004_v53  ;;  %4214 = vmatprep.subr.bf16.mxu0 %v6028_v12  ;;  %v6083_v53 = vld [vmem:[%s8471_s3 + $0x8e0] ss:$8 sps:$4 sm:$0xff]  }
 0x320   :  { %v6105_v33 = vld [vmem:[%s8474_s7] sm:$0xff]  }
 0x321   :  { %4215 = vmatpush1.bf16.msra.mxu0 %v6026_v30 }
 0x322   :  { %4260 = vmatpush1.bf16.msra.mxu1 %v6002_v17  ;;  %4216 = vmatprep.subr.bf16.mxu0 %v6031_v44  ;;  %v6088_v17 = vld [vmem:[%s8471_s3 + $0x8f4] ss:$8 sps:$4 sm:$0xff]  }
 0x323   :  { %4261 = vmatprep.subr.bf16.mxu1 %v6007_v56  ;;  %v6086_v56 = vld [vmem:[%s8471_s3 + $0x8f0] ss:$8 sps:$4 sm:$0xff]  }
 0x325   :  { %4217 = vmatpush1.bf16.msra.mxu0 %v6029_v6 }
 0x326   :  { %4262 = vmatpush1.bf16.msra.mxu1 %v6005_v7  ;;  %4218 = vmatprep.subr.bf16.mxu0 %v6034_v63  ;;  %v6095_v7 = vld [vmem:[%s8473_s5 + $0x58] sm:$0xff]  }
 0x327   :  { %4263 = vmatprep.subr.bf16.mxu1 %v6010_v59  ;;  %v6096_v59 = vld [vmem:[%s8473_s5 + $0x18] sm:$0xff]  }
 0x329   :  { %4219 = vmatpush1.bf16.msra.mxu0 %v6032_v54 }
 0x32a   :  { %4264 = vmatpush1.bf16.msra.mxu1 %v6008_v51  ;;  %4220 = vmatprep.subr.bf16.mxu0 %v6037_v18  ;;  %v6097_v51 = vld [vmem:[%s8473_s5 + $0x60] sm:$0xff]  }
 0x32b   :  { %4265 = vmatprep.subr.bf16.mxu1 %v6013_v43  ;;  %v6098_v43 = vld [vmem:[%s8473_s5 + $0x20] sm:$0xff]  }
 0x32d   :  { %4221 = vmatpush1.bf16.msra.mxu0 %v6035_v39 }
 0x32e   :  { %4266 = vmatpush1.bf16.msra.mxu1 %v6011_v3  ;;  %4222 = vmatprep.subr.bf16.mxu0 %v6040_v0  ;;  %v6099_v3 = vld [vmem:[%s8473_s5 + $0x68] sm:$0xff]  }
 0x32f   :  { %4267 = vmatprep.subr.bf16.mxu1 %v6016_v16  ;;  %v6100_v16 = vld [vmem:[%s8473_s5 + $0x28] sm:$0xff]  }
 0x331   :  { %4223 = vmatpush1.bf16.msra.mxu0 %v6038_v32 }
 0x332   :  { %4268 = vmatpush1.bf16.msra.mxu1 %v6014_v24  ;;  %4506 = vmatprep.subr.bf16.mxu0 %v6043_v55  ;;  %v6101_v24 = vld [vmem:[%s8473_s5 + $0x70] sm:$0xff]  }
 0x333   :  { %4269 = vmatprep.subr.bf16.mxu1 %v6019_v19  ;;  %v6102_v19 = vld [vmem:[%s8473_s5 + $0x30] sm:$0xff]  }
 0x334   :  { %4225 = vmatmul.mubr.bf16.vlgmr.msra.gmra.mrb[128].mxu0 %v7412_v35  ;;  %v6047_v35 = vld [vmem:[%s8471_s3 + $0x820] ss:$8 sps:$4 sm:$0xff]  }
 0x335   :  { %4234 = vmatprep.mubr.bf16.mxu0 %v7467_v58  ;;  %4507 = vmatpush1.bf16.msra.mxu0 %v6041_v38 }
 0x336   :  { %4270 = vmatpush1.bf16.msra.mxu1 %v6017_v48  ;;  %4508 = vmatprep.subr.bf16.mxu0 %v6046_v40  ;;  %v6103_v48 = vld [vmem:[%s8473_s5 + $0x78] sm:$0xff]  }
 0x337   :  { %4271 = vmatprep.subr.bf16.mxu1 %v6022_v13  ;;  %v6104_v13 = vld [vmem:[%s8473_s5 + $0x38] sm:$0xff]  }
 0x339   :  { %4509 = vmatpush1.bf16.msra.mxu0 %v6044_v47 }
 0x33a   :  { %4272 = vmatpush1.bf16.msra.mxu1 %v6020_v42  ;;  %4510 = vmatprep.subr.bf16.mxu0 %v6049_v61  ;;  %v6106_v42 = vld [vmem:[%s8474_s7 + $0x8] sm:$0xff]  }
 0x33b   :  { %4273 = vmatprep.subr.bf16.mxu1 %v6025_v34  ;;  %v6107_v34 = vld [vmem:[%s8474_s7 + $0x10] sm:$0xff]  }
 0x33c   :  { %4235 = vmatmul.mubr.bf16.gmra.mrb[132].mxu0 %v7462_v57 }
 0x33d   :  { %4511 = vmatpush1.bf16.msra.mxu0 %v6047_v35  ;;  %4538 = vmatprep.mubr.bf16.mxu0 %v7467_v58  ;;  %v6058_v58 = vld [vmem:[%s8471_s3 + $0x854] ss:$8 sps:$4 sm:$0xff]  }
 0x33e   :  { %4274 = vmatpush1.bf16.msra.mxu1 %v6023_v5  ;;  %4512 = vmatprep.subr.bf16.mxu0 %v6052_v37  ;;  %v6108_v5 = vld [vmem:[%s8474_s7 + $0x18] sm:$0xff]  }
 0x33f   :  { %4275 = vmatprep.subr.bf16.mxu1 %v6028_v12  ;;  %v6109_v12 = vld [vmem:[%s8474_s7 + $0x20] sm:$0xff]  }
 0x341   :  { %4513 = vmatpush1.bf16.msra.mxu0 %v6050_v4 }
 0x342   :  { %4276 = vmatpush1.bf16.msra.mxu1 %v6026_v30  ;;  %4514 = vmatprep.subr.bf16.mxu0 %v6055_v2 }
 0x343   :  { %4277 = vmatprep.subr.bf16.mxu1 %v6031_v44 }
 0x345   :  { %4515 = vmatpush1.bf16.msra.mxu0 %v6053_v14 }
 0x346   :  { %4278 = vmatpush1.bf16.msra.mxu1 %v6029_v6  ;;  %4516 = vmatprep.subr.bf16.mxu0 %v6058_v58 }
 0x347   :  { %4279 = vmatprep.subr.bf16.mxu1 %v6034_v63 }
 0x349   :  { %4517 = vmatpush1.bf16.msra.mxu0 %v6056_v62 }
 0x34a   :  { %4280 = vmatpush1.bf16.msra.mxu1 %v6032_v54  ;;  %4518 = vmatprep.subr.bf16.mxu0 %v6061_v23 }
 0x34b   :  { %4281 = vmatprep.subr.bf16.mxu1 %v6037_v18 }
 0x34d   :  { %4519 = vmatpush1.bf16.msra.mxu0 %v6059_v50 }
 0x34e   :  { %4282 = vmatpush1.bf16.msra.mxu1 %v6035_v39  ;;  %4520 = vmatprep.subr.bf16.mxu0 %v6064_v52 }
 0x34f   :  { %4283 = vmatprep.subr.bf16.mxu1 %v6040_v0 }
 0x351   :  { %4521 = vmatpush1.bf16.msra.mxu0 %v6062_v8 }
 0x352   :  { %4284 = vmatpush1.bf16.msra.mxu1 %v6038_v32  ;;  %4522 = vmatprep.subr.bf16.mxu0 %v6067_v15 }
 0x353   :  { %4567 = vmatprep.subr.bf16.mxu1 %v6043_v55 }
 0x355   :  { %4286 = vmatmul.mubr.bf16.vlgmr.msra.gmra.mrb[128].mxu1 %v8807_v28  ;;  %4523 = vmatpush1.bf16.msra.mxu0 %v6065_v10 }
 0x356   :  { %4295 = vmatprep.mubr.bf16.mxu1 %v7667_v60  ;;  %4568 = vmatpush1.bf16.msra.mxu1 %v6041_v38 }
 0x357   :  { %4569 = vmatprep.subr.bf16.mxu1 %v6046_v40  ;;  %4524 = vmatprep.subr.bf16.mxu0 %v6070_v45 }
 0x359   :  { %4525 = vmatpush1.bf16.msra.mxu0 %v6068_v22 }
 0x35a   :  { %4570 = vmatpush1.bf16.msra.mxu1 %v6044_v47  ;;  %4526 = vmatprep.subr.bf16.mxu0 %v6073_v36 }
 0x35b   :  { %4571 = vmatprep.subr.bf16.mxu1 %v6049_v61 }
 0x35d   :  { %4296 = vmatmul.mubr.bf16.gmra.mrb[132].mxu1 %v7661_v9  ;;  %4527 = vmatpush1.bf16.msra.mxu0 %v6071_v11 }
 0x35e   :  { %4572 = vmatpush1.bf16.msra.mxu1 %v6047_v35  ;;  %4599 = vmatprep.mubr.bf16.mxu1 %v7667_v60  ;;  %v6082_v60 = vld [vmem:[%s8471_s3 + $0x8d4] ss:$8 sps:$4 sm:$0xff]  }
 0x35f   :  { %4573 = vmatprep.subr.bf16.mxu1 %v6052_v37  ;;  %4528 = vmatprep.subr.bf16.mxu0 %v6076_v41  ;;  %v4640_v37 = vld [vmem:[%s8475_s4] sm:$0x3] }
 0x361   :  { %4529 = vmatpush1.bf16.msra.mxu0 %v6074_v27 }
 0x362   :  { %4574 = vmatpush1.bf16.msra.mxu1 %v6050_v4  ;;  %4530 = vmatprep.subr.bf16.mxu0 %v6079_v20 }
 0x363   :  { %4575 = vmatprep.subr.bf16.mxu1 %v6055_v2 }
 0x365   :  { %4531 = vmatpush1.bf16.msra.mxu0 %v6077_v21 }
 0x366   :  { %4576 = vmatpush1.bf16.msra.mxu1 %v6053_v14  ;;  %4532 = vmatprep.subr.bf16.mxu0 %v6082_v60  ;;  %v8808_v14 = vld [vmem:[#allocation81_spill] sm:$0xff] }
 0x367   :  { %4577 = vmatprep.subr.bf16.mxu1 %v6058_v58  ;;  %v8809_v58 = vsub.s32 0, %v8808_v14 }
 0x369   :  { %4533 = vmatpush1.bf16.msra.mxu0 %v6080_v1 }
 0x36a   :  { %4578 = vmatpush1.bf16.msra.mxu1 %v6056_v62  ;;  %4534 = vmatprep.subr.bf16.mxu0 %v6085_v29  ;;  %v4645_v62 = vrot.slane %v4640_v37, %v8809_v58 }
 0x36b   :  { %4579 = vmatprep.subr.bf16.mxu1 %v6061_v23 }
 0x36d   :  { %4535 = vmatpush1.bf16.msra.mxu0 %v6083_v53 }
 0x36e   :  { %4580 = vmatpush1.bf16.msra.mxu1 %v6059_v50  ;;  %4536 = vmatprep.subr.bf16.mxu0 %v6088_v17 }
 0x36f   :  { %4581 = vmatprep.subr.bf16.mxu1 %v6064_v52  ;;  %v8810_v52 = vsub.s32 1, %v8808_v14 }
 0x371   :  { %4537 = vmatpush1.bf16.msra.mxu0 %v6086_v56 }
 0x372   :  { %4582 = vmatpush1.bf16.msra.mxu1 %v6062_v8  ;;  %v4649_v8 = vrot.slane %v4640_v37, %v8810_v52 }
 0x373   :  { %4583 = vmatprep.subr.bf16.mxu1 %v6067_v15 }
 0x374   :  { %4539 = vmatmul.mubr.bf16.vlgmr.msra.gmra.mrb[128].mxu0 %v7462_v57  ;;  %v6089_v57 = vld [vmem:[%s8473_s5 + $0x40] sm:$0xff]  }
 0x375   :  { %4548 = vmatprep.mubr.bf16.mxu0 %v7521_v26  ;;  %5405 = vmatprep.subr.bf16.mxu0 %v6089_v57  ;;  %v6091_v26 = vld [vmem:[%s8473_s5 + $0x48] sm:$0xff]  }
 0x376   :  { %4584 = vmatpush1.bf16.msra.mxu1 %v6065_v10 }
 0x377   :  { %4585 = vmatprep.subr.bf16.mxu1 %v6070_v45 }
 0x37a   :  { %4586 = vmatpush1.bf16.msra.mxu1 %v6068_v22 }
 0x37b   :  { %4587 = vmatprep.subr.bf16.mxu1 %v6073_v36 }
 0x37c   :  { %4549 = vmatmul.mubr.bf16.gmra.mrb[132].mxu0 %v7515_v31  ;;  %v6090_v31 = vld [vmem:[%s8473_s5] sm:$0xff]  }
 0x37d   :  { %5406 = vmatpush3.bf16.msra.mxu0 %v6090_v31 }
 0x37e   :  { %4588 = vmatpush1.bf16.msra.mxu1 %v6071_v11  ;;  %5407 = vmatprep.subr.bf16.mxu0 %v6091_v26  ;;  %v6110_v26 = vld [vmem:[%s8474_s7 + $0x28] sm:$0xff]  }
 0x37f   :  { %4589 = vmatprep.subr.bf16.mxu1 %v6076_v41 }
 0x382   :  { %4590 = vmatpush1.bf16.msra.mxu1 %v6074_v27 }
 0x383   :  { %4591 = vmatprep.subr.bf16.mxu1 %v6079_v20 }
 0x386   :  { %4592 = vmatpush1.bf16.msra.mxu1 %v6077_v21 }
 0x387   :  { %4593 = vmatprep.subr.bf16.mxu1 %v6082_v60 }
 0x38a   :  { %4594 = vmatpush1.bf16.msra.mxu1 %v6080_v1 }
 0x38b   :  { %4595 = vmatprep.subr.bf16.mxu1 %v6085_v29 }
 0x38e   :  { %4596 = vmatpush1.bf16.msra.mxu1 %v6083_v53 }
 0x38f   :  { %4597 = vmatprep.subr.bf16.mxu1 %v6088_v17 }
 0x392   :  { %4598 = vmatpush1.bf16.msra.mxu1 %v6086_v56 }
 0x393   :  { %5436 = vmatprep.subr.bf16.mxu1 %v6114_v25 }
 0x395   :  { %4600 = vmatmul.mubr.bf16.vlgmr.msra.gmra.mrb[128].mxu1 %v7661_v9  ;;  %v6092_v9 = vld [vmem:[%s8473_s5 + $0x8] sm:$0xff]  }
 0x396   :  { %4609 = vmatprep.mubr.bf16.mxu1 %v7701_v49  ;;  %5408 = vmatpush3.bf16.msra.mxu0 %v6092_v9  ;;  %v6094_v49 = vld [vmem:[%s8473_s5 + $0x10] sm:$0xff]  }
 0x397   :  { %5437 = vmatpush3.bf16.msra.mxu1 %v6105_v33  ;;  %v6111_v9 = vld [vmem:[%s8474_s7 + $0x30] sm:$0xff]  }
 0x398   :  { %5438 = vmatprep.subr.bf16.mxu1 %v6114_v25 }
 0x39b   :  { %5439 = vmatpush3.bf16.msra.mxu1 %v6106_v42 }
 0x39c   :  { %5440 = vmatprep.subr.bf16.mxu1 %v6114_v25 }
 0x39d   :  { %4610 = vmatmul.mubr.bf16.gmra.mrb[132].mxu1 %v7698_v46  ;;  %v6093_v46 = vld [vmem:[%s8473_s5 + $0x50] sm:$0xff]  }
 0x39e   :  { %5409 = vmatprep.subr.bf16.mxu0 %v6093_v46  ;;  %v6112_v46 = vld [vmem:[%s8474_s7 + $0x38] sm:$0xff]   ;;  %5452 = vmatprep.mubr.msk.bf16.mxu1 %vm6115_vm1, %v6114_v25 }
 0x39f   :  { %5410 = vmatpush3.bf16.msra.mxu0 %v6094_v49  ;;  %5441 = vmatpush3.bf16.msra.mxu1 %v6107_v34 }
 0x3a0   :  { %5411 = vmatprep.subr.bf16.mxu0 %v6095_v7  ;;  %5442 = vmatprep.subr.bf16.mxu1 %v6114_v25  ;;  %v5379_v7 = vld [vmem:[%s8476_s6] ss:$0 sm:$0xff] }
 0x3a3   :  { %5412 = vmatpush3.bf16.msra.mxu0 %v6096_v59  ;;  %5443 = vmatpush3.bf16.msra.mxu1 %v6108_v5 }
 0x3a4   :  { %5413 = vmatprep.subr.bf16.mxu0 %v6097_v51  ;;  %5444 = vmatprep.subr.bf16.mxu1 %v6114_v25 }
 0x3a7   :  { %5414 = vmatpush3.bf16.msra.mxu0 %v6098_v43  ;;  %5445 = vmatpush3.bf16.msra.mxu1 %v6109_v12 }
 0x3a8   :  { %5415 = vmatprep.subr.bf16.mxu0 %v6099_v3  ;;  %5446 = vmatprep.subr.bf16.mxu1 %v6114_v25 }
 0x3ab   :  { %5416 = vmatpush3.bf16.msra.mxu0 %v6100_v16  ;;  %5447 = vmatpush3.bf16.msra.mxu1 %v6110_v26 }
 0x3ac   :  { %5417 = vmatprep.subr.bf16.mxu0 %v6101_v24  ;;  %5448 = vmatprep.subr.bf16.mxu1 %v6114_v25 }
 0x3af   :  { %5418 = vmatpush3.bf16.msra.mxu0 %v6102_v19  ;;  %5449 = vmatpush3.bf16.msra.mxu1 %v6111_v9 }
 0x3b0   :  { %5419 = vmatprep.subr.bf16.mxu0 %v6103_v48  ;;  %5450 = vmatprep.subr.bf16.mxu1 %v6114_v25  ;;  %v5396_v25 = vld [vmem:[%s8477_s8] ss:$0 sm:$0xff] }
 0x3b3   :  { %5420 = vmatpush3.bf16.msra.mxu0 %v6104_v13  ;;  %5451 = vmatpush3.bf16.msra.mxu1 %v6112_v46 }
 0x447   :  { %v4540_v28 = vpop.f32.mrb[128].mxu0 }
 0x448   :  { %v4542_v30 = vpop.f32.mrb[129].mxu0 }
 0x449   :  { %v4544_v44 = vpop.f32.mrb[130].mxu0 }
 0x44a   :  { %v4546_v6 = vpop.f32.mrb[131].mxu0 }
 0x44f   :  { %v4550_v63 = vpop.f32.mrb[132].mxu0 }
 0x450   :  { %v4552_v54 = vpop.f32.mrb[133].mxu0 }
 0x451   :  { %v4554_v18 = vpop.f32.mrb[134].mxu0 }
 0x452   :  { %v4556_v39 = vpop.f32.mrb[135].mxu0 }
 0x468   :  { %v4601_v0 = vpop.f32.mrb[128].mxu1 }
 0x469   :  { %v4628_v32 = vmax.f32 %v4540_v28, %v4601_v0  ;;  %v4603_v55 = vpop.f32.mrb[129].mxu1 }
 0x46a   :  { %v4629_v38 = vmax.f32 %v4542_v30, %v4603_v55  ;;  %v4605_v40 = vpop.f32.mrb[130].mxu1 }
 0x46b   :  { %v4630_v47 = vmax.f32 %v4544_v44, %v4605_v40  ;;  %v4607_v61 = vpop.f32.mrb[131].mxu1 }
 0x46c   :  { %v4631_v35 = vmax.f32 %v4546_v6, %v4607_v61 }
 0x470   :  { %v4611_v4 = vpop.f32.mrb[132].mxu1 }
 0x471   :  { %v4632_v2 = vmax.f32 %v4550_v63, %v4611_v4  ;;  %v4613_v23 = vpop.f32.mrb[133].mxu1 }
 0x472   :  { %v4633_v50 = vmax.f32 %v4552_v54, %v4613_v23  ;;  %v4615_v15 = vpop.f32.mrb[134].mxu1 }
 0x473   :  { %v4636_v10 = vmax.f32 %v4628_v32, %v4632_v2  ;;  %v4634_v45 = vmax.f32 %v4554_v18, %v4615_v15  ;;  %v4617_v22 = vpop.f32.mrb[135].mxu1 }
 0x474   :  { %v4637_v36 = vmax.f32 %v4629_v38, %v4633_v50  ;;  %v4635_v11 = vmax.f32 %v4556_v39, %v4617_v22 }
 0x475   :  { %v4652_v41 = vadd.f32 %v4645_v62, %v4636_v10  ;;  %v4638_v27 = vmax.f32 %v4630_v47, %v4634_v45 }
 0x476   :  { %v4653_v20 = vadd.f32 %v4649_v8, %v4637_v36  ;;  %v4639_v21 = vmax.f32 %v4631_v35, %v4635_v11 }
 0x477   :  { %v4654_v60 = vadd.f32 %v4645_v62, %v4638_v27  ;;  %v4656_v29 = vmax.f32 %v4652_v41, 0.0 }
 0x478   :  { %v4655_v1 = vadd.f32 %v4649_v8, %v4639_v21  ;;  %v4657_v17 = vmax.f32 %v4653_v20, 0.0 }
 0x479   :  { %v4658_v53 = vmax.f32 %v4654_v60, 0.0 }
 0x47a   :  { %v4659_v56 = vmax.f32 %v4655_v1, 0.0 }
 0x47b   :  { %v4660_v57 = vpack.c.bf16 %v4658_v53, %v4656_v29 }
 0x47c   :  { %v4661_v31 = vpack.c.bf16 %v4659_v56, %v4657_v17 }
 0x47e   :  { %4829 = vmatprep.mubr.bf16.mxu0 %v4661_v31 }
 0x47f   :  { %4830 = vmatmul.mubr.bf16.vlgmr.msra.gmra.mrb[136].mxu0 %v4660_v57 }
 0x552   :  { %v5421_v49 = vpop.f32.mrb[136].mxu0 }
 0x553   :  { %v5422_v59 = vpop.f32.mrb[137].mxu0 }
 0x554   :  { %v5423_v51 = vadd.f32 %v5422_v59, %v5421_v49  ;;  %v5424_v43 = vpop.f32.mrb[138].mxu0 }
 0x555   :  { %v5425_v3 = vpop.f32.mrb[139].mxu0 }
 0x556   :  { %v4832_v16 = vadd.f32 %v5423_v51, %v5379_v7  ;;  %v5426_v24 = vadd.f32 %v5425_v3, %v5424_v43 }
 0x558   :  { %v4835_v19 = vadd.f32 %v5426_v24, %v5379_v7  ;;  %v4838_v48 = vmax.f32 %v4832_v16, 0.0 }
 0x55a   :  { %v4839_v13 = vmax.f32 %v4835_v19, 0.0 }
 0x55c   :  { %v4840_v33 = vpack.c.bf16 %v4839_v13, %v4838_v48 }
 0x55e   :  { %5453 = vmatmul.mubr.bf16.vlgmr.msra.gmra.mrb[136].mxu1 %v4840_v33 }
 0x631   :  { %v4946_v42 = vpop.f32.mrb[136].mxu1 }
 0x632   :  { %v4947_v34 = vadd.f32 %v5396_v25, %v4946_v42  ;;  %v5454_v5 = vpop.f32.mrb[137].mxu1 }
 0x633   :  { %v4949_v12 = vpop.f32.mrb[138].mxu1 }
 0x634   :  { %4953 = vst [vmem:[%s8478_s9] sm:$0xff] %v4947_v34  ;;  %v4950_v28 = vadd.f32 %v5396_v25, %v4949_v12  ;;  %v5455_v30 = vpop.f32.mrb[139].mxu1 }
 0x636   :  { %4954 = vst [vmem:[%s8478_s9 + $0x8] sm:$0xff] %v4950_v28 }

</bundles_post_ra>
